<compile_context>
chip_gen: v7x
topology: tpu7x:2x2x1
jax: 0.10.0
libtpu: 0.0.40
codegen_flags: <defaults>
</compile_context>

<pallas_src>
import functools
import math

import jax
import jax.numpy as jnp
from jax.experimental import pallas as pl
from jax.experimental.pallas import tpu as pltpu


NORM_EPS = 1e-5                   # LLaMA-style ModelArgs norm eps
VMEM_LIMIT = 32 * 1024 * 1024     # explicit scoped-VMEM budget (v5e/v6e/v7x safe)
ROW_TILE = 256                    # row tile for linear/norm kernels


# ----------------------------- Pallas kernels ------------------------------

def _fused_linear_kernel(*refs, nrm, add_pre, gelu, residual, eps):
    """[rmsnorm] -> [+pre] -> matmul(+bias) -> [gelu] -> [+residual] -> store.

    Ref order: x, [norm_w], [pre_add], w, b, [residual], out.
    Dot operands stay in the input dtype (bf16 on the MXU); accumulation and
    all elementwise math run in f32.
    """
    it = iter(refs)
    x_ref = next(it)
    norm_ref = next(it) if nrm else None
    pre_ref = next(it) if add_pre else None
    w_ref = next(it)
    b_ref = next(it)
    res_ref = next(it) if residual else None
    o_ref = next(it)

    x = x_ref[...]
    if nrm or add_pre:
        xf = x.astype(jnp.float32)
        if nrm:
            var = jnp.mean(xf * xf, axis=-1, keepdims=True)
            xf = xf * jax.lax.rsqrt(var + eps) * norm_ref[...].astype(jnp.float32)
        if add_pre:
            xf = xf + pre_ref[...].astype(jnp.float32)
        x = xf.astype(x_ref.dtype)

    acc = jnp.dot(x, w_ref[...], preferred_element_type=jnp.float32)
    acc = acc + b_ref[...].astype(jnp.float32)
    if gelu:
        acc = jax.nn.gelu(acc)
    if residual:
        acc = acc + res_ref[...].astype(jnp.float32)
    o_ref[...] = acc.astype(o_ref.dtype)


def fused_linear(x, w, b, *, norm_w=None, pre_add=None, residual=None,
                 gelu=False, out_dtype=None, eps=NORM_EPS, tm=ROW_TILE):
    """y = [gelu]((rmsnorm(x)[+pre]) @ w + b) [+ residual], row-tiled."""
    M, K = x.shape
    N = w.shape[1]
    out_dtype = out_dtype or x.dtype
    if w.dtype != x.dtype:          # keep MXU operands in the compute dtype
        w = w.astype(x.dtype)

    bm = min(tm, M)
    grid = (pl.cdiv(M, bm),)
    row_in = pl.BlockSpec((bm, K), lambda i: (i, 0))
    row_out = pl.BlockSpec((bm, N), lambda i: (i, 0))
    full_w = pl.BlockSpec((K, N), lambda i: (0, 0))
    vec_k = pl.BlockSpec((1, K), lambda i: (0, 0))
    vec_n = pl.BlockSpec((1, N), lambda i: (0, 0))

    in_specs = [row_in]
    args = [x]
    if norm_w is not None:
        in_specs.append(vec_k)
        args.append(norm_w.reshape(1, K))
    if pre_add is not None:
        in_specs.append(row_in)
        args.append(pre_add)
    in_specs += [full_w, vec_n]
    args += [w, b.reshape(1, N)]
    if residual is not None:
        in_specs.append(row_out)
        args.append(residual)

    kernel = functools.partial(
        _fused_linear_kernel,
        nrm=norm_w is not None, add_pre=pre_add is not None,
        gelu=gelu, residual=residual is not None, eps=eps)

    return pl.pallas_call(
        kernel,
        out_shape=jax.ShapeDtypeStruct((M, N), out_dtype),
        grid=grid,
        in_specs=in_specs,
        out_specs=row_out,
        compiler_params=pltpu.CompilerParams(
            dimension_semantics=("parallel",),
            vmem_limit_bytes=VMEM_LIMIT),
    )(*args)


def _rmsnorm_kernel(x_ref, w_ref, o_ref, *, eps):
    x = x_ref[...].astype(jnp.float32)
    var = jnp.mean(x * x, axis=-1, keepdims=True)
    y = x * jax.lax.rsqrt(var + eps) * w_ref[...].astype(jnp.float32)
    o_ref[...] = y.astype(o_ref.dtype)


def rmsnorm(x, w, eps=NORM_EPS, tm=ROW_TILE):
    M, D = x.shape
    bm = min(tm, M)
    return pl.pallas_call(
        functools.partial(_rmsnorm_kernel, eps=eps),
        out_shape=jax.ShapeDtypeStruct((M, D), x.dtype),
        grid=(pl.cdiv(M, bm),),
        in_specs=[pl.BlockSpec((bm, D), lambda i: (i, 0)),
                  pl.BlockSpec((1, D), lambda i: (0, 0))],
        out_specs=pl.BlockSpec((bm, D), lambda i: (i, 0)),
        compiler_params=pltpu.CompilerParams(
            dimension_semantics=("parallel",),
            vmem_limit_bytes=VMEM_LIMIT),
    )(x, w.reshape(1, D))


def _attn_kernel(q_ref, k_ref, v_ref, o_ref, *, n_heads, scale):
    """Multi-head softmax attention for one batch element, lane-dense (.., D)
    layout with a static head loop inside.  Scores accumulate in f32; the
    1/sqrt(head_dim) scale is folded into q once; softmax denominator uses the
    EUP reciprocal (approx)."""
    q = q_ref[0]                                    # (Nq, D), compute dtype
    k = k_ref[0]                                    # (Nk, D)
    v = v_ref[0]                                    # (Nk, D)
    D = q.shape[-1]
    hd = D // n_heads
    # fold 1/sqrt(hd) into q (one f32 pass over the small operand)
    q = (q.astype(jnp.float32) * scale).astype(q_ref.dtype)

    outs = []
    for h in range(n_heads):
        sl = slice(h * hd, (h + 1) * hd)
        qh, kh, vh = q[:, sl], k[:, sl], v[:, sl]
        # contract last dims directly -> no in-kernel K transpose
        s = jax.lax.dot_general(qh, kh, (((1,), (1,)), ((), ())),
                                preferred_element_type=jnp.float32)
        s = s - jnp.max(s, axis=-1, keepdims=True)
        p = jnp.exp(s)
        denom = jnp.sum(p, axis=-1, keepdims=True)
        p = p * pl.reciprocal(denom, approx=True)
        outs.append(jnp.dot(p.astype(vh.dtype), vh,
                            preferred_element_type=jnp.float32))
    # single full-width (lane-dense) store of all heads
    o_ref[0] = jnp.concatenate(outs, axis=-1).astype(o_ref.dtype)


def attention(q, k, v, n_heads):
    """q,k,v: (B, N, D) with D = n_heads * head_dim kept as the last dim."""
    B, Nq, D = q.shape
    _, Nk, _ = k.shape
    scale = 1.0 / math.sqrt(D // n_heads)
    # TODO(synk): for production-scale image-token counts, tile the KV axis
    # (flash-style online softmax + accumulator scratch) instead of one block.
    return pl.pallas_call(
        functools.partial(_attn_kernel, n_heads=n_heads, scale=scale),
        out_shape=jax.ShapeDtypeStruct((B, Nq, D), q.dtype),
        grid=(B,),
        in_specs=[pl.BlockSpec((1, Nq, D), lambda i: (i, 0, 0)),
                  pl.BlockSpec((1, Nk, D), lambda i: (i, 0, 0)),
                  pl.BlockSpec((1, Nk, D), lambda i: (i, 0, 0))],
        out_specs=pl.BlockSpec((1, Nq, D), lambda i: (i, 0, 0)),
        compiler_params=pltpu.CompilerParams(
            dimension_semantics=("parallel",),
            vmem_limit_bytes=VMEM_LIMIT),
    )(q, k, v)


# --------------------------- model building blocks --------------------------

def self_attn_block(x, p, n_heads, dtype, eps):
    """pre-norm self-attention: fused norm+QKV, lane-dense attention,
    output projection fused with the residual add."""
    B, N, D = x.shape
    xf = x.reshape(B * N, D)
    qkv = fused_linear(xf, p["wqkv"], p["bqkv"], norm_w=p["norm_w"],
                       out_dtype=dtype, eps=eps)
    q, k, v = jnp.split(qkv.reshape(B, N, 3 * D), 3, axis=-1)
    o = attention(q, k, v, n_heads)
    out = fused_linear(o.reshape(B * N, D), p["wo"], p["bo"],
                       residual=xf, out_dtype=dtype)
    return out.reshape(B, N, D)


def cross_attn_block(x, kv_feats, ref_emb, p, n_heads, dtype, eps):
    """pre-norm cross-attention: q = (rmsnorm(x)+ref_emb) @ wq fused in one
    kernel; K/V projections fused into a single (Dk, 2D) matmul."""
    B, N, D = x.shape
    _, Nk, Dk = kv_feats.shape
    xf = x.reshape(B * N, D)
    q = fused_linear(xf, p["wq"], p["bq"], norm_w=p["norm_w"],
                     pre_add=ref_emb, out_dtype=dtype, eps=eps)
    kv = fused_linear(kv_feats.reshape(B * Nk, Dk), p["wkv"], p["bkv"],
                      out_dtype=dtype)
    k, v = jnp.split(kv.reshape(B, Nk, 2 * D), 2, axis=-1)
    o = attention(q.reshape(B, N, D), k, v, n_heads)
    out = fused_linear(o.reshape(B * N, D), p["wo"], p["bo"],
                       residual=xf, out_dtype=dtype)
    return out.reshape(B, N, D)


def mlp_block(x, p, dtype, eps):
    """pre-norm MLP: norm + w1 + GELU fused in one kernel; w2 fused with the
    residual add.  No HBM round-trip for the (M, 4D) hidden activation."""
    B, N, D = x.shape
    xf = x.reshape(B * N, D)
    h = fused_linear(xf, p["w1"], p["b1"], norm_w=p["norm_w"], gelu=True,
                     out_dtype=dtype, eps=eps)
    out = fused_linear(h, p["w2"], p["b2"], residual=xf, out_dtype=dtype)
    return out.reshape(B, N, D)


def dino_encoder(params, images, Ks, c2ws, patch, n_heads, dtype, eps):
    """DinoWrapper stand-in: patch embed + camera conditioning + one block."""
    B, V, C, H, W = images.shape
    hp, wp = H // patch, W // patch
    P = hp * wp
    # NCHW -> flat channel-last 16x16 patches
    x = images.reshape(B * V, C, hp, patch, wp, patch)
    x = x.transpose(0, 2, 4, 3, 5, 1).reshape(B * V * P, patch * patch * C).astype(dtype)
    tok = fused_linear(x, params["patch_w"], params["patch_b"], out_dtype=dtype)
    D_enc = tok.shape[-1]
    tok = tok.reshape(B, V, P, D_enc)
    # camera conditioning (drop_cls_token=True -> patch tokens only)
    cam = jnp.concatenate([Ks.reshape(B * V, 9), c2ws.reshape(B * V, 16)],
                          axis=-1).astype(dtype)
    cam_emb = fused_linear(cam, params["cam_w"], params["cam_b"], out_dtype=dtype)
    tok = (tok + cam_emb.reshape(B, V, 1, D_enc)).reshape(B, V * P, D_enc)
    # TODO(synk): pretrained frozen DINOv2 backbone replaced by one synthetic block.
    tok = self_attn_block(tok, params["attn"], n_heads, dtype, eps)
    tok = mlp_block(tok, params["mlp"], dtype, eps)
    feats = fused_linear(tok.reshape(-1, D_enc), params["out_w"], params["out_b"],
                         out_dtype=dtype)
    feats = feats.reshape(B, V * P, D_enc)
    spatial_shapes = jnp.array([[hp, wp]], dtype=jnp.int32)
    return feats, spatial_shapes


def geo_transformer(params, xyzs, image_feats, spatial_shapes, proj_matrix,
                    n_heads, dtype, eps):
    del spatial_shapes  # single-level simplification
    B, N, _ = xyzs.shape
    D = params["embed_w"].shape[1]
    x = fused_linear(xyzs.reshape(-1, 3).astype(dtype), params["embed_w"],
                     params["embed_b"], out_dtype=dtype).reshape(B, N, D)
    # reference points from the camera projection matrix (B, V, 3, 4)
    xyz_h = jnp.concatenate([xyzs, jnp.ones_like(xyzs[..., :1])], axis=-1)    # (B,N,4)
    ref = jnp.einsum("bvij,bnj->bvni", proj_matrix, xyz_h)                    # (B,V,N,3)
    z = jnp.clip(ref[..., 2:3], 1e-6, None)   # clamp points near/behind the camera
    uvz = jnp.concatenate([ref[..., :2] / z, ref[..., 2:3]], axis=-1)
    V = proj_matrix.shape[1]
    ref_feat = uvz.transpose(0, 2, 1, 3).reshape(B * N, V * 3).astype(dtype)
    ref_emb = fused_linear(ref_feat, params["ref_w"], params["ref_b"],
                           out_dtype=dtype)                                   # (B*N, D)
    for lp in params["layers"]:
        x = self_attn_block(x, lp["self_attn"], n_heads, dtype, eps)
        # TODO(synk): MSDeformableAttention3D (multi-level bilinear sampling at
        # projected reference points) has no clean Pallas equivalent; approximated
        # by cross-attention over image tokens with reference-point query embeddings.
        x = cross_attn_block(x, image_feats, ref_emb, lp["cross_attn"],
                             n_heads, dtype, eps)
        x = mlp_block(x, lp["mlp"], dtype, eps)
        # dropout: eval mode -> identity
    x = rmsnorm(x.reshape(-1, D), params["final_norm_w"], eps=eps).reshape(B, N, D)
    return x


def gaussian_renderer(params, xyzs, latents, render_c2ws, render_Ks, bg_color,
                      render_size, gs_per_token, offset_max, scale_max):
    del render_Ks
    B, N, D = latents.shape
    lat = latents.astype(jnp.float32).reshape(-1, D)   # renderer runs outside autocast
    raw = fused_linear(lat, params["head_w"], params["head_b"], out_dtype=jnp.float32)
    G = gs_per_token
    raw = raw.reshape(B, N, G, 14)  # 3 off + 3 scale + 4 rot + 1 opacity + 3 SH(deg0) rgb
    off = jnp.tanh(raw[..., 0:3]) * offset_max
    scl = jax.nn.sigmoid(raw[..., 3:6]) * scale_max
    rot = raw[..., 6:10]
    rot = rot / (jnp.linalg.norm(rot, axis=-1, keepdims=True) + 1e-8)
    opa = jax.nn.sigmoid(raw[..., 10:11])
    rgb = jax.nn.sigmoid(raw[..., 11:14])
    centers = xyzs[:, :, None, :] + off
    R = render_c2ws.shape[1]
    # TODO(synk): differentiable 3D Gaussian splatting rasterization has no Pallas
    # equivalent; return Gaussian parameters and bg-color-filled render buffers.
    images_rgb = jnp.broadcast_to(bg_color.reshape(1, 1, 3, 1, 1),
                                  (B, R, 3, render_size, render_size))
    return {
        "gaussians": {"xyz": centers, "scale": scl, "rotation": rot,
                      "opacity": opa, "rgb": rgb},
        "images_rgb": images_rgb,
    }


def geolrm_forward(params, cfg, xyzs, images, input_Ks, input_c2ws,
                   render_c2ws, render_Ks, bg_color, render_size):
    dtype = jnp.bfloat16 if cfg["use_bf16"] else jnp.float32   # torch autocast(bf16)
    eps = NORM_EPS
    image_feats, spatial_shapes = dino_encoder(
        params["encoder"], images, input_Ks, input_c2ws, cfg["patch"],
        cfg["n_heads"], dtype, eps)
    input_w2cs = jnp.linalg.inv(input_c2ws)
    proj_matrix = input_Ks @ input_w2cs[:, :, :3, :4]          # (B, V, 3, 4)
    latents = geo_transformer(params["transformer"], xyzs, image_feats,
                              spatial_shapes, proj_matrix, cfg["n_heads"], dtype, eps)
    out = gaussian_renderer(params["renderer"], xyzs, latents, render_c2ws,
                            render_Ks, bg_color, render_size, cfg["gs_per_token"],
                            cfg["offset_max"], cfg["scale_max"])
    return {"latents": latents, **out}


# ------------------------------ parameter init ------------------------------

def init_params(key, cfg):
    D_enc = cfg["encoder_feat_dim"]
    D = cfg["transformer_dim"]
    patch = cfg["patch"]
    V = cfg["views"]
    wdtype = jnp.bfloat16 if cfg["use_bf16"] else jnp.float32  # weights in compute dtype

    keys = [key]

    def w(shape, scale=0.02, dt=None):
        keys[0], sub = jax.random.split(keys[0])
        x = scale * jax.random.normal(sub, shape, jnp.float32)
        return x.astype(dt or wdtype)

    def b(n):
        return jnp.zeros((n,), jnp.float32)

    def ones(n):
        return jnp.ones((n,), jnp.float32)

    def self_attn_p(d):
        # wq|wk|wv pre-concatenated -> one fused (d, 3d) projection.
        return dict(norm_w=ones(d), wqkv=w((d, 3 * d)), bqkv=b(3 * d),
                    wo=w((d, d)), bo=b(d))

    def cross_attn_p(dq, dk, d):
        # wk|wv pre-concatenated -> one fused (dk, 2d) projection.
        return dict(norm_w=ones(dq), wq=w((dq, d)), bq=b(d),
                    wkv=w((dk, 2 * d)), bkv=b(2 * d),
                    wo=w((d, d)), bo=b(d))

    def mlp_p(d, h):
        return dict(norm_w=ones(d), w1=w((d, h)), b1=b(h), w2=w((h, d)), b2=b(d))

    enc = dict(patch_w=w((patch * patch * 3, D_enc)), patch_b=b(D_enc),
               cam_w=w((25, D_enc)), cam_b=b(D_enc),
               attn=self_attn_p(D_enc), mlp=mlp_p(D_enc, 4 * D_enc),
               out_w=w((D_enc, D_enc)), out_b=b(D_enc))

    layers = []
    for _ in range(cfg["n_layers"]):
        layers.append(dict(self_attn=self_attn_p(D),
                           cross_attn=cross_attn_p(D, D_enc, D),
                           mlp=mlp_p(D, 4 * D)))
    trans = dict(embed_w=w((3, D)), embed_b=b(D),
                 ref_w=w((V * 3, D)), ref_b=b(D),
                 layers=layers, final_norm_w=ones(D))

    rend = dict(head_w=w((D, cfg["gs_per_token"] * 14), dt=jnp.float32),
                head_b=b(cfg["gs_per_token"] * 14))

    return dict(encoder=enc, transformer=trans, renderer=rend)


# ----------------------------------- main -----------------------------------

if __name__ == "__main__":
    cfg = dict(use_bf16=True, encoder_feat_dim=64, transformer_dim=64,
               n_layers=2, n_heads=4, gs_per_token=4,
               offset_max=0.05, scale_max=0.02, patch=16, views=2)

    B, V, C, H, W = 2, 2, 3, 32, 32
    N = 8            # occupied-voxel query tokens
    R = 2            # render views
    render_size = 16

    key = jax.random.PRNGKey(0)
    k_par, k_xyz, k_img, k_t1, k_t2 = jax.random.split(key, 5)
    params = init_params(k_par, cfg)

    xyzs = jax.random.uniform(k_xyz, (B, N, 3), jnp.float32, -1.0, 1.0)
    images = jax.random.uniform(k_img, (B, V, C, H, W), jnp.float32)

    K_base = jnp.array([[16.0, 0.0, 16.0], [0.0, 16.0, 16.0], [0.0, 0.0, 1.0]],
                       jnp.float32)
    input_Ks = jnp.tile(K_base, (B, V, 1, 1))
    render_Ks = jnp.tile(K_base, (B, R, 1, 1))

    def make_c2w(k, b_, v_):
        t = 0.1 * jax.random.normal(k, (b_, v_, 3), jnp.float32)
        eye = jnp.tile(jnp.eye(4, dtype=jnp.float32), (b_, v_, 1, 1))
        return eye.at[:, :, :3, 3].set(t)

    input_c2ws = make_c2w(k_t1, B, V)
    render_c2ws = make_c2w(k_t2, B, R)
    bg_color = jnp.ones((3,), jnp.float32)

    def fwd_fn(p, xyz, img, iK, ic2w, rc2w, rK, bg):
        return geolrm_forward(p, cfg, xyz, img, iK, ic2w, rc2w, rK, bg, render_size)

    fwd = jax.jit(fwd_fn)
    out = fwd(params, xyzs, images, input_Ks, input_c2ws, render_c2ws,
              render_Ks, bg_color)
    jax.block_until_ready(out)

    assert out["latents"].shape == (B, N, cfg["transformer_dim"])
    assert out["gaussians"]["xyz"].shape == (B, N, cfg["gs_per_token"], 3)
    assert out["images_rgb"].shape == (B, R, 3, render_size, render_size)
    print("KERNEL_OK")
</pallas_src>

<mosaic_0001>
module attributes {stable_mosaic.version = 11 : i64} {
  func.func @_fused_linear_kernel(%arg0: i32, %arg1: memref<16x3xbf16, #tpu.memory_space<vmem>>, %arg2: memref<3x64xbf16, #tpu.memory_space<vmem>>, %arg3: memref<1x64xf32, #tpu.memory_space<vmem>>, %arg4: memref<16x64xbf16, #tpu.memory_space<vmem>>) attributes {dimension_semantics = [#tpu.dimension_semantics<parallel>], iteration_bounds = array<i64: 1>, scalar_prefetch = 0 : i64, scratch_operands = 0 : i64, tpu.core_type = #tpu.core_type<tc>, window_params = [{transform_indices = @transform_0, window_bounds = array<i64: 16, 3>}, {pipeline_mode = #tpu.pipeline_mode<synchronous>, transform_indices = @transform_1, window_bounds = array<i64: 3, 64>}, {pipeline_mode = #tpu.pipeline_mode<synchronous>, transform_indices = @transform_2, window_bounds = array<i64: 1, 64>}, {transform_indices = @transform_3, window_bounds = array<i64: 16, 64>}]} {
    %c0 = arith.constant 0 : index
    %c0_0 = arith.constant 0 : index
    %0 = vector.load %arg1[%c0, %c0_0] : memref<16x3xbf16, #tpu.memory_space<vmem>>, vector<16x3xbf16>
    %c0_1 = arith.constant 0 : index
    %c0_2 = arith.constant 0 : index
    %1 = vector.load %arg2[%c0_1, %c0_2] : memref<3x64xbf16, #tpu.memory_space<vmem>>, vector<3x64xbf16>
    %cst = arith.constant dense<0.000000e+00> : vector<16x64xf32>
    %2 = tpu.matmul %0, %1, %cst {dimension_numbers = #tpu.dot_dimension_numbers<[1], [0], [0], [1], [0, 0, 1, 1], [], []>} : vector<16x3xbf16>, vector<3x64xbf16>, vector<16x64xf32> -> vector<16x64xf32>
    %c0_3 = arith.constant 0 : index
    %c0_4 = arith.constant 0 : index
    %3 = vector.load %arg3[%c0_3, %c0_4] : memref<1x64xf32, #tpu.memory_space<vmem>>, vector<1x64xf32>
    %4 = vector.broadcast %3 : vector<1x64xf32> to vector<16x64xf32>
    %5 = arith.addf %2, %4 : vector<16x64xf32>
    %6 = arith.truncf %5 : vector<16x64xf32> to vector<16x64xbf16>
    %c0_5 = arith.constant 0 : index
    %c0_6 = arith.constant 0 : index
    %7 = vector.load %arg4[%c0_5, %c0_6] : memref<16x64xbf16, #tpu.memory_space<vmem>>, vector<16x64xbf16>
    tpu.vector_store %arg4[%c0_5, %c0_6], %6 {strides = array<i32>} : memref<16x64xbf16, #tpu.memory_space<vmem>>, vector<16x64xbf16>,
    return
  }
  func.func @transform_0(%arg0: i32) -> (i32, i32) {
    %c0_i32 = arith.constant 0 : i32
    %c0_i32_0 = arith.constant 0 : i32
    return %arg0, %c0_i32 : i32, i32
  }
  func.func @transform_1(%arg0: i32) -> (i32, i32) {
    %c0_i32 = arith.constant 0 : i32
    %c0_i32_0 = arith.constant 0 : i32
    %c0_i32_1 = arith.constant 0 : i32
    return %c0_i32, %c0_i32_0 : i32, i32
  }
  func.func @transform_2(%arg0: i32) -> (i32, i32) {
    %c0_i32 = arith.constant 0 : i32
    %c0_i32_0 = arith.constant 0 : i32
    %c0_i32_1 = arith.constant 0 : i32
    return %c0_i32, %c0_i32_0 : i32, i32
  }
  func.func @transform_3(%arg0: i32) -> (i32, i32) {
    %c0_i32 = arith.constant 0 : i32
    %c0_i32_0 = arith.constant 0 : i32
    return %arg0, %c0_i32 : i32, i32
  }
}

module attributes {stable_mosaic.version = 11 : i64} {
  func.func @_fused_linear_kernel(%arg0: i32, %arg1: memref<16x6xbf16, #tpu.memory_space<vmem>>, %arg2: memref<6x64xbf16, #tpu.memory_space<vmem>>, %arg3: memref<1x64xf32, #tpu.memory_space<vmem>>, %arg4: memref<16x64xbf16, #tpu.memory_space<vmem>>) attributes {dimension_semantics = [#tpu.dimension_semantics<parallel>], iteration_bounds = array<i64: 1>, scalar_prefetch = 0 : i64, scratch_operands = 0 : i64, tpu.core_type = #tpu.core_type<tc>, window_params = [{transform_indices = @transform_0, window_bounds = array<i64: 16, 6>}, {pipeline_mode = #tpu.pipeline_mode<synchronous>, transform_indices = @transform_1, window_bounds = array<i64: 6, 64>}, {pipeline_mode = #tpu.pipeline_mode<synchronous>, transform_indices = @transform_2, window_bounds = array<i64: 1, 64>}, {transform_indices = @transform_3, window_bounds = array<i64: 16, 64>}]} {
    %c0 = arith.constant 0 : index
    %c0_0 = arith.constant 0 : index
    %0 = vector.load %arg1[%c0, %c0_0] : memref<16x6xbf16, #tpu.memory_space<vmem>>, vector<16x6xbf16>
    %c0_1 = arith.constant 0 : index
    %c0_2 = arith.constant 0 : index
    %1 = vector.load %arg2[%c0_1, %c0_2] : memref<6x64xbf16, #tpu.memory_space<vmem>>, vector<6x64xbf16>
    %cst = arith.constant dense<0.000000e+00> : vector<16x64xf32>
    %2 = tpu.matmul %0, %1, %cst {dimension_numbers = #tpu.dot_dimension_numbers<[1], [0], [0], [1], [0, 0, 1, 1], [], []>} : vector<16x6xbf16>, vector<6x64xbf16>, vector<16x64xf32> -> vector<16x64xf32>
    %c0_3 = arith.constant 0 : index
    %c0_4 = arith.constant 0 : index
    %3 = vector.load %arg3[%c0_3, %c0_4] : memref<1x64xf32, #tpu.memory_space<vmem>>, vector<1x64xf32>
    %4 = vector.broadcast %3 : vector<1x64xf32> to vector<16x64xf32>
    %5 = arith.addf %2, %4 : vector<16x64xf32>
    %6 = arith.truncf %5 : vector<16x64xf32> to vector<16x64xbf16>
    %c0_5 = arith.constant 0 : index
    %c0_6 = arith.constant 0 : index
    %7 = vector.load %arg4[%c0_5, %c0_6] : memref<16x64xbf16, #tpu.memory_space<vmem>>, vector<16x64xbf16>
    tpu.vector_store %arg4[%c0_5, %c0_6], %6 {strides = array<i32>} : memref<16x64xbf16, #tpu.memory_space<vmem>>, vector<16x64xbf16>,
    return
  }
  func.func @transform_0(%arg0: i32) -> (i32, i32) {
    %c0_i32 = arith.constant 0 : i32
    %c0_i32_0 = arith.constant 0 : i32
    return %arg0, %c0_i32 : i32, i32
  }
  func.func @transform_1(%arg0: i32) -> (i32, i32) {
    %c0_i32 = arith.constant 0 : i32
    %c0_i32_0 = arith.constant 0 : i32
    %c0_i32_1 = arith.constant 0 : i32
    return %c0_i32, %c0_i32_0 : i32, i32
  }
  func.func @transform_2(%arg0: i32) -> (i32, i32) {
    %c0_i32 = arith.constant 0 : i32
    %c0_i32_0 = arith.constant 0 : i32
    %c0_i32_1 = arith.constant 0 : i32
    return %c0_i32, %c0_i32_0 : i32, i32
  }
  func.func @transform_3(%arg0: i32) -> (i32, i32) {
    %c0_i32 = arith.constant 0 : i32
    %c0_i32_0 = arith.constant 0 : i32
    return %arg0, %c0_i32 : i32, i32
  }
}

module attributes {stable_mosaic.version = 11 : i64} {
  func.func @_fused_linear_kernel(%arg0: i32, %arg1: memref<16x64xbf16, #tpu.memory_space<vmem>>, %arg2: memref<1x64xf32, #tpu.memory_space<vmem>>, %arg3: memref<64x192xbf16, #tpu.memory_space<vmem>>, %arg4: memref<1x192xf32, #tpu.memory_space<vmem>>, %arg5: memref<16x192xbf16, #tpu.memory_space<vmem>>) attributes {dimension_semantics = [#tpu.dimension_semantics<parallel>], iteration_bounds = array<i64: 1>, scalar_prefetch = 0 : i64, scratch_operands = 0 : i64, tpu.core_type = #tpu.core_type<tc>, window_params = [{transform_indices = @transform_0, window_bounds = array<i64: 16, 64>}, {pipeline_mode = #tpu.pipeline_mode<synchronous>, transform_indices = @transform_1, window_bounds = array<i64: 1, 64>}, {pipeline_mode = #tpu.pipeline_mode<synchronous>, transform_indices = @transform_2, window_bounds = array<i64: 64, 192>}, {pipeline_mode = #tpu.pipeline_mode<synchronous>, transform_indices = @transform_3, window_bounds = array<i64: 1, 192>}, {transform_indices = @transform_4, window_bounds = array<i64: 16, 192>}]} {
    %c0 = arith.constant 0 : index
    %c0_0 = arith.constant 0 : index
    %0 = vector.load %arg1[%c0, %c0_0] : memref<16x64xbf16, #tpu.memory_space<vmem>>, vector<16x64xbf16>
    %1 = arith.extf %0 : vector<16x64xbf16> to vector<16x64xf32>
    %2 = arith.mulf %1, %1 : vector<16x64xf32>
    %cst = arith.constant dense<0.000000e+00> : vector<16xf32>
    %3 = vector.multi_reduction <add>, %2, %cst [1] : vector<16x64xf32> to vector<16xf32>
    %4 = vector.shape_cast %3 : vector<16xf32> to vector<16x1xf32>
    %cst_1 = arith.constant 6.400000e+01 : f32
    %5 = vector.broadcast %cst_1 : f32 to vector<16x1xf32>
    %6 = arith.divf %4, %5 : vector<16x1xf32>
    %cst_2 = arith.constant 9.99999974E-6 : f32
    %7 = vector.broadcast %cst_2 : f32 to vector<16x1xf32>
    %8 = arith.addf %6, %7 : vector<16x1xf32>
    %9 = math.rsqrt %8 : vector<16x1xf32>
    %10 = vector.broadcast %9 : vector<16x1xf32> to vector<16x64xf32>
    %11 = arith.mulf %1, %10 : vector<16x64xf32>
    %c0_3 = arith.constant 0 : index
    %c0_4 = arith.constant 0 : index
    %12 = vector.load %arg2[%c0_3, %c0_4] : memref<1x64xf32, #tpu.memory_space<vmem>>, vector<1x64xf32>
    %13 = vector.broadcast %12 : vector<1x64xf32> to vector<16x64xf32>
    %14 = arith.mulf %11, %13 : vector<16x64xf32>
    %15 = arith.truncf %14 : vector<16x64xf32> to vector<16x64xbf16>
    %c0_5 = arith.constant 0 : index
    %c0_6 = arith.constant 0 : index
    %16 = vector.load %arg3[%c0_5, %c0_6] : memref<64x192xbf16, #tpu.memory_space<vmem>>, vector<64x192xbf16>
    %cst_7 = arith.constant dense<0.000000e+00> : vector<16x192xf32>
    %17 = tpu.matmul %15, %16, %cst_7 {dimension_numbers = #tpu.dot_dimension_numbers<[1], [0], [0], [1], [0, 0, 1, 1], [], []>} : vector<16x64xbf16>, vector<64x192xbf16>, vector<16x192xf32> -> vector<16x192xf32>
    %c0_8 = arith.constant 0 : index
    %c0_9 = arith.constant 0 : index
    %18 = vector.load %arg4[%c0_8, %c0_9] : memref<1x192xf32, #tpu.memory_space<vmem>>, vector<1x192xf32>
    %19 = vector.broadcast %18 : vector<1x192xf32> to vector<16x192xf32>
    %20 = arith.addf %17, %19 : vector<16x192xf32>
    %21 = arith.truncf %20 : vector<16x192xf32> to vector<16x192xbf16>
    %c0_10 = arith.constant 0 : index
    %c0_11 = arith.constant 0 : index
    %22 = vector.load %arg5[%c0_10, %c0_11] : memref<16x192xbf16, #tpu.memory_space<vmem>>, vector<16x192xbf16>
    tpu.vector_store %arg5[%c0_10, %c0_11], %21 {strides = array<i32>} : memref<16x192xbf16, #tpu.memory_space<vmem>>, vector<16x192xbf16>,
    return
  }
  func.func @transform_0(%arg0: i32) -> (i32, i32) {
    %c0_i32 = arith.constant 0 : i32
    %c0_i32_0 = arith.constant 0 : i32
    return %arg0, %c0_i32 : i32, i32
  }
  func.func @transform_1(%arg0: i32) -> (i32, i32) {
    %c0_i32 = arith.constant 0 : i32
    %c0_i32_0 = arith.constant 0 : i32
    %c0_i32_1 = arith.constant 0 : i32
    return %c0_i32, %c0_i32_0 : i32, i32
  }
  func.func @transform_2(%arg0: i32) -> (i32, i32) {
    %c0_i32 = arith.constant 0 : i32
    %c0_i32_0 = arith.constant 0 : i32
    %c0_i32_1 = arith.constant 0 : i32
    return %c0_i32, %c0_i32_0 : i32, i32
  }
  func.func @transform_3(%arg0: i32) -> (i32, i32) {
    %c0_i32 = arith.constant 0 : i32
    %c0_i32_0 = arith.constant 0 : i32
    %c0_i32_1 = arith.constant 0 : i32
    return %c0_i32, %c0_i32_0 : i32, i32
  }
  func.func @transform_4(%arg0: i32) -> (i32, i32) {
    %c0_i32 = arith.constant 0 : i32
    %c0_i32_0 = arith.constant 0 : i32
    return %arg0, %c0_i32 : i32, i32
  }
}

module attributes {stable_mosaic.version = 11 : i64} {
  func.func @_attn_kernel(%arg0: i32, %arg1: memref<1x8x64xbf16, #tpu.memory_space<vmem>>, %arg2: memref<1x8x64xbf16, #tpu.memory_space<vmem>>, %arg3: memref<1x8x64xbf16, #tpu.memory_space<vmem>>, %arg4: memref<1x8x64xbf16, #tpu.memory_space<vmem>>) attributes {dimension_semantics = [#tpu.dimension_semantics<parallel>], iteration_bounds = array<i64: 2>, scalar_prefetch = 0 : i64, scratch_operands = 0 : i64, tpu.core_type = #tpu.core_type<tc>, window_params = [{transform_indices = @transform_0, window_bounds = array<i64: 1, 8, 64>}, {transform_indices = @transform_1, window_bounds = array<i64: 1, 8, 64>}, {transform_indices = @transform_2, window_bounds = array<i64: 1, 8, 64>}, {transform_indices = @transform_3, window_bounds = array<i64: 1, 8, 64>}]} {
    %c0 = arith.constant 0 : index
    %c0_0 = arith.constant 0 : index
    %c0_1 = arith.constant 0 : index
    %0 = vector.load %arg1[%c0, %c0_0, %c0_1] : memref<1x8x64xbf16, #tpu.memory_space<vmem>>, vector<1x8x64xbf16>
    %1 = vector.shape_cast %0 : vector<1x8x64xbf16> to vector<8x64xbf16>
    %c0_2 = arith.constant 0 : index
    %c0_3 = arith.constant 0 : index
    %c0_4 = arith.constant 0 : index
    %2 = vector.load %arg2[%c0_2, %c0_3, %c0_4] : memref<1x8x64xbf16, #tpu.memory_space<vmem>>, vector<1x8x64xbf16>
    %3 = vector.shape_cast %2 : vector<1x8x64xbf16> to vector<8x64xbf16>
    %c0_5 = arith.constant 0 : index
    %c0_6 = arith.constant 0 : index
    %c0_7 = arith.constant 0 : index
    %4 = vector.load %arg3[%c0_5, %c0_6, %c0_7] : memref<1x8x64xbf16, #tpu.memory_space<vmem>>, vector<1x8x64xbf16>
    %5 = vector.shape_cast %4 : vector<1x8x64xbf16> to vector<8x64xbf16>
    %6 = arith.extf %1 : vector<8x64xbf16> to vector<8x64xf32>
    %cst = arith.constant 2.500000e-01 : f32
    %7 = vector.broadcast %cst : f32 to vector<8x64xf32>
    %8 = arith.mulf %6, %7 : vector<8x64xf32>
    %9 = arith.truncf %8 : vector<8x64xf32> to vector<8x64xbf16>
    %10 = vector.extract_strided_slice %9 {offsets = [0, 0], sizes = [8, 16], strides = [1, 1]} : vector<8x64xbf16> to vector<8x16xbf16>
    %11 = vector.extract_strided_slice %3 {offsets = [0, 0], sizes = [8, 16], strides = [1, 1]} : vector<8x64xbf16> to vector<8x16xbf16>
    %12 = vector.extract_strided_slice %5 {offsets = [0, 0], sizes = [8, 16], strides = [1, 1]} : vector<8x64xbf16> to vector<8x16xbf16>
    %cst_8 = arith.constant dense<0.000000e+00> : vector<8x8xf32>
    %13 = tpu.matmul %10, %11, %cst_8 {dimension_numbers = #tpu.dot_dimension_numbers<[1], [1], [0], [0], [0, 0, 1, 0], [], []>} : vector<8x16xbf16>, vector<8x16xbf16>, vector<8x8xf32> -> vector<8x8xf32>
    %cst_9 = arith.constant dense<0xFF800000> : vector<8xf32>
    %14 = vector.multi_reduction <maximumf>, %13, %cst_9 [1] : vector<8x8xf32> to vector<8xf32>
    %15 = vector.shape_cast %14 : vector<8xf32> to vector<8x1xf32>
    %16 = vector.broadcast %15 : vector<8x1xf32> to vector<8x8xf32>
    %17 = arith.subf %13, %16 : vector<8x8xf32>
    %18 = math.exp %17 : vector<8x8xf32>
    %cst_10 = arith.constant dense<0.000000e+00> : vector<8xf32>
    %19 = vector.multi_reduction <add>, %18, %cst_10 [1] : vector<8x8xf32> to vector<8xf32>
    %20 = vector.shape_cast %19 : vector<8xf32> to vector<8x1xf32>
    %21 = tpu.reciprocal %20 {approx = true} : vector<8x1xf32> -> vector<8x1xf32>
    %22 = vector.broadcast %21 : vector<8x1xf32> to vector<8x8xf32>
    %23 = arith.mulf %18, %22 : vector<8x8xf32>
    %24 = arith.truncf %23 : vector<8x8xf32> to vector<8x8xbf16>
    %cst_11 = arith.constant dense<0.000000e+00> : vector<8x16xf32>
    %25 = tpu.matmul %24, %12, %cst_11 {dimension_numbers = #tpu.dot_dimension_numbers<[1], [0], [0], [1], [0, 0, 1, 1], [], []>} : vector<8x8xbf16>, vector<8x16xbf16>, vector<8x16xf32> -> vector<8x16xf32>
    %26 = vector.extract_strided_slice %9 {offsets = [0, 16], sizes = [8, 16], strides = [1, 1]} : vector<8x64xbf16> to vector<8x16xbf16>
    %27 = vector.extract_strided_slice %3 {offsets = [0, 16], sizes = [8, 16], strides = [1, 1]} : vector<8x64xbf16> to vector<8x16xbf16>
    %28 = vector.extract_strided_slice %5 {offsets = [0, 16], sizes = [8, 16], strides = [1, 1]} : vector<8x64xbf16> to vector<8x16xbf16>
    %cst_12 = arith.constant dense<0.000000e+00> : vector<8x8xf32>
    %29 = tpu.matmul %26, %27, %cst_12 {dimension_numbers = #tpu.dot_dimension_numbers<[1], [1], [0], [0], [0, 0, 1, 0], [], []>} : vector<8x16xbf16>, vector<8x16xbf16>, vector<8x8xf32> -> vector<8x8xf32>
    %cst_13 = arith.constant dense<0xFF800000> : vector<8xf32>
    %30 = vector.multi_reduction <maximumf>, %29, %cst_13 [1] : vector<8x8xf32> to vector<8xf32>
    %31 = vector.shape_cast %30 : vector<8xf32> to vector<8x1xf32>
    %32 = vector.broadcast %31 : vector<8x1xf32> to vector<8x8xf32>
    %33 = arith.subf %29, %32 : vector<8x8xf32>
    %34 = math.exp %33 : vector<8x8xf32>
    %cst_14 = arith.constant dense<0.000000e+00> : vector<8xf32>
    %35 = vector.multi_reduction <add>, %34, %cst_14 [1] : vector<8x8xf32> to vector<8xf32>
    %36 = vector.shape_cast %35 : vector<8xf32> to vector<8x1xf32>
    %37 = tpu.reciprocal %36 {approx = true} : vector<8x1xf32> -> vector<8x1xf32>
    %38 = vector.broadcast %37 : vector<8x1xf32> to vector<8x8xf32>
    %39 = arith.mulf %34, %38 : vector<8x8xf32>
    %40 = arith.truncf %39 : vector<8x8xf32> to vector<8x8xbf16>
    %cst_15 = arith.constant dense<0.000000e+00> : vector<8x16xf32>
    %41 = tpu.matmul %40, %28, %cst_15 {dimension_numbers = #tpu.dot_dimension_numbers<[1], [0], [0], [1], [0, 0, 1, 1], [], []>} : vector<8x8xbf16>, vector<8x16xbf16>, vector<8x16xf32> -> vector<8x16xf32>
    %42 = vector.extract_strided_slice %9 {offsets = [0, 32], sizes = [8, 16], strides = [1, 1]} : vector<8x64xbf16> to vector<8x16xbf16>
    %43 = vector.extract_strided_slice %3 {offsets = [0, 32], sizes = [8, 16], strides = [1, 1]} : vector<8x64xbf16> to vector<8x16xbf16>
    %44 = vector.extract_strided_slice %5 {offsets = [0, 32], sizes = [8, 16], strides = [1, 1]} : vector<8x64xbf16> to vector<8x16xbf16>
    %cst_16 = arith.constant dense<0.000000e+00> : vector<8x8xf32>
    %45 = tpu.matmul %42, %43, %cst_16 {dimension_numbers = #tpu.dot_dimension_numbers<[1], [1], [0], [0], [0, 0, 1, 0], [], []>} : vector<8x16xbf16>, vector<8x16xbf16>, vector<8x8xf32> -> vector<8x8xf32>
    %cst_17 = arith.constant dense<0xFF800000> : vector<8xf32>
    %46 = vector.multi_reduction <maximumf>, %45, %cst_17 [1] : vector<8x8xf32> to vector<8xf32>
    %47 = vector.shape_cast %46 : vector<8xf32> to vector<8x1xf32>
    %48 = vector.broadcast %47 : vector<8x1xf32> to vector<8x8xf32>
    %49 = arith.subf %45, %48 : vector<8x8xf32>
    %50 = math.exp %49 : vector<8x8xf32>
    %cst_18 = arith.constant dense<0.000000e+00> : vector<8xf32>
    %51 = vector.multi_reduction <add>, %50, %cst_18 [1] : vector<8x8xf32> to vector<8xf32>
    %52 = vector.shape_cast %51 : vector<8xf32> to vector<8x1xf32>
    %53 = tpu.reciprocal %52 {approx = true} : vector<8x1xf32> -> vector<8x1xf32>
    %54 = vector.broadcast %53 : vector<8x1xf32> to vector<8x8xf32>
    %55 = arith.mulf %50, %54 : vector<8x8xf32>
    %56 = arith.truncf %55 : vector<8x8xf32> to vector<8x8xbf16>
    %cst_19 = arith.constant dense<0.000000e+00> : vector<8x16xf32>
    %57 = tpu.matmul %56, %44, %cst_19 {dimension_numbers = #tpu.dot_dimension_numbers<[1], [0], [0], [1], [0, 0, 1, 1], [], []>} : vector<8x8xbf16>, vector<8x16xbf16>, vector<8x16xf32> -> vector<8x16xf32>
    %58 = vector.extract_strided_slice %9 {offsets = [0, 48], sizes = [8, 16], strides = [1, 1]} : vector<8x64xbf16> to vector<8x16xbf16>
    %59 = vector.extract_strided_slice %3 {offsets = [0, 48], sizes = [8, 16], strides = [1, 1]} : vector<8x64xbf16> to vector<8x16xbf16>
    %60 = vector.extract_strided_slice %5 {offsets = [0, 48], sizes = [8, 16], strides = [1, 1]} : vector<8x64xbf16> to vector<8x16xbf16>
    %cst_20 = arith.constant dense<0.000000e+00> : vector<8x8xf32>
    %61 = tpu.matmul %58, %59, %cst_20 {dimension_numbers = #tpu.dot_dimension_numbers<[1], [1], [0], [0], [0, 0, 1, 0], [], []>} : vector<8x16xbf16>, vector<8x16xbf16>, vector<8x8xf32> -> vector<8x8xf32>
    %cst_21 = arith.constant dense<0xFF800000> : vector<8xf32>
    %62 = vector.multi_reduction <maximumf>, %61, %cst_21 [1] : vector<8x8xf32> to vector<8xf32>
    %63 = vector.shape_cast %62 : vector<8xf32> to vector<8x1xf32>
    %64 = vector.broadcast %63 : vector<8x1xf32> to vector<8x8xf32>
    %65 = arith.subf %61, %64 : vector<8x8xf32>
    %66 = math.exp %65 : vector<8x8xf32>
    %cst_22 = arith.constant dense<0.000000e+00> : vector<8xf32>
    %67 = vector.multi_reduction <add>, %66, %cst_22 [1] : vector<8x8xf32> to vector<8xf32>
    %68 = vector.shape_cast %67 : vector<8xf32> to vector<8x1xf32>
    %69 = tpu.reciprocal %68 {approx = true} : vector<8x1xf32> -> vector<8x1xf32>
    %70 = vector.broadcast %69 : vector<8x1xf32> to vector<8x8xf32>
    %71 = arith.mulf %66, %70 : vector<8x8xf32>
    %72 = arith.truncf %71 : vector<8x8xf32> to vector<8x8xbf16>
    %cst_23 = arith.constant dense<0.000000e+00> : vector<8x16xf32>
    %73 = tpu.matmul %72, %60, %cst_23 {dimension_numbers = #tpu.dot_dimension_numbers<[1], [0], [0], [1], [0, 0, 1, 1], [], []>} : vector<8x8xbf16>, vector<8x16xbf16>, vector<8x16xf32> -> vector<8x16xf32>
    %74 = tpu.concatenate %25, %41, %57, %73 in 1 : vector<8x16xf32>, vector<8x16xf32>, vector<8x16xf32>, vector<8x16xf32> -> vector<8x64xf32>
    %75 = arith.truncf %74 : vector<8x64xf32> to vector<8x64xbf16>
    %c0_24 = arith.constant 0 : index
    %c0_25 = arith.constant 0 : index
    %c0_26 = arith.constant 0 : index
    %76 = vector.load %arg4[%c0_24, %c0_25, %c0_26] : memref<1x8x64xbf16, #tpu.memory_space<vmem>>, vector<1x8x64xbf16>
    %77 = vector.shape_cast %76 : vector<1x8x64xbf16> to vector<8x64xbf16>
    %78 = vector.shape_cast %75 : vector<8x64xbf16> to vector<1x8x64xbf16>
    tpu.vector_store %arg4[%c0_24, %c0_25, %c0_26], %78 {strides = array<i32>} : memref<1x8x64xbf16, #tpu.memory_space<vmem>>, vector<1x8x64xbf16>,
    return
  }
  func.func @transform_0(%arg0: i32) -> (i32, i32, i32) {
    %c0_i32 = arith.constant 0 : i32
    %c0_i32_0 = arith.constant 0 : i32
    %c0_i32_1 = arith.constant 0 : i32
    return %arg0, %c0_i32, %c0_i32_0 : i32, i32, i32
  }
  func.func @transform_1(%arg0: i32) -> (i32, i32, i32) {
    %c0_i32 = arith.constant 0 : i32
    %c0_i32_0 = arith.constant 0 : i32
    %c0_i32_1 = arith.constant 0 : i32
    return %arg0, %c0_i32, %c0_i32_0 : i32, i32, i32
  }
  func.func @transform_2(%arg0: i32) -> (i32, i32, i32) {
    %c0_i32 = arith.constant 0 : i32
    %c0_i32_0 = arith.constant 0 : i32
    %c0_i32_1 = arith.constant 0 : i32
    return %arg0, %c0_i32, %c0_i32_0 : i32, i32, i32
  }
  func.func @transform_3(%arg0: i32) -> (i32, i32, i32) {
    %c0_i32 = arith.constant 0 : i32
    %c0_i32_0 = arith.constant 0 : i32
    %c0_i32_1 = arith.constant 0 : i32
    return %arg0, %c0_i32, %c0_i32_0 : i32, i32, i32
  }
}

module attributes {stable_mosaic.version = 11 : i64} {
  func.func @_fused_linear_kernel(%arg0: i32, %arg1: memref<16x64xbf16, #tpu.memory_space<vmem>>, %arg2: memref<64x64xbf16, #tpu.memory_space<vmem>>, %arg3: memref<1x64xf32, #tpu.memory_space<vmem>>, %arg4: memref<16x64xbf16, #tpu.memory_space<vmem>>, %arg5: memref<16x64xbf16, #tpu.memory_space<vmem>>) attributes {dimension_semantics = [#tpu.dimension_semantics<parallel>], iteration_bounds = array<i64: 1>, scalar_prefetch = 0 : i64, scratch_operands = 0 : i64, tpu.core_type = #tpu.core_type<tc>, window_params = [{transform_indices = @transform_0, window_bounds = array<i64: 16, 64>}, {pipeline_mode = #tpu.pipeline_mode<synchronous>, transform_indices = @transform_1, window_bounds = array<i64: 64, 64>}, {pipeline_mode = #tpu.pipeline_mode<synchronous>, transform_indices = @transform_2, window_bounds = array<i64: 1, 64>}, {transform_indices = @transform_3, window_bounds = array<i64: 16, 64>}, {transform_indices = @transform_4, window_bounds = array<i64: 16, 64>}]} {
    %c0 = arith.constant 0 : index
    %c0_0 = arith.constant 0 : index
    %0 = vector.load %arg1[%c0, %c0_0] : memref<16x64xbf16, #tpu.memory_space<vmem>>, vector<16x64xbf16>
    %c0_1 = arith.constant 0 : index
    %c0_2 = arith.constant 0 : index
    %1 = vector.load %arg2[%c0_1, %c0_2] : memref<64x64xbf16, #tpu.memory_space<vmem>>, vector<64x64xbf16>
    %cst = arith.constant dense<0.000000e+00> : vector<16x64xf32>
    %2 = tpu.matmul %0, %1, %cst {dimension_numbers = #tpu.dot_dimension_numbers<[1], [0], [0], [1], [0, 0, 1, 1], [], []>} : vector<16x64xbf16>, vector<64x64xbf16>, vector<16x64xf32> -> vector<16x64xf32>
    %c0_3 = arith.constant 0 : index
    %c0_4 = arith.constant 0 : index
    %3 = vector.load %arg3[%c0_3, %c0_4] : memref<1x64xf32, #tpu.memory_space<vmem>>, vector<1x64xf32>
    %4 = vector.broadcast %3 : vector<1x64xf32> to vector<16x64xf32>
    %5 = arith.addf %2, %4 : vector<16x64xf32>
    %c0_5 = arith.constant 0 : index
    %c0_6 = arith.constant 0 : index
    %6 = vector.load %arg4[%c0_5, %c0_6] : memref<16x64xbf16, #tpu.memory_space<vmem>>, vector<16x64xbf16>
    %7 = arith.extf %6 : vector<16x64xbf16> to vector<16x64xf32>
    %8 = arith.addf %5, %7 : vector<16x64xf32>
    %9 = arith.truncf %8 : vector<16x64xf32> to vector<16x64xbf16>
    %c0_7 = arith.constant 0 : index
    %c0_8 = arith.constant 0 : index
    %10 = vector.load %arg5[%c0_7, %c0_8] : memref<16x64xbf16, #tpu.memory_space<vmem>>, vector<16x64xbf16>
    tpu.vector_store %arg5[%c0_7, %c0_8], %9 {strides = array<i32>} : memref<16x64xbf16, #tpu.memory_space<vmem>>, vector<16x64xbf16>,
    return
  }
  func.func @transform_0(%arg0: i32) -> (i32, i32) {
    %c0_i32 = arith.constant 0 : i32
    %c0_i32_0 = arith.constant 0 : i32
    return %arg0, %c0_i32 : i32, i32
  }
  func.func @transform_1(%arg0: i32) -> (i32, i32) {
    %c0_i32 = arith.constant 0 : i32
    %c0_i32_0 = arith.constant 0 : i32
    %c0_i32_1 = arith.constant 0 : i32
    return %c0_i32, %c0_i32_0 : i32, i32
  }
  func.func @transform_2(%arg0: i32) -> (i32, i32) {
    %c0_i32 = arith.constant 0 : i32
    %c0_i32_0 = arith.constant 0 : i32
    %c0_i32_1 = arith.constant 0 : i32
    return %c0_i32, %c0_i32_0 : i32, i32
  }
  func.func @transform_3(%arg0: i32) -> (i32, i32) {
    %c0_i32 = arith.constant 0 : i32
    %c0_i32_0 = arith.constant 0 : i32
    return %arg0, %c0_i32 : i32, i32
  }
  func.func @transform_4(%arg0: i32) -> (i32, i32) {
    %c0_i32 = arith.constant 0 : i32
    %c0_i32_0 = arith.constant 0 : i32
    return %arg0, %c0_i32 : i32, i32
  }
}

module attributes {stable_mosaic.version = 11 : i64} {
  func.func @_fused_linear_kernel(%arg0: i32, %arg1: memref<16x64xbf16, #tpu.memory_space<vmem>>, %arg2: memref<1x64xf32, #tpu.memory_space<vmem>>, %arg3: memref<16x64xbf16, #tpu.memory_space<vmem>>, %arg4: memref<64x64xbf16, #tpu.memory_space<vmem>>, %arg5: memref<1x64xf32, #tpu.memory_space<vmem>>, %arg6: memref<16x64xbf16, #tpu.memory_space<vmem>>) attributes {dimension_semantics = [#tpu.dimension_semantics<parallel>], iteration_bounds = array<i64: 1>, scalar_prefetch = 0 : i64, scratch_operands = 0 : i64, tpu.core_type = #tpu.core_type<tc>, window_params = [{transform_indices = @transform_0, window_bounds = array<i64: 16, 64>}, {pipeline_mode = #tpu.pipeline_mode<synchronous>, transform_indices = @transform_1, window_bounds = array<i64: 1, 64>}, {transform_indices = @transform_2, window_bounds = array<i64: 16, 64>}, {pipeline_mode = #tpu.pipeline_mode<synchronous>, transform_indices = @transform_3, window_bounds = array<i64: 64, 64>}, {pipeline_mode = #tpu.pipeline_mode<synchronous>, transform_indices = @transform_4, window_bounds = array<i64: 1, 64>}, {transform_indices = @transform_5, window_bounds = array<i64: 16, 64>}]} {
    %c0 = arith.constant 0 : index
    %c0_0 = arith.constant 0 : index
    %0 = vector.load %arg1[%c0, %c0_0] : memref<16x64xbf16, #tpu.memory_space<vmem>>, vector<16x64xbf16>
    %1 = arith.extf %0 : vector<16x64xbf16> to vector<16x64xf32>
    %2 = arith.mulf %1, %1 : vector<16x64xf32>
    %cst = arith.constant dense<0.000000e+00> : vector<16xf32>
    %3 = vector.multi_reduction <add>, %2, %cst [1] : vector<16x64xf32> to vector<16xf32>
    %4 = vector.shape_cast %3 : vector<16xf32> to vector<16x1xf32>
    %cst_1 = arith.constant 6.400000e+01 : f32
    %5 = vector.broadcast %cst_1 : f32 to vector<16x1xf32>
    %6 = arith.divf %4, %5 : vector<16x1xf32>
    %cst_2 = arith.constant 9.99999974E-6 : f32
    %7 = vector.broadcast %cst_2 : f32 to vector<16x1xf32>
    %8 = arith.addf %6, %7 : vector<16x1xf32>
    %9 = math.rsqrt %8 : vector<16x1xf32>
    %10 = vector.broadcast %9 : vector<16x1xf32> to vector<16x64xf32>
    %11 = arith.mulf %1, %10 : vector<16x64xf32>
    %c0_3 = arith.constant 0 : index
    %c0_4 = arith.constant 0 : index
    %12 = vector.load %arg2[%c0_3, %c0_4] : memref<1x64xf32, #tpu.memory_space<vmem>>, vector<1x64xf32>
    %13 = vector.broadcast %12 : vector<1x64xf32> to vector<16x64xf32>
    %14 = arith.mulf %11, %13 : vector<16x64xf32>
    %c0_5 = arith.constant 0 : index
    %c0_6 = arith.constant 0 : index
    %15 = vector.load %arg3[%c0_5, %c0_6] : memref<16x64xbf16, #tpu.memory_space<vmem>>, vector<16x64xbf16>
    %16 = arith.extf %15 : vector<16x64xbf16> to vector<16x64xf32>
    %17 = arith.addf %14, %16 : vector<16x64xf32>
    %18 = arith.truncf %17 : vector<16x64xf32> to vector<16x64xbf16>
    %c0_7 = arith.constant 0 : index
    %c0_8 = arith.constant 0 : index
    %19 = vector.load %arg4[%c0_7, %c0_8] : memref<64x64xbf16, #tpu.memory_space<vmem>>, vector<64x64xbf16>
    %cst_9 = arith.constant dense<0.000000e+00> : vector<16x64xf32>
    %20 = tpu.matmul %18, %19, %cst_9 {dimension_numbers = #tpu.dot_dimension_numbers<[1], [0], [0], [1], [0, 0, 1, 1], [], []>} : vector<16x64xbf16>, vector<64x64xbf16>, vector<16x64xf32> -> vector<16x64xf32>
    %c0_10 = arith.constant 0 : index
    %c0_11 = arith.constant 0 : index
    %21 = vector.load %arg5[%c0_10, %c0_11] : memref<1x64xf32, #tpu.memory_space<vmem>>, vector<1x64xf32>
    %22 = vector.broadcast %21 : vector<1x64xf32> to vector<16x64xf32>
    %23 = arith.addf %20, %22 : vector<16x64xf32>
    %24 = arith.truncf %23 : vector<16x64xf32> to vector<16x64xbf16>
    %c0_12 = arith.constant 0 : index
    %c0_13 = arith.constant 0 : index
    %25 = vector.load %arg6[%c0_12, %c0_13] : memref<16x64xbf16, #tpu.memory_space<vmem>>, vector<16x64xbf16>
    tpu.vector_store %arg6[%c0_12, %c0_13], %24 {strides = array<i32>} : memref<16x64xbf16, #tpu.memory_space<vmem>>, vector<16x64xbf16>,
    return
  }
  func.func @transform_0(%arg0: i32) -> (i32, i32) {
    %c0_i32 = arith.constant 0 : i32
    %c0_i32_0 = arith.constant 0 : i32
    return %arg0, %c0_i32 : i32, i32
  }
  func.func @transform_1(%arg0: i32) -> (i32, i32) {
    %c0_i32 = arith.constant 0 : i32
    %c0_i32_0 = arith.constant 0 : i32
    %c0_i32_1 = arith.constant 0 : i32
    return %c0_i32, %c0_i32_0 : i32, i32
  }
  func.func @transform_2(%arg0: i32) -> (i32, i32) {
    %c0_i32 = arith.constant 0 : i32
    %c0_i32_0 = arith.constant 0 : i32
    return %arg0, %c0_i32 : i32, i32
  }
  func.func @transform_3(%arg0: i32) -> (i32, i32) {
    %c0_i32 = arith.constant 0 : i32
    %c0_i32_0 = arith.constant 0 : i32
    %c0_i32_1 = arith.constant 0 : i32
    return %c0_i32, %c0_i32_0 : i32, i32
  }
  func.func @transform_4(%arg0: i32) -> (i32, i32) {
    %c0_i32 = arith.constant 0 : i32
    %c0_i32_0 = arith.constant 0 : i32
    %c0_i32_1 = arith.constant 0 : i32
    return %c0_i32, %c0_i32_0 : i32, i32
  }
  func.func @transform_5(%arg0: i32) -> (i32, i32) {
    %c0_i32 = arith.constant 0 : i32
    %c0_i32_0 = arith.constant 0 : i32
    return %arg0, %c0_i32 : i32, i32
  }
}

module attributes {stable_mosaic.version = 11 : i64} {
  func.func @_fused_linear_kernel(%arg0: i32, %arg1: memref<16x768xbf16, #tpu.memory_space<vmem>>, %arg2: memref<768x64xbf16, #tpu.memory_space<vmem>>, %arg3: memref<1x64xf32, #tpu.memory_space<vmem>>, %arg4: memref<16x64xbf16, #tpu.memory_space<vmem>>) attributes {dimension_semantics = [#tpu.dimension_semantics<parallel>], iteration_bounds = array<i64: 1>, scalar_prefetch = 0 : i64, scratch_operands = 0 : i64, tpu.core_type = #tpu.core_type<tc>, window_params = [{transform_indices = @transform_0, window_bounds = array<i64: 16, 768>}, {pipeline_mode = #tpu.pipeline_mode<synchronous>, transform_indices = @transform_1, window_bounds = array<i64: 768, 64>}, {pipeline_mode = #tpu.pipeline_mode<synchronous>, transform_indices = @transform_2, window_bounds = array<i64: 1, 64>}, {transform_indices = @transform_3, window_bounds = array<i64: 16, 64>}]} {
    %c0 = arith.constant 0 : index
    %c0_0 = arith.constant 0 : index
    %0 = vector.load %arg1[%c0, %c0_0] : memref<16x768xbf16, #tpu.memory_space<vmem>>, vector<16x768xbf16>
    %c0_1 = arith.constant 0 : index
    %c0_2 = arith.constant 0 : index
    %1 = vector.load %arg2[%c0_1, %c0_2] : memref<768x64xbf16, #tpu.memory_space<vmem>>, vector<768x64xbf16>
    %cst = arith.constant dense<0.000000e+00> : vector<16x64xf32>
    %2 = tpu.matmul %0, %1, %cst {dimension_numbers = #tpu.dot_dimension_numbers<[1], [0], [0], [1], [0, 0, 1, 1], [], []>} : vector<16x768xbf16>, vector<768x64xbf16>, vector<16x64xf32> -> vector<16x64xf32>
    %c0_3 = arith.constant 0 : index
    %c0_4 = arith.constant 0 : index
    %3 = vector.load %arg3[%c0_3, %c0_4] : memref<1x64xf32, #tpu.memory_space<vmem>>, vector<1x64xf32>
    %4 = vector.broadcast %3 : vector<1x64xf32> to vector<16x64xf32>
    %5 = arith.addf %2, %4 : vector<16x64xf32>
    %6 = arith.truncf %5 : vector<16x64xf32> to vector<16x64xbf16>
    %c0_5 = arith.constant 0 : index
    %c0_6 = arith.constant 0 : index
    %7 = vector.load %arg4[%c0_5, %c0_6] : memref<16x64xbf16, #tpu.memory_space<vmem>>, vector<16x64xbf16>
    tpu.vector_store %arg4[%c0_5, %c0_6], %6 {strides = array<i32>} : memref<16x64xbf16, #tpu.memory_space<vmem>>, vector<16x64xbf16>,
    return
  }
  func.func @transform_0(%arg0: i32) -> (i32, i32) {
    %c0_i32 = arith.constant 0 : i32
    %c0_i32_0 = arith.constant 0 : i32
    return %arg0, %c0_i32 : i32, i32
  }
  func.func @transform_1(%arg0: i32) -> (i32, i32) {
    %c0_i32 = arith.constant 0 : i32
    %c0_i32_0 = arith.constant 0 : i32
    %c0_i32_1 = arith.constant 0 : i32
    return %c0_i32, %c0_i32_0 : i32, i32
  }
  func.func @transform_2(%arg0: i32) -> (i32, i32) {
    %c0_i32 = arith.constant 0 : i32
    %c0_i32_0 = arith.constant 0 : i32
    %c0_i32_1 = arith.constant 0 : i32
    return %c0_i32, %c0_i32_0 : i32, i32
  }
  func.func @transform_3(%arg0: i32) -> (i32, i32) {
    %c0_i32 = arith.constant 0 : i32
    %c0_i32_0 = arith.constant 0 : i32
    return %arg0, %c0_i32 : i32, i32
  }
}

module attributes {stable_mosaic.version = 11 : i64} {
  func.func @_fused_linear_kernel(%arg0: i32, %arg1: memref<4x25xbf16, #tpu.memory_space<vmem>>, %arg2: memref<25x64xbf16, #tpu.memory_space<vmem>>, %arg3: memref<1x64xf32, #tpu.memory_space<vmem>>, %arg4: memref<4x64xbf16, #tpu.memory_space<vmem>>) attributes {dimension_semantics = [#tpu.dimension_semantics<parallel>], iteration_bounds = array<i64: 1>, scalar_prefetch = 0 : i64, scratch_operands = 0 : i64, tpu.core_type = #tpu.core_type<tc>, window_params = [{transform_indices = @transform_0, window_bounds = array<i64: 4, 25>}, {pipeline_mode = #tpu.pipeline_mode<synchronous>, transform_indices = @transform_1, window_bounds = array<i64: 25, 64>}, {pipeline_mode = #tpu.pipeline_mode<synchronous>, transform_indices = @transform_2, window_bounds = array<i64: 1, 64>}, {transform_indices = @transform_3, window_bounds = array<i64: 4, 64>}]} {
    %c0 = arith.constant 0 : index
    %c0_0 = arith.constant 0 : index
    %0 = vector.load %arg1[%c0, %c0_0] : memref<4x25xbf16, #tpu.memory_space<vmem>>, vector<4x25xbf16>
    %c0_1 = arith.constant 0 : index
    %c0_2 = arith.constant 0 : index
    %1 = vector.load %arg2[%c0_1, %c0_2] : memref<25x64xbf16, #tpu.memory_space<vmem>>, vector<25x64xbf16>
    %cst = arith.constant dense<0.000000e+00> : vector<4x64xf32>
    %2 = tpu.matmul %0, %1, %cst {dimension_numbers = #tpu.dot_dimension_numbers<[1], [0], [0], [1], [0, 0, 1, 1], [], []>} : vector<4x25xbf16>, vector<25x64xbf16>, vector<4x64xf32> -> vector<4x64xf32>
    %c0_3 = arith.constant 0 : index
    %c0_4 = arith.constant 0 : index
    %3 = vector.load %arg3[%c0_3, %c0_4] : memref<1x64xf32, #tpu.memory_space<vmem>>, vector<1x64xf32>
    %4 = vector.broadcast %3 : vector<1x64xf32> to vector<4x64xf32>
    %5 = arith.addf %2, %4 : vector<4x64xf32>
    %6 = arith.truncf %5 : vector<4x64xf32> to vector<4x64xbf16>
    %c0_5 = arith.constant 0 : index
    %c0_6 = arith.constant 0 : index
    %7 = vector.load %arg4[%c0_5, %c0_6] : memref<4x64xbf16, #tpu.memory_space<vmem>>, vector<4x64xbf16>
    tpu.vector_store %arg4[%c0_5, %c0_6], %6 {strides = array<i32>} : memref<4x64xbf16, #tpu.memory_space<vmem>>, vector<4x64xbf16>,
    return
  }
  func.func @transform_0(%arg0: i32) -> (i32, i32) {
    %c0_i32 = arith.constant 0 : i32
    %c0_i32_0 = arith.constant 0 : i32
    return %arg0, %c0_i32 : i32, i32
  }
  func.func @transform_1(%arg0: i32) -> (i32, i32) {
    %c0_i32 = arith.constant 0 : i32
    %c0_i32_0 = arith.constant 0 : i32
    %c0_i32_1 = arith.constant 0 : i32
    return %c0_i32, %c0_i32_0 : i32, i32
  }
  func.func @transform_2(%arg0: i32) -> (i32, i32) {
    %c0_i32 = arith.constant 0 : i32
    %c0_i32_0 = arith.constant 0 : i32
    %c0_i32_1 = arith.constant 0 : i32
    return %c0_i32, %c0_i32_0 : i32, i32
  }
  func.func @transform_3(%arg0: i32) -> (i32, i32) {
    %c0_i32 = arith.constant 0 : i32
    %c0_i32_0 = arith.constant 0 : i32
    return %arg0, %c0_i32 : i32, i32
  }
}

module attributes {stable_mosaic.version = 11 : i64} {
  func.func @_fused_linear_kernel(%arg0: i32, %arg1: memref<16x64xbf16, #tpu.memory_space<vmem>>, %arg2: memref<1x64xf32, #tpu.memory_space<vmem>>, %arg3: memref<64x256xbf16, #tpu.memory_space<vmem>>, %arg4: memref<1x256xf32, #tpu.memory_space<vmem>>, %arg5: memref<16x256xbf16, #tpu.memory_space<vmem>>) attributes {dimension_semantics = [#tpu.dimension_semantics<parallel>], iteration_bounds = array<i64: 1>, scalar_prefetch = 0 : i64, scratch_operands = 0 : i64, tpu.core_type = #tpu.core_type<tc>, window_params = [{transform_indices = @transform_0, window_bounds = array<i64: 16, 64>}, {pipeline_mode = #tpu.pipeline_mode<synchronous>, transform_indices = @transform_1, window_bounds = array<i64: 1, 64>}, {pipeline_mode = #tpu.pipeline_mode<synchronous>, transform_indices = @transform_2, window_bounds = array<i64: 64, 256>}, {pipeline_mode = #tpu.pipeline_mode<synchronous>, transform_indices = @transform_3, window_bounds = array<i64: 1, 256>}, {transform_indices = @transform_4, window_bounds = array<i64: 16, 256>}]} {
    %c0 = arith.constant 0 : index
    %c0_0 = arith.constant 0 : index
    %0 = vector.load %arg1[%c0, %c0_0] : memref<16x64xbf16, #tpu.memory_space<vmem>>, vector<16x64xbf16>
    %1 = arith.extf %0 : vector<16x64xbf16> to vector<16x64xf32>
    %2 = arith.mulf %1, %1 : vector<16x64xf32>
    %cst = arith.constant dense<0.000000e+00> : vector<16xf32>
    %3 = vector.multi_reduction <add>, %2, %cst [1] : vector<16x64xf32> to vector<16xf32>
    %4 = vector.shape_cast %3 : vector<16xf32> to vector<16x1xf32>
    %cst_1 = arith.constant 6.400000e+01 : f32
    %5 = vector.broadcast %cst_1 : f32 to vector<16x1xf32>
    %6 = arith.divf %4, %5 : vector<16x1xf32>
    %cst_2 = arith.constant 9.99999974E-6 : f32
    %7 = vector.broadcast %cst_2 : f32 to vector<16x1xf32>
    %8 = arith.addf %6, %7 : vector<16x1xf32>
    %9 = math.rsqrt %8 : vector<16x1xf32>
    %10 = vector.broadcast %9 : vector<16x1xf32> to vector<16x64xf32>
    %11 = arith.mulf %1, %10 : vector<16x64xf32>
    %c0_3 = arith.constant 0 : index
    %c0_4 = arith.constant 0 : index
    %12 = vector.load %arg2[%c0_3, %c0_4] : memref<1x64xf32, #tpu.memory_space<vmem>>, vector<1x64xf32>
    %13 = vector.broadcast %12 : vector<1x64xf32> to vector<16x64xf32>
    %14 = arith.mulf %11, %13 : vector<16x64xf32>
    %15 = arith.truncf %14 : vector<16x64xf32> to vector<16x64xbf16>
    %c0_5 = arith.constant 0 : index
    %c0_6 = arith.constant 0 : index
    %16 = vector.load %arg3[%c0_5, %c0_6] : memref<64x256xbf16, #tpu.memory_space<vmem>>, vector<64x256xbf16>
    %cst_7 = arith.constant dense<0.000000e+00> : vector<16x256xf32>
    %17 = tpu.matmul %15, %16, %cst_7 {dimension_numbers = #tpu.dot_dimension_numbers<[1], [0], [0], [1], [0, 0, 1, 1], [], []>} : vector<16x64xbf16>, vector<64x256xbf16>, vector<16x256xf32> -> vector<16x256xf32>
    %c0_8 = arith.constant 0 : index
    %c0_9 = arith.constant 0 : index
    %18 = vector.load %arg4[%c0_8, %c0_9] : memref<1x256xf32, #tpu.memory_space<vmem>>, vector<1x256xf32>
    %19 = vector.broadcast %18 : vector<1x256xf32> to vector<16x256xf32>
    %20 = arith.addf %17, %19 : vector<16x256xf32>
    %21 = arith.mulf %20, %20 : vector<16x256xf32>
    %22 = arith.mulf %20, %21 : vector<16x256xf32>
    %cst_10 = arith.constant 4.471500e-02 : f32
    %23 = vector.broadcast %cst_10 : f32 to vector<16x256xf32>
    %24 = arith.mulf %23, %22 : vector<16x256xf32>
    %25 = arith.addf %20, %24 : vector<16x256xf32>
    %cst_11 = arith.constant 0.797884583 : f32
    %26 = vector.broadcast %cst_11 : f32 to vector<16x256xf32>
    %27 = arith.mulf %26, %25 : vector<16x256xf32>
    %28 = math.tanh %27 : vector<16x256xf32>
    %cst_12 = arith.constant 1.000000e+00 : f32
    %29 = vector.broadcast %cst_12 : f32 to vector<16x256xf32>
    %30 = arith.addf %29, %28 : vector<16x256xf32>
    %cst_13 = arith.constant 5.000000e-01 : f32
    %31 = vector.broadcast %cst_13 : f32 to vector<16x256xf32>
    %32 = arith.mulf %31, %30 : vector<16x256xf32>
    %33 = arith.mulf %20, %32 : vector<16x256xf32>
    %34 = arith.truncf %33 : vector<16x256xf32> to vector<16x256xbf16>
    %c0_14 = arith.constant 0 : index
    %c0_15 = arith.constant 0 : index
    %35 = vector.load %arg5[%c0_14, %c0_15] : memref<16x256xbf16, #tpu.memory_space<vmem>>, vector<16x256xbf16>
    tpu.vector_store %arg5[%c0_14, %c0_15], %34 {strides = array<i32>} : memref<16x256xbf16, #tpu.memory_space<vmem>>, vector<16x256xbf16>,
    return
  }
  func.func @transform_0(%arg0: i32) -> (i32, i32) {
    %c0_i32 = arith.constant 0 : i32
    %c0_i32_0 = arith.constant 0 : i32
    return %arg0, %c0_i32 : i32, i32
  }
  func.func @transform_1(%arg0: i32) -> (i32, i32) {
    %c0_i32 = arith.constant 0 : i32
    %c0_i32_0 = arith.constant 0 : i32
    %c0_i32_1 = arith.constant 0 : i32
    return %c0_i32, %c0_i32_0 : i32, i32
  }
  func.func @transform_2(%arg0: i32) -> (i32, i32) {
    %c0_i32 = arith.constant 0 : i32
    %c0_i32_0 = arith.constant 0 : i32
    %c0_i32_1 = arith.constant 0 : i32
    return %c0_i32, %c0_i32_0 : i32, i32
  }
  func.func @transform_3(%arg0: i32) -> (i32, i32) {
    %c0_i32 = arith.constant 0 : i32
    %c0_i32_0 = arith.constant 0 : i32
    %c0_i32_1 = arith.constant 0 : i32
    return %c0_i32, %c0_i32_0 : i32, i32
  }
  func.func @transform_4(%arg0: i32) -> (i32, i32) {
    %c0_i32 = arith.constant 0 : i32
    %c0_i32_0 = arith.constant 0 : i32
    return %arg0, %c0_i32 : i32, i32
  }
}

module attributes {stable_mosaic.version = 11 : i64} {
  func.func @_fused_linear_kernel(%arg0: i32, %arg1: memref<16x256xbf16, #tpu.memory_space<vmem>>, %arg2: memref<256x64xbf16, #tpu.memory_space<vmem>>, %arg3: memref<1x64xf32, #tpu.memory_space<vmem>>, %arg4: memref<16x64xbf16, #tpu.memory_space<vmem>>, %arg5: memref<16x64xbf16, #tpu.memory_space<vmem>>) attributes {dimension_semantics = [#tpu.dimension_semantics<parallel>], iteration_bounds = array<i64: 1>, scalar_prefetch = 0 : i64, scratch_operands = 0 : i64, tpu.core_type = #tpu.core_type<tc>, window_params = [{transform_indices = @transform_0, window_bounds = array<i64: 16, 256>}, {pipeline_mode = #tpu.pipeline_mode<synchronous>, transform_indices = @transform_1, window_bounds = array<i64: 256, 64>}, {pipeline_mode = #tpu.pipeline_mode<synchronous>, transform_indices = @transform_2, window_bounds = array<i64: 1, 64>}, {transform_indices = @transform_3, window_bounds = array<i64: 16, 64>}, {transform_indices = @transform_4, window_bounds = array<i64: 16, 64>}]} {
    %c0 = arith.constant 0 : index
    %c0_0 = arith.constant 0 : index
    %0 = vector.load %arg1[%c0, %c0_0] : memref<16x256xbf16, #tpu.memory_space<vmem>>, vector<16x256xbf16>
    %c0_1 = arith.constant 0 : index
    %c0_2 = arith.constant 0 : index
    %1 = vector.load %arg2[%c0_1, %c0_2] : memref<256x64xbf16, #tpu.memory_space<vmem>>, vector<256x64xbf16>
    %cst = arith.constant dense<0.000000e+00> : vector<16x64xf32>
    %2 = tpu.matmul %0, %1, %cst {dimension_numbers = #tpu.dot_dimension_numbers<[1], [0], [0], [1], [0, 0, 1, 1], [], []>} : vector<16x256xbf16>, vector<256x64xbf16>, vector<16x64xf32> -> vector<16x64xf32>
    %c0_3 = arith.constant 0 : index
    %c0_4 = arith.constant 0 : index
    %3 = vector.load %arg3[%c0_3, %c0_4] : memref<1x64xf32, #tpu.memory_space<vmem>>, vector<1x64xf32>
    %4 = vector.broadcast %3 : vector<1x64xf32> to vector<16x64xf32>
    %5 = arith.addf %2, %4 : vector<16x64xf32>
    %c0_5 = arith.constant 0 : index
    %c0_6 = arith.constant 0 : index
    %6 = vector.load %arg4[%c0_5, %c0_6] : memref<16x64xbf16, #tpu.memory_space<vmem>>, vector<16x64xbf16>
    %7 = arith.extf %6 : vector<16x64xbf16> to vector<16x64xf32>
    %8 = arith.addf %5, %7 : vector<16x64xf32>
    %9 = arith.truncf %8 : vector<16x64xf32> to vector<16x64xbf16>
    %c0_7 = arith.constant 0 : index
    %c0_8 = arith.constant 0 : index
    %10 = vector.load %arg5[%c0_7, %c0_8] : memref<16x64xbf16, #tpu.memory_space<vmem>>, vector<16x64xbf16>
    tpu.vector_store %arg5[%c0_7, %c0_8], %9 {strides = array<i32>} : memref<16x64xbf16, #tpu.memory_space<vmem>>, vector<16x64xbf16>,
    return
  }
  func.func @transform_0(%arg0: i32) -> (i32, i32) {
    %c0_i32 = arith.constant 0 : i32
    %c0_i32_0 = arith.constant 0 : i32
    return %arg0, %c0_i32 : i32, i32
  }
  func.func @transform_1(%arg0: i32) -> (i32, i32) {
    %c0_i32 = arith.constant 0 : i32
    %c0_i32_0 = arith.constant 0 : i32
    %c0_i32_1 = arith.constant 0 : i32
    return %c0_i32, %c0_i32_0 : i32, i32
  }
  func.func @transform_2(%arg0: i32) -> (i32, i32) {
    %c0_i32 = arith.constant 0 : i32
    %c0_i32_0 = arith.constant 0 : i32
    %c0_i32_1 = arith.constant 0 : i32
    return %c0_i32, %c0_i32_0 : i32, i32
  }
  func.func @transform_3(%arg0: i32) -> (i32, i32) {
    %c0_i32 = arith.constant 0 : i32
    %c0_i32_0 = arith.constant 0 : i32
    return %arg0, %c0_i32 : i32, i32
  }
  func.func @transform_4(%arg0: i32) -> (i32, i32) {
    %c0_i32 = arith.constant 0 : i32
    %c0_i32_0 = arith.constant 0 : i32
    return %arg0, %c0_i32 : i32, i32
  }
}

module attributes {stable_mosaic.version = 11 : i64} {
  func.func @_fused_linear_kernel(%arg0: i32, %arg1: memref<16x64xbf16, #tpu.memory_space<vmem>>, %arg2: memref<64x64xbf16, #tpu.memory_space<vmem>>, %arg3: memref<1x64xf32, #tpu.memory_space<vmem>>, %arg4: memref<16x64xbf16, #tpu.memory_space<vmem>>) attributes {dimension_semantics = [#tpu.dimension_semantics<parallel>], iteration_bounds = array<i64: 1>, scalar_prefetch = 0 : i64, scratch_operands = 0 : i64, tpu.core_type = #tpu.core_type<tc>, window_params = [{transform_indices = @transform_0, window_bounds = array<i64: 16, 64>}, {pipeline_mode = #tpu.pipeline_mode<synchronous>, transform_indices = @transform_1, window_bounds = array<i64: 64, 64>}, {pipeline_mode = #tpu.pipeline_mode<synchronous>, transform_indices = @transform_2, window_bounds = array<i64: 1, 64>}, {transform_indices = @transform_3, window_bounds = array<i64: 16, 64>}]} {
    %c0 = arith.constant 0 : index
    %c0_0 = arith.constant 0 : index
    %0 = vector.load %arg1[%c0, %c0_0] : memref<16x64xbf16, #tpu.memory_space<vmem>>, vector<16x64xbf16>
    %c0_1 = arith.constant 0 : index
    %c0_2 = arith.constant 0 : index
    %1 = vector.load %arg2[%c0_1, %c0_2] : memref<64x64xbf16, #tpu.memory_space<vmem>>, vector<64x64xbf16>
    %cst = arith.constant dense<0.000000e+00> : vector<16x64xf32>
    %2 = tpu.matmul %0, %1, %cst {dimension_numbers = #tpu.dot_dimension_numbers<[1], [0], [0], [1], [0, 0, 1, 1], [], []>} : vector<16x64xbf16>, vector<64x64xbf16>, vector<16x64xf32> -> vector<16x64xf32>
    %c0_3 = arith.constant 0 : index
    %c0_4 = arith.constant 0 : index
    %3 = vector.load %arg3[%c0_3, %c0_4] : memref<1x64xf32, #tpu.memory_space<vmem>>, vector<1x64xf32>
    %4 = vector.broadcast %3 : vector<1x64xf32> to vector<16x64xf32>
    %5 = arith.addf %2, %4 : vector<16x64xf32>
    %6 = arith.truncf %5 : vector<16x64xf32> to vector<16x64xbf16>
    %c0_5 = arith.constant 0 : index
    %c0_6 = arith.constant 0 : index
    %7 = vector.load %arg4[%c0_5, %c0_6] : memref<16x64xbf16, #tpu.memory_space<vmem>>, vector<16x64xbf16>
    tpu.vector_store %arg4[%c0_5, %c0_6], %6 {strides = array<i32>} : memref<16x64xbf16, #tpu.memory_space<vmem>>, vector<16x64xbf16>,
    return
  }
  func.func @transform_0(%arg0: i32) -> (i32, i32) {
    %c0_i32 = arith.constant 0 : i32
    %c0_i32_0 = arith.constant 0 : i32
    return %arg0, %c0_i32 : i32, i32
  }
  func.func @transform_1(%arg0: i32) -> (i32, i32) {
    %c0_i32 = arith.constant 0 : i32
    %c0_i32_0 = arith.constant 0 : i32
    %c0_i32_1 = arith.constant 0 : i32
    return %c0_i32, %c0_i32_0 : i32, i32
  }
  func.func @transform_2(%arg0: i32) -> (i32, i32) {
    %c0_i32 = arith.constant 0 : i32
    %c0_i32_0 = arith.constant 0 : i32
    %c0_i32_1 = arith.constant 0 : i32
    return %c0_i32, %c0_i32_0 : i32, i32
  }
  func.func @transform_3(%arg0: i32) -> (i32, i32) {
    %c0_i32 = arith.constant 0 : i32
    %c0_i32_0 = arith.constant 0 : i32
    return %arg0, %c0_i32 : i32, i32
  }
}

module attributes {stable_mosaic.version = 11 : i64} {
  func.func @_fused_linear_kernel(%arg0: i32, %arg1: memref<16x64xbf16, #tpu.memory_space<vmem>>, %arg2: memref<64x128xbf16, #tpu.memory_space<vmem>>, %arg3: memref<1x128xf32, #tpu.memory_space<vmem>>, %arg4: memref<16x128xbf16, #tpu.memory_space<vmem>>) attributes {dimension_semantics = [#tpu.dimension_semantics<parallel>], iteration_bounds = array<i64: 1>, scalar_prefetch = 0 : i64, scratch_operands = 0 : i64, tpu.core_type = #tpu.core_type<tc>, window_params = [{transform_indices = @transform_0, window_bounds = array<i64: 16, 64>}, {pipeline_mode = #tpu.pipeline_mode<synchronous>, transform_indices = @transform_1, window_bounds = array<i64: 64, 128>}, {pipeline_mode = #tpu.pipeline_mode<synchronous>, transform_indices = @transform_2, window_bounds = array<i64: 1, 128>}, {transform_indices = @transform_3, window_bounds = array<i64: 16, 128>}]} {
    %c0 = arith.constant 0 : index
    %c0_0 = arith.constant 0 : index
    %0 = vector.load %arg1[%c0, %c0_0] : memref<16x64xbf16, #tpu.memory_space<vmem>>, vector<16x64xbf16>
    %c0_1 = arith.constant 0 : index
    %c0_2 = arith.constant 0 : index
    %1 = vector.load %arg2[%c0_1, %c0_2] : memref<64x128xbf16, #tpu.memory_space<vmem>>, vector<64x128xbf16>
    %cst = arith.constant dense<0.000000e+00> : vector<16x128xf32>
    %2 = tpu.matmul %0, %1, %cst {dimension_numbers = #tpu.dot_dimension_numbers<[1], [0], [0], [1], [0, 0, 1, 1], [], []>} : vector<16x64xbf16>, vector<64x128xbf16>, vector<16x128xf32> -> vector<16x128xf32>
    %c0_3 = arith.constant 0 : index
    %c0_4 = arith.constant 0 : index
    %3 = vector.load %arg3[%c0_3, %c0_4] : memref<1x128xf32, #tpu.memory_space<vmem>>, vector<1x128xf32>
    %4 = vector.broadcast %3 : vector<1x128xf32> to vector<16x128xf32>
    %5 = arith.addf %2, %4 : vector<16x128xf32>
    %6 = arith.truncf %5 : vector<16x128xf32> to vector<16x128xbf16>
    %c0_5 = arith.constant 0 : index
    %c0_6 = arith.constant 0 : index
    %7 = vector.load %arg4[%c0_5, %c0_6] : memref<16x128xbf16, #tpu.memory_space<vmem>>, vector<16x128xbf16>
    tpu.vector_store %arg4[%c0_5, %c0_6], %6 {strides = array<i32>} : memref<16x128xbf16, #tpu.memory_space<vmem>>, vector<16x128xbf16>,
    return
  }
  func.func @transform_0(%arg0: i32) -> (i32, i32) {
    %c0_i32 = arith.constant 0 : i32
    %c0_i32_0 = arith.constant 0 : i32
    return %arg0, %c0_i32 : i32, i32
  }
  func.func @transform_1(%arg0: i32) -> (i32, i32) {
    %c0_i32 = arith.constant 0 : i32
    %c0_i32_0 = arith.constant 0 : i32
    %c0_i32_1 = arith.constant 0 : i32
    return %c0_i32, %c0_i32_0 : i32, i32
  }
  func.func @transform_2(%arg0: i32) -> (i32, i32) {
    %c0_i32 = arith.constant 0 : i32
    %c0_i32_0 = arith.constant 0 : i32
    %c0_i32_1 = arith.constant 0 : i32
    return %c0_i32, %c0_i32_0 : i32, i32
  }
  func.func @transform_3(%arg0: i32) -> (i32, i32) {
    %c0_i32 = arith.constant 0 : i32
    %c0_i32_0 = arith.constant 0 : i32
    return %arg0, %c0_i32 : i32, i32
  }
}

module attributes {stable_mosaic.version = 11 : i64} {
  func.func @_rmsnorm_kernel(%arg0: i32, %arg1: memref<16x64xbf16, #tpu.memory_space<vmem>>, %arg2: memref<1x64xf32, #tpu.memory_space<vmem>>, %arg3: memref<16x64xbf16, #tpu.memory_space<vmem>>) attributes {dimension_semantics = [#tpu.dimension_semantics<parallel>], iteration_bounds = array<i64: 1>, scalar_prefetch = 0 : i64, scratch_operands = 0 : i64, tpu.core_type = #tpu.core_type<tc>, window_params = [{transform_indices = @transform_0, window_bounds = array<i64: 16, 64>}, {pipeline_mode = #tpu.pipeline_mode<synchronous>, transform_indices = @transform_1, window_bounds = array<i64: 1, 64>}, {transform_indices = @transform_2, window_bounds = array<i64: 16, 64>}]} {
    %c0 = arith.constant 0 : index
    %c0_0 = arith.constant 0 : index
    %0 = vector.load %arg1[%c0, %c0_0] : memref<16x64xbf16, #tpu.memory_space<vmem>>, vector<16x64xbf16>
    %1 = arith.extf %0 : vector<16x64xbf16> to vector<16x64xf32>
    %2 = arith.mulf %1, %1 : vector<16x64xf32>
    %cst = arith.constant dense<0.000000e+00> : vector<16xf32>
    %3 = vector.multi_reduction <add>, %2, %cst [1] : vector<16x64xf32> to vector<16xf32>
    %4 = vector.shape_cast %3 : vector<16xf32> to vector<16x1xf32>
    %cst_1 = arith.constant 6.400000e+01 : f32
    %5 = vector.broadcast %cst_1 : f32 to vector<16x1xf32>
    %6 = arith.divf %4, %5 : vector<16x1xf32>
    %cst_2 = arith.constant 9.99999974E-6 : f32
    %7 = vector.broadcast %cst_2 : f32 to vector<16x1xf32>
    %8 = arith.addf %6, %7 : vector<16x1xf32>
    %9 = math.rsqrt %8 : vector<16x1xf32>
    %10 = vector.broadcast %9 : vector<16x1xf32> to vector<16x64xf32>
    %11 = arith.mulf %1, %10 : vector<16x64xf32>
    %c0_3 = arith.constant 0 : index
    %c0_4 = arith.constant 0 : index
    %12 = vector.load %arg2[%c0_3, %c0_4] : memref<1x64xf32, #tpu.memory_space<vmem>>, vector<1x64xf32>
    %13 = vector.broadcast %12 : vector<1x64xf32> to vector<16x64xf32>
    %14 = arith.mulf %11, %13 : vector<16x64xf32>
    %15 = arith.truncf %14 : vector<16x64xf32> to vector<16x64xbf16>
    %c0_5 = arith.constant 0 : index
    %c0_6 = arith.constant 0 : index
    %16 = vector.load %arg3[%c0_5, %c0_6] : memref<16x64xbf16, #tpu.memory_space<vmem>>, vector<16x64xbf16>
    tpu.vector_store %arg3[%c0_5, %c0_6], %15 {strides = array<i32>} : memref<16x64xbf16, #tpu.memory_space<vmem>>, vector<16x64xbf16>,
    return
  }
  func.func @transform_0(%arg0: i32) -> (i32, i32) {
    %c0_i32 = arith.constant 0 : i32
    %c0_i32_0 = arith.constant 0 : i32
    return %arg0, %c0_i32 : i32, i32
  }
  func.func @transform_1(%arg0: i32) -> (i32, i32) {
    %c0_i32 = arith.constant 0 : i32
    %c0_i32_0 = arith.constant 0 : i32
    %c0_i32_1 = arith.constant 0 : i32
    return %c0_i32, %c0_i32_0 : i32, i32
  }
  func.func @transform_2(%arg0: i32) -> (i32, i32) {
    %c0_i32 = arith.constant 0 : i32
    %c0_i32_0 = arith.constant 0 : i32
    return %arg0, %c0_i32 : i32, i32
  }
}

module attributes {stable_mosaic.version = 11 : i64} {
  func.func @_fused_linear_kernel(%arg0: i32, %arg1: memref<16x64xf32, #tpu.memory_space<vmem>>, %arg2: memref<64x56xf32, #tpu.memory_space<vmem>>, %arg3: memref<1x56xf32, #tpu.memory_space<vmem>>, %arg4: memref<16x56xf32, #tpu.memory_space<vmem>>) attributes {dimension_semantics = [#tpu.dimension_semantics<parallel>], iteration_bounds = array<i64: 1>, scalar_prefetch = 0 : i64, scratch_operands = 0 : i64, tpu.core_type = #tpu.core_type<tc>, window_params = [{transform_indices = @transform_0, window_bounds = array<i64: 16, 64>}, {pipeline_mode = #tpu.pipeline_mode<synchronous>, transform_indices = @transform_1, window_bounds = array<i64: 64, 56>}, {pipeline_mode = #tpu.pipeline_mode<synchronous>, transform_indices = @transform_2, window_bounds = array<i64: 1, 56>}, {transform_indices = @transform_3, window_bounds = array<i64: 16, 56>}]} {
    %c0 = arith.constant 0 : index
    %c0_0 = arith.constant 0 : index
    %0 = vector.load %arg1[%c0, %c0_0] : memref<16x64xf32, #tpu.memory_space<vmem>>, vector<16x64xf32>
    %c0_1 = arith.constant 0 : index
    %c0_2 = arith.constant 0 : index
    %1 = vector.load %arg2[%c0_1, %c0_2] : memref<64x56xf32, #tpu.memory_space<vmem>>, vector<64x56xf32>
    %cst = arith.constant dense<0.000000e+00> : vector<16x56xf32>
    %2 = tpu.matmul %0, %1, %cst {dimension_numbers = #tpu.dot_dimension_numbers<[1], [0], [0], [1], [0, 0, 1, 1], [], []>} : vector<16x64xf32>, vector<64x56xf32>, vector<16x56xf32> -> vector<16x56xf32>
    %c0_3 = arith.constant 0 : index
    %c0_4 = arith.constant 0 : index
    %3 = vector.load %arg3[%c0_3, %c0_4] : memref<1x56xf32, #tpu.memory_space<vmem>>, vector<1x56xf32>
    %4 = vector.broadcast %3 : vector<1x56xf32> to vector<16x56xf32>
    %5 = arith.addf %2, %4 : vector<16x56xf32>
    %c0_5 = arith.constant 0 : index
    %c0_6 = arith.constant 0 : index
    %6 = vector.load %arg4[%c0_5, %c0_6] : memref<16x56xf32, #tpu.memory_space<vmem>>, vector<16x56xf32>
    tpu.vector_store %arg4[%c0_5, %c0_6], %5 {strides = array<i32>} : memref<16x56xf32, #tpu.memory_space<vmem>>, vector<16x56xf32>,
    return
  }
  func.func @transform_0(%arg0: i32) -> (i32, i32) {
    %c0_i32 = arith.constant 0 : i32
    %c0_i32_0 = arith.constant 0 : i32
    return %arg0, %c0_i32 : i32, i32
  }
  func.func @transform_1(%arg0: i32) -> (i32, i32) {
    %c0_i32 = arith.constant 0 : i32
    %c0_i32_0 = arith.constant 0 : i32
    %c0_i32_1 = arith.constant 0 : i32
    return %c0_i32, %c0_i32_0 : i32, i32
  }
  func.func @transform_2(%arg0: i32) -> (i32, i32) {
    %c0_i32 = arith.constant 0 : i32
    %c0_i32_0 = arith.constant 0 : i32
    %c0_i32_1 = arith.constant 0 : i32
    return %c0_i32, %c0_i32_0 : i32, i32
  }
  func.func @transform_3(%arg0: i32) -> (i32, i32) {
    %c0_i32 = arith.constant 0 : i32
    %c0_i32_0 = arith.constant 0 : i32
    return %arg0, %c0_i32 : i32, i32
  }
}

</mosaic_0001>

<bundles_post_ra>
// kernel: custom-call.11
= control target key start
LH: loop header
LB: loop body
LE: loop exit
PB: predicated region body
PF: predicated region fallthrough
CT: control target
= control target key end

     0   :  { %s1035_s0 = inlined_call_operand.vmem [shape: f32[2,2,4,4], index: 0, kind: input, shape index: {}]   ;;  %s1036_s1 = inlined_call_operand.vmem [shape: f32[2,2,4,4], index: 1, kind: output, shape index: {0}]   ;;  %s1037_s2 = inlined_call_operand.hbm [shape: s32[2,2,4], index: 2, kind: output, shape index: {1}]   ;;  %s1038_s3 = inlined_call_operand.vmem [shape: s32[2,2,4], index: 3, kind: output, shape index: {2}]  }
   0x1   :  { %1041 = sst [smem:[#allocation12_spill]] %s1035_s0 }
   0x2   :  { %5 = vsyncpa [#allocation6], 0 }
   0x3   :  { %7 = vsyncpa [#allocation6 + $0x1], 0  ;;  %s821_s12 = smov 0   ;;  %s823_s13 = smov 0  }
   0x4   :  { %s825_s14 = smov 0   ;;  %s827_s15 = smov 0  }
   0x5   :  { %s829_s16 = smov 0   ;;  %s831_s17 = smov 0  }
   0x6   :  { %s833_s18 = smov 0   ;;  %s835_s19 = smov 0  }
   0x7 LB: > { %s589_s20 = sadd.s32 4294967295, %s793_s19   ;;  %s590_s21 = sadd.s32 4294967294, %s793_s19   ;;  %s793_s19 = sphi %s835_s19, %s13_s19   ;;  %s789_s18 = sphi %s833_s18, %s1056_s18   ;;  %s785_s17 = sphi %s831_s17, %s1055_s17   ;;  %s781_s16 = sphi %s829_s16, %s1054_s16   ;;  %s777_s15 = sphi %s827_s15, %s1053_s15   ;;  %s773_s14 = sphi %s825_s14, %s1052_s14   ;;  %s769_s13 = sphi %s823_s13, %s1051_s13   ;;  %s765_s12 = sphi %s821_s12, %s1050_s12  }
   0x8   : > { %s22_s22 = sadd.s32 1, %s785_s17  ;;  %s25_s23 = sadd.s32 1, %s789_s18 }
   0x9   : > { %p23_p0 = scmp.ge.s32.totalorder %s22_s22, 2  ;;  %s29_s24 = sshrl.u32 %s785_s17, 3 }
   0xa   : > { %p46_p1 = scmp.ne.s32.totalorder %s773_s14, %s769_s13  ;;  %p47_p2 = scmp.eq.s32.totalorder %s589_s20, 3 }
   0xb   : > { %s1058_s22 = smov (%p23_p0, %s22_s22), 0  ;;  %s1060_s23 = smov (!%p23_p0, %s25_s23), %s789_s18 }
   0xc   : > { %s30_s25 = sshrl.u32 %s1058_s22, 3  ;;  %p27_p3 = scmp.ge.s32.totalorder %s1060_s23, 2 }
   0xd   : > { %s32_s26 = ssub.s32 %s29_s24, %s30_s25  ;;  %p874_p4 = por %p47_p2, %p46_p1 }
   0xe   : > { %p52_p5 = scmp.ne.s32.totalorder %s769_s13, %s765_s12  ;;  %s1062_s23 = smov (%p27_p3, %s1060_s23), 0 }
   0xf   : > { %1043 = sst [smem:[#allocation11_spill]] %s1062_s23  ;;  %p53_p6 = scmp.eq.s32.totalorder %s590_s21, 3 }
  0x10   : > { %s31_s28 = ssub.s32 %s789_s18, %s1062_s23  ;;  %s36_s29 = sadd.s32 1, %s773_s14 }
  0x11   : > { %s33_s30 = sor.u32 %s32_s26, %s31_s28  ;;  %p885_p7 = por %p53_p6, %p52_p5 }
  0x12   : > { %p34_p8 = scmp.eq.s32.totalorder %s33_s30, 0  ;;  %p592_p9 = scmp.ge.s32.totalorder %s793_s19, 4 }
  0x13   : > { %s101_s6 = sand.u32 (!%p592_p9), 1, %s793_s19   ;;  %s594_s7 = sshll.u32 (!%p592_p9), %s789_s18, 1 }
  0x14   : > { %s890_s5 = scalar_select %p34_p8, %s773_s14, %s36_s29  }
  0x15   : > { %99 = sbr.rel (%p592_p9) target bundleno = 31 (0x1f), region = 16  ;;  %s593_s8 = sshll.u32 (!%p592_p9), %s101_s6, 2 }
  0x16   : > { %s105_s9 = sadd.s32 (!%p592_p9), %s785_s17, %s594_s7  ;;  %s1045_s0 = sld [smem:[#allocation12_spill]] (!%p592_p9) }
  0x17   : > { %s595_s10 = sshll.u32 (!%p592_p9), %s105_s9, 2  ;;  %s103_s25 = scalar_lea.vmem (!%p592_p9), [#allocation1], %s593_s8 }
  0x1c   : > { %s107_s24 = scalar_lea.vmem %s1045_s0, %s595_s10 }
  0x1d   : > { %v123_v0 = vld [vmem:[%s107_s24] sm:$0xf] }
  0x1e   : > { %124 = vst [vmem:[%s103_s25] sm:$0xf] %v123_v0 }
  0x1f PF: > { %p596_p10 = scmp.ge.s32.totalorder %s793_s19, 1  ;;  %p140_p11 = scmp.lt.s32.totalorder %s793_s19, 5 }
  0x21   : > { %p141_p12 = pnand %p596_p10, %p140_p11 }
  0x23   : > { %144 = sbr.rel (%p141_p12) target bundleno = 467 (0x1d3), region = 50 }
  0x2a   : > { %s151_s26 = sand.u32 1, %s589_s20   ;;  %s1039_s28 = sand.u32 1, %s769_s13   ;;  %v184_v1 = vlaneseq  ;;  %v799_v4 = vmov 0  }
  0x2b   : > { %s597_s29 = sshll.u32 %s151_s26, 2  ;;  %s906_s30 = sshll.u32 %s1039_s28, 1 }
  0x2c   : > { %v909_v2 = vshrl.u32 %v184_v1, 7  ;;  %s153_s6 = scalar_lea.vmem [#allocation1], %s597_s29  ;;  %s179_s7 = sand.u32 7, %s777_s15  }
  0x2d   : > { %v173_v3 = vld [vmem:[%s153_s6] sm:$0xf]  ;;  %s913_s8 = scalar_lea.vmem [#allocation4], %s179_s7  ;;  %s916_s20 = scalar_lea.vmem [#allocation3], %s597_s29 }
  0x2e   : > { %174 = vst [vmem:[#allocation0] sm:$0xf] %v173_v3  ;;  %188 = vst [vmem:[#allocation9] sm:$0xff] %v909_v2  ;;  %s164_s9 = scalar_lea.vmem [#allocation5], %s906_s30  ;;  %s920_s11 = scalar_lea.vmem [#allocation7], %s179_s7 }
  0x2f   : > { %183 = vst [vmem:[%s913_s8] sm:$0x1] %v799_v4  ;;  %s922_s21 = smov 0  }
  0x35   : > { %v177_v5 = vld [vmem:[#allocation0] sm:$0xff] }
  0x36   : > { %178 = vst [vmem:[#allocation2] sm:$0xff] %v177_v5 }
  0x37 LB: >> { %vm204_vm0 = vcmp.lt.s32.totalorder %v909_v2, 4  ;;  %v929_v8 = vstv %s797_s21  ;;  %s245_s24 = ssub.s32 128, %s797_s21  ;;  %v251_v38 = vand.u32 127, %v184_v1  ;;  %v254_v40 = vld [vmem:[%s913_s8] ss:$0 sm:$0xff]  ;;  %s257_s25 = scalar_lea.vmem [#allocation2], %s797_s21  ;;  %s797_s21 = sphi %s922_s21, %s194_s21  }
  0x38   : >> { %vm203_vm1 = vcmp.ge.s32.totalorder %v909_v2, %v929_v8  ;;  %s263_s29 = scalar_lea.vmem [#allocation9], %s797_s21  ;;  %vm283_vm15 = vcmp.gt.s32.totalorder %v909_v2, %v929_v8  ;;  %s194_s21 = sadd.s32 1, %s797_s21  }
  0x39   : >> { %vm205_vm3 = vmand %vm203_vm1, %vm204_vm0  ;;  %vm275_vm12 = vcmp.gt.s32.totalorder %v251_v38, %v929_v8  ;;  %vm252_vm13 = vcmp.eq.s32.totalorder %v251_v38, %v929_v8  ;;  %v265_v42 = vld [vmem:[%s263_s29] ss:$0 sm:$0xff]  ;;  %p191_p13 = scmp.ge.s32.totalorder %s194_s21, 4  }
  0x3a   : >> { %vm287_vm1 = vmand %vm283_vm15, %vm252_vm13 }
  0x3d   : >> { %v199_v6 = vld [vmem:[#allocation2] sm:$0xff]  ;;  %v259_v41 = vld [vmem:[%s257_s25] ss:$0 sm:$0xff] }
  0x3e   : >> { %v200_v7 = vand.u32 2147483647, %v199_v6 }
  0x40   : >> { %vm601_vm2 = vcmp.gt.f32.partialorder %v200_v7, -inf }
  0x41   : >> { %vm207_vm4 = vmand %vm205_vm3, %vm601_vm2 }
  0x42   : >> { %v208_v9 = vsel %vm207_vm4, %v909_v2, %v929_v8  ;;  %v209_v10 = vsel %vm207_vm4, %v200_v7, -inf }
  0x43   : >> { %v210_v11 = vrot.slane %v209_v10, 1  ;;  %v211_v12 = vrot.slane %v208_v9, 1 }
  0x45   : >> { %vm212_vm5 = vcmp.ge.f32.partialorder %v210_v11, %v209_v10  ;;  %v215_v13 = vrot.slane %v210_v11, 1  ;;  %v216_v14 = vrot.slane %v211_v12, 1 }
  0x46   : >> { %v213_v15 = vsel %vm212_vm5, %v210_v11, %v209_v10  ;;  %v214_v16 = vsel %vm212_vm5, %v211_v12, %v208_v9 }
  0x47   : >> { %vm217_vm6 = vcmp.ge.f32.partialorder %v215_v13, %v213_v15  ;;  %v220_v17 = vrot.slane %v215_v13, 1  ;;  %v221_v18 = vrot.slane %v216_v14, 1 }
  0x48   : >> { %v218_v19 = vsel %vm217_vm6, %v215_v13, %v213_v15  ;;  %v219_v20 = vsel %vm217_vm6, %v216_v14, %v214_v16 }
  0x49   : >> { %vm222_vm7 = vcmp.ge.f32.partialorder %v220_v17, %v218_v19  ;;  %v225_v21 = vrot.slane %v220_v17, 1  ;;  %v226_v22 = vrot.slane %v221_v18, 1 }
  0x4a   : >> { %v223_v23 = vsel %vm222_vm7, %v220_v17, %v218_v19  ;;  %v224_v24 = vsel %vm222_vm7, %v221_v18, %v219_v20 }
  0x4b   : >> { %vm227_vm8 = vcmp.ge.f32.partialorder %v225_v21, %v223_v23  ;;  %v230_v25 = vrot.slane %v225_v21, 1  ;;  %v231_v26 = vrot.slane %v226_v22, 1 }
  0x4c   : >> { %v228_v27 = vsel %vm227_vm8, %v225_v21, %v223_v23  ;;  %v229_v28 = vsel %vm227_vm8, %v226_v22, %v224_v24 }
  0x4d   : >> { %vm232_vm9 = vcmp.ge.f32.partialorder %v230_v25, %v228_v27  ;;  %v235_v29 = vrot.slane %v230_v25, 1  ;;  %v236_v30 = vrot.slane %v231_v26, 1 }
  0x4e   : >> { %v233_v31 = vsel %vm232_vm9, %v230_v25, %v228_v27  ;;  %v234_v32 = vsel %vm232_vm9, %v231_v26, %v229_v28 }
  0x4f   : >> { %vm237_vm10 = vcmp.ge.f32.partialorder %v235_v29, %v233_v31  ;;  %v240_v33 = vrot.slane %v235_v29, 1  ;;  %v241_v34 = vrot.slane %v236_v30, 1 }
  0x50   : >> { %v238_v35 = vsel %vm237_vm10, %v235_v29, %v233_v31  ;;  %v239_v36 = vsel %vm237_vm10, %v236_v30, %v234_v32 }
  0x51   : >> { %vm242_vm11 = vcmp.ge.f32.partialorder %v240_v33, %v238_v35 }
  0x52   : >> { %v244_v37 = vsel %vm242_vm11, %v241_v34, %v239_v36 }
  0x53   : >> { %246 = vrot.lane.b32.xlu0 %v244_v37, %s245_s24  ;;  %s605_s24 = sshll.u32 (%p191_p13), %s781_s16, 1 }
  0xc5   : >> { %v247_v39 = vpop.permute.xlu0 %246 }
  0xc6   : >> { %611 = vpush %v247_v39 }
  0xf7   : >> { %s612_s26 = spop %611 }
  0xf8   : >> { %v253_v43 = vstv %s612_s26  ;;  %s258_s6 = scalar_lea.vmem [#allocation2], %s612_s26  ;;  %s264_s7 = scalar_lea.vmem [#allocation9], %s612_s26 }
  0xf9   : >> { %v260_v44 = vld [vmem:[%s258_s6] ss:$0 sm:$0xff]  ;;  %v255_v46 = vsel %vm252_vm13, %v253_v43, %v254_v40  ;;  %s375_s26 = sadd.s32 (%p191_p13), %s777_s15, %s605_s24 }
  0xfa   : >> { %v266_v45 = vld [vmem:[%s264_s7] ss:$0 sm:$0xff]  ;;  %261 = vst [vmem:[%s258_s6] sm:$0x1] %v259_v41  ;;  %vm269_vm14 = vcmp.ne.f32.partialorder %v260_v44, 0.0  ;;  %256 = vst [vmem:[%s913_s8] sm:$0x1] %v255_v46  ;;  %v276_v53 = vsel %vm275_vm12, %v260_v44, 0.0 }
  0xfb   : >> { %267 = vst [vmem:[%s264_s7] sm:$0x1] %v265_v42  ;;  %262 = vst [vmem:[%s257_s25] sm:$0x1] %v260_v44  ;;  %s412_s25 = sshrl.u32 (%p191_p13), %s777_s15, 3  ;;  %s606_s8 = sshll.u32 (%p191_p13), %s375_s26, 2 }
  0xfc   : >> { %268 = vst [vmem:[%s263_s29] sm:$0x1] %v266_v45  ;;  %vm270_vm0 = vmand %vm252_vm13, %vm269_vm14  ;;  %s961_s29 = sadd.s32 (%p191_p13), %s781_s16, %s412_s25  ;;  %s377_s10 = scalar_lea.vmem (%p191_p13), %s1036_s1, %s606_s8 }
  0xfd   : >> { %v271_v47 = vsel %vm270_vm0, %v260_v44, 1.0  ;;  %s607_s21 = sshll.u32 (%p191_p13), %s961_s29, 5  ;;  %s420_s15 = sshll.u32 (%p191_p13), %s164_s9, 4  ;;  %s421_s15 = int_to_ptr.vmem [resolvable:$true] %s420_s15 }
  0xfe   : >> { %v284_v48 = vsel %vm283_vm15, %v271_v47, 1.0  ;;  %s973_s23 = scalar_lea.hbm (%p191_p13), %s1037_s2, %s607_s21  ;;  %s1046_s16 = sand.u32 (%p191_p13), 1, %s769_s13  }
  0xff   : >> { %693 = vrcp.f32 %v284_v48  ;;  %s366_s24 = scalar_lea.sflag (%p191_p13), [#allocation6], %s1046_s16  ;;  %s695_s25 = scalar_lea.vmem (%p191_p13), %s421_s15, 32 }
 0x100   : > { %p696_p0 = scmp.ne.s32.totalorder (%p191_p13), %s421_s15, %s695_s25  ;;  %s800_s26 = smov (%p191_p13), [#allocation5]  }
 0x101   : > { %v352_v59 = vld [vmem:[#allocation4] sm:$0x3] (%p191_p13)  ;;  %s699_s6 = sshll.u32 (%p191_p13), %s800_s26, 4  ;;  %s700_s6 = int_to_ptr.vmem [resolvable:$false] %s699_s6 }
 0x102   : >> { %v280_v50 = vld [vmem:[#allocation2] sm:$0xff]  ;;  %354 = vst [vmem:[%s164_s9] sm:$0x3] (%p191_p13), %v352_v59  ;;  %p697_p1 = pnand (%p191_p13), %p696_p0, %p874_p4  ;;  %p702_p3 = scmp.lt.s32.totalorder (%p191_p13), %s421_s15, %s700_s6 }
 0x103   : > { %v294_v57 = vld [vmem:[#allocation9] sm:$0xff] (%p191_p13) }
 0x104   : > { %p698_p2 = pneg (%p191_p13), %p697_p1 }
 0x109   : >> { %v694_v49 = vpop.eup %693 }
 0x10a   : >> { %v286_v51 = vmul.f32 %v694_v49, %v280_v50 }
 0x10c   : >> { %v288_v52 = vsel %vm287_vm1, %v286_v51, 0.0 }
 0x10d   : >> { %289 = vadd.xlane.f32.xlu0 %v288_v52 }
 0x13a   : > { %310 = vxpose.xlu0.b32.start.end [1/1] (short) (narrow) (%p191_p13), %v294_v57, 8 }
 0x199   : > { %193 = sbr.rel (!%p191_p13) target bundleno = 55 (0x37), region = 202 }
 0x19a   : >> { %v290_v54 = vpop.xlane.xlu0 %289 }
 0x19b   : >> { %v291_v55 = vmul.f32 %v290_v54, %v276_v53 }
 0x19d   : >> { %v292_v56 = vsub.f32 %v286_v51, %v291_v55 }
 0x19f   : >> { %293 = vst [vmem:[#allocation2] sm:$0xff] %v292_v56 }
 0x1a6   : > { %v346_v58 = vld [vmem:[#allocation2] sm:$0xf] }
 0x1a7   : > { %348 = vst [vmem:[%s916_s20] sm:$0xf] %v346_v58 }
 0x1ae   : > { %v393_v60 = vld [vmem:[%s916_s20] sm:$0xf]  ;;  %s701_s20 = scalar_lea.vmem %s700_s6, 64 }
 0x1af   : > { %394 = vst [vmem:[%s377_s10] sm:$0xf] %v393_v60  ;;  %p703_p5 = scmp.lt.s32.totalorder %s701_s20, %s695_s25 }
 0x1b1   : > { %p704_p6 = por %p703_p5, %p702_p3 }
 0x1b3   : > { %p705_p8 = pnand %p704_p6, %p698_p2 }
 0x1b5   : > { %708 = shalt.err (!%p705_p8)
}
 0x1b6   : > { %s709_s0 = scalar_lea.hbm %s973_s23, 32  ;;  %s713_s10 = scalar_lea.hbm %s1037_s2, 64 }
 0x1b7   : > { %p710_p9 = scmp.ne.s32.totalorder %s973_s23, %s709_s0  ;;  %p714_p12 = scmp.lt.u32.totalorder %s973_s23, %s1037_s2 }
 0x1b8   : > { %p715_p13 = scmp.lt.u32.totalorder %s713_s10, %s709_s0  ;;  %p717_p1 = scmp.lt.u32.totalorder %s709_s0, %s973_s23 }
 0x1b9   : > { %p711_p10 = pnand %p710_p9, %p874_p4 }
 0x1ba   : > { %p716_p0 = por %p715_p13, %p714_p12 }
 0x1bb   : > { %p712_p11 = pneg %p711_p10 }
 0x1bc   : > { %p718_p2 = por %p717_p1, %p716_p0 }
 0x1be   : > { %p719_p3 = pnand %p718_p2, %p712_p11 }
 0x1c0   : > { %722 = shalt.err (!%p719_p3)
}
 0x1c1   : > { %613 = dma.vmem_to_hbm [thread:$0]  (%p874_p4), %s421_s15, 32, %s973_s23, %s366_s24   ;;  %v326_v61 = vpop.trf.xlu0 }
 0x1c2   : > { %342 = vst [vmem:[%s920_s11] sm:$0x1] %v326_v61  ;;  %s1047_s7 = scalar_lea.vmem [#allocation8], %s906_s30  ;;  %s608_s16 = sshll.u32 (%p874_p4), %s961_s29, 1 }
 0x1c3   : > { %s1048_s25 = scalar_lea.vmem (%p874_p4), [#allocation8], %s906_s30  ;;  %s430_s20 = scalar_lea.vmem (%p874_p4), %s1038_s3, %s608_s16 }
 0x1c4   : > { %426 = sbr.rel (!%p874_p4) target bundleno = 467 (0x1d3), region = 96 }
 0x1c9   : > { %v358_v62 = vld [vmem:[#allocation7] sm:$0x3] }
 0x1ca   : > { %360 = vst [vmem:[%s1047_s7] sm:$0x3] %v358_v62 }
 0x1d1   : > { %v446_v63 = vld [vmem:[%s1048_s25] sm:$0x3] }
 0x1d2   : > { %447 = vst [vmem:[%s430_s20] sm:$0x3] %v446_v63 }
 0x1d3 PF: > { %p619_p5 = scmp.ge.s32.totalorder %s793_s19, 2  ;;  %s474_s23 = sand.u32 1, %s765_s12  }
 0x1d4   : > { %s475_s27 = scalar_lea.sflag [#allocation6], %s474_s23 }
 0x1d5   : > { %p616_p6 = pnand %p619_p5, %p885_p7 }
 0x1d7   : > { %760 = dma.done.wait (!%p616_p6), %s475_s27, 32  }
 0x1d8   : > { %762 = vsyncadd (!%p616_p6), %s475_s27, 4294967264  ;;  %s13_s19 = sadd.s32 1, %s793_s19   ;;  %s1049_s30 = sld [smem:[#allocation11_spill]] }
 0x1d9   : > { %p10_p4 = scmp.ge.s32.totalorder %s13_s19, 6   ;;  %s1050_s12 = smov %s769_s13 }
 0x1da   : > { %s1051_s13 = smov %s773_s14  ;;  %s1052_s14 = smov %s890_s5 }
 0x1db   : > { %s1053_s15 = smov %s785_s17  ;;  %s1054_s16 = smov %s789_s18 }
 0x1dc   : > { %s1055_s17 = smov %s1058_s22  ;;  %12 = sbr.rel (!%p10_p4) target bundleno = 7 (0x7), region = 213 }
 0x1de   : > { %s1056_s18 = smov %s1049_s30 }
 0x1e3   :  { %487 = vsyncpa [#allocation6], 1 }
 0x1e4   :  { %489 = vsyncpa [#allocation6 + $0x1], 1 }

// kernel: custom-call.13
= control target key start
LH: loop header
LB: loop body
LE: loop exit
PB: predicated region body
PF: predicated region fallthrough
CT: control target
= control target key end

     0   :  { %s408_s6 = smov 0   ;;  %s410_s7 = smov 0   ;;  %s477_s0 = inlined_call_operand.vmem [shape: f32[2,2,1,4,4], index: 0, kind: input, shape index: {}]   ;;  %s478_s1 = inlined_call_operand.vmem [shape: f32[2,2,1,4,4], index: 1, kind: output, shape index: {}]  }
   0x1   :  { %s412_s8 = smov 0   ;;  %s414_s9 = smov 0  }
   0x2   :  { %s416_s10 = smov 0  }
   0x3 LB: > { %s300_s11 = sadd.s32 4294967295, %s395_s10   ;;  %s36_s12 = sadd.s32 1, %s387_s8  ;;  %s395_s10 = sphi %s416_s10, %s7_s10   ;;  %s391_s9 = sphi %s414_s9, %s482_s9   ;;  %s387_s8 = sphi %s412_s8, %s481_s8   ;;  %s383_s7 = sphi %s410_s7, %s480_s7   ;;  %s379_s6 = sphi %s408_s6, %s479_s6  }
   0x4   : > { %p38_p0 = scmp.ge.s32.totalorder %s36_s12, 2  ;;  %s40_s13 = sadd.s32 1, %s391_s9 }
   0x5   : > { %p302_p2 = scmp.ge.s32.totalorder %s395_s10, 4 }
   0x6   : > { %s484_s12 = smov (%p38_p0, %s36_s12), 0  ;;  %s486_s13 = smov (!%p38_p0, %s40_s13), %s391_s9 }
   0x7   : > { %p42_p1 = scmp.ge.s32.totalorder %s486_s13, 2  ;;  %54 = sbr.rel (%p302_p2) target bundleno = 15 (0xf), region = 16 }
   0x8   : > { %s56_s14 = sand.u32 (!%p302_p2), 1, %s395_s10   ;;  %s304_s15 = sshll.u32 (!%p302_p2), %s391_s9, 1 }
   0x9   : > { %s488_s13 = smov (%p42_p1, %s486_s13), 0  ;;  %s303_s16 = sshll.u32 (!%p302_p2), %s56_s14, 2 }
   0xa   : > { %s63_s17 = sadd.s32 (!%p302_p2), %s387_s8, %s304_s15  ;;  %s58_s22 = scalar_lea.vmem (!%p302_p2), [#allocation1], %s303_s16 }
   0xb   : > { %s305_s18 = sshll.u32 (!%p302_p2), %s63_s17, 2 }
   0xc   : > { %s65_s21 = scalar_lea.vmem (!%p302_p2), %s477_s0, %s305_s18 }
   0xd   : > { %v81_v0 = vld [vmem:[%s65_s21] sm:$0xf] (!%p302_p2) }
   0xe   : > { %82 = vst [vmem:[%s58_s22] sm:$0xf] %v81_v0 }
   0xf PF: > { %p306_p3 = scmp.ge.s32.totalorder %s395_s10, 1  ;;  %p98_p4 = scmp.lt.s32.totalorder %s395_s10, 5 }
  0x11   : > { %p99_p5 = pnand %p306_p3, %p98_p4 }
  0x13   : > { %102 = sbr.rel (%p99_p5) target bundleno = 659 (0x293), region = 50 }
  0x1a   : > { %s450_s23 = sand.u32 1, %s300_s11   ;;  %v120_v1 = vlaneseq  ;;  %v397_v11 = vmov -1.0   ;;  %s310_s26 = sshll.u32 %s383_s7, 1 }
  0x1b   : > { %s307_s24 = sshll.u32 %s450_s23, 2  ;;  %s197_s27 = sadd.s32 %s379_s6, %s310_s26 }
  0x1c   : > { %s111_s25 = scalar_lea.vmem [#allocation1], %s307_s24  ;;  %v121_v3 = vand.u32 127, %v120_v1  ;;  %v124_v4 = vshrl.u32 %v120_v1, 7  ;;  %s115_s28 = scalar_lea.vmem [#allocation3], %s307_s24 }
  0x1d   : > { %v118_v2 = vld [vmem:[%s111_s25] sm:$0xf]  ;;  %s311_s29 = sshll.u32 %s197_s27, 2 }
  0x1e   : > { %119 = vst [vmem:[#allocation0] sm:$0xf] %v118_v2  ;;  %vm122_vm0 = vcmp.lt.s32.totalorder %v121_v3, 4  ;;  %vm131_vm1 = vcmp.ge.s32.totalorder %v124_v4, %v121_v3  ;;  %vm126_vm2 = vcmp.eq.s32.totalorder %v124_v4, %v121_v3  ;;  %vm145_vm4 = vcmp.eq.s32.totalorder %v121_v3, 0  ;;  %s199_s3 = scalar_lea.vmem %s478_s1, %s311_s29 }
  0x1f   : > { %vm132_vm3 = vmand %vm131_vm1, %vm122_vm0  ;;  %vm142_vm5 = vcmp.eq.s32.totalorder %v121_v3, %v124_v4  ;;  %v146_v12 = vsel %vm145_vm4, 1.0, %v397_v11  ;;  %vm153_vm6 = vcmp.eq.s32.totalorder %v121_v3, 1  ;;  %vm163_vm7 = vcmp.eq.s32.totalorder %v121_v3, 2 }
  0x20   : > { %v147_v13 = vsel %vm142_vm5, %v146_v12, 0.0  ;;  %vm173_vm8 = vcmp.eq.s32.totalorder %v121_v3, 3 }
  0x25   : > { %v127_v5 = vld [vmem:[#allocation0] sm:$0xff] }
  0x26   : > { %v128_v6 = vsel %vm126_vm2, %v127_v5, 0.0  ;;  %v133_v7 = vsel %vm132_vm3, %v127_v5, 0.0 }
  0x27   : > { %129 = vadd.xlane.f32.xlu0 %v128_v6 }
  0xb4   : > { %v130_v8 = vpop.xlane.xlu0 %129 }
  0xb5   : > { %355 = vrcp.f32 %v130_v8  ;;  %vm180_vm9 = vweird.f32 %v130_v8 }
  0xbf   : > { %v356_v9 = vpop.eup %355 }
  0xc0   : > { %v135_v10 = vmul.f32 %v356_v9, %v133_v7 }
  0xc2   : > { %136 = vst [vmem:[#allocation4] sm:$0xff] %v135_v10 }
  0xc9   : > { %v149_v14 = vld [vmem:[#allocation4 + $0x1] ss:$0 sm:$0xff]  ;;  %v159_v17 = vld [vmem:[#allocation4 + $0x2] ss:$0 sm:$0xff]  ;;  %v169_v22 = vld [vmem:[#allocation4 + $0x3] ss:$0 sm:$0xff] }
  0xca   : > { %v150_v15 = vxor.u32 2147483648, %v149_v14  ;;  %v160_v19 = vxor.u32 2147483648, %v159_v17  ;;  %v170_v24 = vxor.u32 2147483648, %v169_v22 }
  0xcc   : > { %v154_v16 = vmul.f32 %v150_v15, %v147_v13 }
  0xce   : > { %155 = vadd.xlane.f32.xlu0 %v154_v16 }
 0x15b   : > { %v156_v18 = vpop.xlane.xlu0 %155 }
 0x15c   : > { %v157_v20 = vsel %vm153_vm6, %v156_v18, %v147_v13 }
 0x15d   : > { %v164_v21 = vmul.f32 %v160_v19, %v157_v20 }
 0x15f   : > { %165 = vadd.xlane.f32.xlu1 %v164_v21 }
 0x1ec   : > { %v166_v23 = vpop.xlane.xlu1 %165 }
 0x1ed   : > { %v167_v25 = vsel %vm163_vm7, %v166_v23, %v157_v20 }
 0x1ee   : > { %v174_v26 = vmul.f32 %v170_v24, %v167_v25 }
 0x1f0   : > { %175 = vadd.xlane.f32.xlu1 %v174_v26 }
 0x27d   : > { %v176_v27 = vpop.xlane.xlu1 %175 }
 0x27e   : > { %v177_v28 = vsel %vm173_vm8, %v176_v27, %v167_v25 }
 0x27f   : > { %v179_v29 = vmul.f32 %v356_v9, %v177_v28 }
 0x281   : > { %v181_v30 = vsel %vm180_vm9, %v177_v28, %v179_v29 }
 0x282   : > { %182 = vst [vmem:[#allocation2] sm:$0xff] %v181_v30 }
 0x289   : > { %v186_v31 = vld [vmem:[#allocation2] sm:$0xf] }
 0x28a   : > { %188 = vst [vmem:[%s115_s28] sm:$0xf] %v186_v31 }
 0x291   : > { %v215_v32 = vld [vmem:[%s115_s28] sm:$0xf] }
 0x292   : > { %216 = vst [vmem:[%s199_s3] sm:$0xf] %v215_v32 }
 0x293 PF: > { %s7_s10 = sadd.s32 1, %s395_s10   ;;  %s479_s6 = smov %s387_s8 }
 0x294   : > { %p4_p6 = scmp.ge.s32.totalorder %s7_s10, 6   ;;  %s480_s7 = smov %s391_s9 }
 0x295   : > { %s481_s8 = smov %s484_s12  ;;  %s482_s9 = smov %s488_s13 }
 0x296   :  { %6 = sbr.rel (!%p4_p6) target bundleno = 3 (0x3), region = 113 }

// kernel: custom-call.12
= control target key start
LH: loop header
LB: loop body
LE: loop exit
PB: predicated region body
PF: predicated region fallthrough
CT: control target
= control target key end

     0   :  { %s407_s6 = smov 0   ;;  %s409_s7 = smov 0   ;;  %s476_s0 = inlined_call_operand.vmem [shape: f32[2,2,1,4,4], index: 0, kind: input, shape index: {}]   ;;  %s477_s1 = inlined_call_operand.vmem [shape: f32[2,2,1,4,4], index: 1, kind: output, shape index: {}]  }
   0x1   :  { %s411_s8 = smov 0   ;;  %s413_s9 = smov 0  }
   0x2   :  { %s415_s10 = smov 0  }
   0x3 LB: > { %s299_s11 = sadd.s32 4294967295, %s394_s10   ;;  %s36_s12 = sadd.s32 1, %s386_s8  ;;  %s394_s10 = sphi %s415_s10, %s7_s10   ;;  %s390_s9 = sphi %s413_s9, %s481_s9   ;;  %s386_s8 = sphi %s411_s8, %s480_s8   ;;  %s382_s7 = sphi %s409_s7, %s479_s7   ;;  %s378_s6 = sphi %s407_s6, %s478_s6  }
   0x4   : > { %p38_p0 = scmp.ge.s32.totalorder %s36_s12, 2  ;;  %s40_s13 = sadd.s32 1, %s390_s9 }
   0x5   : > { %p301_p2 = scmp.ge.s32.totalorder %s394_s10, 4 }
   0x6   : > { %s483_s12 = smov (%p38_p0, %s36_s12), 0  ;;  %s485_s13 = smov (!%p38_p0, %s40_s13), %s390_s9 }
   0x7   : > { %p42_p1 = scmp.ge.s32.totalorder %s485_s13, 2  ;;  %54 = sbr.rel (%p301_p2) target bundleno = 15 (0xf), region = 16 }
   0x8   : > { %s56_s14 = sand.u32 (!%p301_p2), 1, %s394_s10   ;;  %s303_s15 = sshll.u32 (!%p301_p2), %s390_s9, 1 }
   0x9   : > { %s487_s13 = smov (%p42_p1, %s485_s13), 0  ;;  %s302_s16 = sshll.u32 (!%p301_p2), %s56_s14, 2 }
   0xa   : > { %s63_s17 = sadd.s32 (!%p301_p2), %s386_s8, %s303_s15  ;;  %s58_s22 = scalar_lea.vmem (!%p301_p2), [#allocation1], %s302_s16 }
   0xb   : > { %s304_s18 = sshll.u32 (!%p301_p2), %s63_s17, 2 }
   0xc   : > { %s65_s21 = scalar_lea.vmem (!%p301_p2), %s476_s0, %s304_s18 }
   0xd   : > { %v81_v0 = vld [vmem:[%s65_s21] sm:$0xf] (!%p301_p2) }
   0xe   : > { %82 = vst [vmem:[%s58_s22] sm:$0xf] %v81_v0 }
   0xf PF: > { %p305_p3 = scmp.ge.s32.totalorder %s394_s10, 1  ;;  %p98_p4 = scmp.lt.s32.totalorder %s394_s10, 5 }
  0x11   : > { %p99_p5 = pnand %p305_p3, %p98_p4 }
  0x13   : > { %102 = sbr.rel (%p99_p5) target bundleno = 659 (0x293), region = 50 }
  0x1a   : > { %s449_s23 = sand.u32 1, %s299_s11   ;;  %v120_v1 = vlaneseq  ;;  %v396_v11 = vmov -1.0   ;;  %s309_s26 = sshll.u32 %s382_s7, 1 }
  0x1b   : > { %s306_s24 = sshll.u32 %s449_s23, 2  ;;  %s196_s27 = sadd.s32 %s378_s6, %s309_s26 }
  0x1c   : > { %s111_s25 = scalar_lea.vmem [#allocation1], %s306_s24  ;;  %v121_v3 = vand.u32 127, %v120_v1  ;;  %v124_v4 = vshrl.u32 %v120_v1, 7  ;;  %s115_s28 = scalar_lea.vmem [#allocation3], %s306_s24 }
  0x1d   : > { %v118_v2 = vld [vmem:[%s111_s25] sm:$0xf]  ;;  %s310_s29 = sshll.u32 %s196_s27, 2 }
  0x1e   : > { %119 = vst [vmem:[#allocation0] sm:$0xf] %v118_v2  ;;  %vm122_vm0 = vcmp.lt.s32.totalorder %v121_v3, 4  ;;  %vm131_vm1 = vcmp.le.s32.totalorder %v124_v4, %v121_v3  ;;  %vm126_vm2 = vcmp.eq.s32.totalorder %v124_v4, %v121_v3  ;;  %vm145_vm4 = vcmp.eq.s32.totalorder %v121_v3, 3  ;;  %s198_s3 = scalar_lea.vmem %s477_s1, %s310_s29 }
  0x1f   : > { %vm132_vm3 = vmand %vm131_vm1, %vm122_vm0  ;;  %vm142_vm5 = vcmp.eq.s32.totalorder %v121_v3, %v124_v4  ;;  %v146_v12 = vsel %vm145_vm4, 1.0, %v396_v11  ;;  %vm153_vm6 = vcmp.eq.s32.totalorder %v121_v3, 2  ;;  %vm163_vm7 = vcmp.eq.s32.totalorder %v121_v3, 1 }
  0x20   : > { %v147_v13 = vsel %vm142_vm5, %v146_v12, 0.0  ;;  %vm172_vm8 = vcmp.eq.s32.totalorder %v121_v3, 0 }
  0x25   : > { %v127_v5 = vld [vmem:[#allocation0] sm:$0xff] }
  0x26   : > { %v128_v6 = vsel %vm126_vm2, %v127_v5, 0.0  ;;  %v133_v7 = vsel %vm132_vm3, %v127_v5, 0.0 }
  0x27   : > { %129 = vadd.xlane.f32.xlu0 %v128_v6 }
  0xb4   : > { %v130_v8 = vpop.xlane.xlu0 %129 }
  0xb5   : > { %354 = vrcp.f32 %v130_v8  ;;  %vm179_vm9 = vweird.f32 %v130_v8 }
  0xbf   : > { %v355_v9 = vpop.eup %354 }
  0xc0   : > { %v135_v10 = vmul.f32 %v355_v9, %v133_v7 }
  0xc2   : > { %136 = vst [vmem:[#allocation4] sm:$0xff] %v135_v10 }
  0xc9   : > { %v149_v14 = vld [vmem:[#allocation4 + $0x2] ss:$0 sm:$0xff]  ;;  %v159_v17 = vld [vmem:[#allocation4 + $0x1] ss:$0 sm:$0xff]  ;;  %v168_v22 = vld [vmem:[#allocation4] ss:$0 sm:$0xff] }
  0xca   : > { %v150_v15 = vxor.u32 2147483648, %v149_v14  ;;  %v160_v19 = vxor.u32 2147483648, %v159_v17  ;;  %v169_v24 = vxor.u32 2147483648, %v168_v22 }
  0xcc   : > { %v154_v16 = vmul.f32 %v150_v15, %v147_v13 }
  0xce   : > { %155 = vadd.xlane.f32.xlu0 %v154_v16 }
 0x15b   : > { %v156_v18 = vpop.xlane.xlu0 %155 }
 0x15c   : > { %v157_v20 = vsel %vm153_vm6, %v156_v18, %v147_v13 }
 0x15d   : > { %v164_v21 = vmul.f32 %v160_v19, %v157_v20 }
 0x15f   : > { %165 = vadd.xlane.f32.xlu1 %v164_v21 }
 0x1ec   : > { %v166_v23 = vpop.xlane.xlu1 %165 }
 0x1ed   : > { %v167_v25 = vsel %vm163_vm7, %v166_v23, %v157_v20 }
 0x1ee   : > { %v173_v26 = vmul.f32 %v169_v24, %v167_v25 }
 0x1f0   : > { %174 = vadd.xlane.f32.xlu1 %v173_v26 }
 0x27d   : > { %v175_v27 = vpop.xlane.xlu1 %174 }
 0x27e   : > { %v176_v28 = vsel %vm172_vm8, %v175_v27, %v167_v25 }
 0x27f   : > { %v178_v29 = vmul.f32 %v355_v9, %v176_v28 }
 0x281   : > { %v180_v30 = vsel %vm179_vm9, %v176_v28, %v178_v29 }
 0x282   : > { %181 = vst [vmem:[#allocation2] sm:$0xff] %v180_v30 }
 0x289   : > { %v185_v31 = vld [vmem:[#allocation2] sm:$0xf] }
 0x28a   : > { %187 = vst [vmem:[%s115_s28] sm:$0xf] %v185_v31 }
 0x291   : > { %v214_v32 = vld [vmem:[%s115_s28] sm:$0xf] }
 0x292   : > { %215 = vst [vmem:[%s198_s3] sm:$0xf] %v214_v32 }
 0x293 PF: > { %s7_s10 = sadd.s32 1, %s394_s10   ;;  %s478_s6 = smov %s386_s8 }
 0x294   : > { %p4_p6 = scmp.ge.s32.totalorder %s7_s10, 6   ;;  %s479_s7 = smov %s390_s9 }
 0x295   : > { %s480_s8 = smov %s483_s12  ;;  %s481_s9 = smov %s487_s13 }
 0x296   :  { %6 = sbr.rel (!%p4_p6) target bundleno = 3 (0x3), region = 112 }

// kernel: fwd_fn.39
= control target key start
LH: loop header
LB: loop body
LE: loop exit
PB: predicated region body
PF: predicated region fallthrough
CT: control target
= control target key end

     0   :  { %vm34_vm0 = vcmask 1042432   ;;  %v112_v0 = vmov 0.0   ;;  %vm113_vm1 = vmmov 0   ;;  %vm30_vm2 = vcmask 48128   ;;  %s149_s1 = inlined_call_operand.vmem [shape: bf16[6,64], index: 1, kind: input, shape index: {}]   ;;  %s150_s0 = inlined_call_operand.vmem [shape: bf16[16,6], index: 0, kind: input, shape index: {}]   ;;  %s151_s2 = inlined_call_operand.vmem [shape: f32[1,64], index: 2, kind: input, shape index: {}]   ;;  %s152_s3 = inlined_call_operand.vmem [shape: bf16[16,64], index: 3, kind: output, shape index: {}]  }
   0x1   :  { %103 = vmatprep.subr.bf16.mxu0 %v112_v0  ;;  %v17_v1 = vld [vmem:[%s149_s1] sm:$0x7]  ;;  %105 = vmatprep.mubr.msk.bf16.mxu0 %vm113_vm1, %v112_v0  ;;  %vm87_vm3 = vcmask 519168  }
   0x2   :  { %v36_v2 = vsel %vm34_vm0, %v17_v1, 0  ;;  %v111_v3 = vld [vmem:[%s150_s0] sm:$0xff]  }
   0x3   :  { %104 = vmatpush3.bf16.msra.mxu0 %v36_v2  ;;  %v94_v4 = vld [vmem:[%s151_s2] ss:$0 sm:$0xff] }
   0x6   :  { %106 = vmatmul.mubr.msk.bf16.vlgmr.msra.gmra.mrb[0].mxu0 %vm30_vm2, %v111_v3 }
  0xd9   :  { %v72_v5 = vpop.f32.mrb[0].mxu0 }
  0xda   :  { %v73_v6 = vadd.f32 %v94_v4, %v72_v5  ;;  %v107_v7 = vpop.f32.mrb[1].mxu0 }
  0xdb   :  { %v75_v8 = vpop.f32.mrb[2].mxu0 }
  0xdc   :  { %v99_v9 = vpack.c.bf16 %v73_v6, %v73_v6  ;;  %v76_v10 = vadd.f32 %v94_v4, %v75_v8  ;;  %v108_v11 = vpop.f32.mrb[3].mxu0 }
  0xde   :  { %88 = vst.msk [vmem:[%s152_s3] sm:$0xf] %vm87_vm3, %v99_v9  ;;  %v100_v12 = vpack.c.bf16 %v76_v10, %v76_v10 }
  0xe0   :  { %89 = vst.msk [vmem:[%s152_s3 + $0x4] sm:$0xf] %vm87_vm3, %v100_v12 }

// kernel: fwd_fn.38
= control target key start
LH: loop header
LB: loop body
LE: loop exit
PB: predicated region body
PF: predicated region fallthrough
CT: control target
= control target key end

     0   :  { %vm34_vm0 = vcmask 1040384   ;;  %vm35_vm1 = vcmask 1041408   ;;  %v116_v0 = vmov 0.0   ;;  %v117_v2 = vmov 65535   ;;  %s154_s1 = inlined_call_operand.vmem [shape: bf16[3,64], index: 1, kind: input, shape index: {}]   ;;  %s155_s0 = inlined_call_operand.vmem [shape: bf16[16,3], index: 0, kind: input, shape index: {}]   ;;  %s156_s2 = inlined_call_operand.vmem [shape: f32[1,64], index: 2, kind: input, shape index: {}]   ;;  %s157_s3 = inlined_call_operand.vmem [shape: bf16[16,64], index: 3, kind: output, shape index: {}]  }
   0x1   :  { %106 = vmatprep.subr.bf16.mxu0 %v116_v0  ;;  %v17_v1 = vld [vmem:[%s154_s1] sm:$0x3]  ;;  %v36_v3 = vsel %vm34_vm0, 4294967295, %v117_v2  ;;  %vm118_vm2 = vmmov 0   ;;  %vm30_vm3 = vcmask 23552   ;;  %vm90_vm4 = vcmask 519168  }
   0x2   :  { %v37_v4 = vsel %vm35_vm1, %v36_v3, 0  ;;  %108 = vmatprep.mubr.msk.bf16.mxu0 %vm118_vm2, %v116_v0  ;;  %v115_v6 = vld [vmem:[%s155_s0] sm:$0xff]  }
   0x3   :  { %v39_v5 = vand.u32 %v37_v4, %v17_v1  ;;  %v97_v7 = vld [vmem:[%s156_s2] ss:$0 sm:$0xff] }
   0x5   :  { %107 = vmatpush3.bf16.msra.mxu0 %v39_v5 }
   0x8   :  { %109 = vmatmul.mubr.msk.bf16.vlgmr.msra.gmra.mrb[0].mxu0 %vm30_vm3, %v115_v6 }
  0xdb   :  { %v75_v8 = vpop.f32.mrb[0].mxu0 }
  0xdc   :  { %v76_v9 = vadd.f32 %v97_v7, %v75_v8  ;;  %v110_v10 = vpop.f32.mrb[1].mxu0 }
  0xdd   :  { %v78_v11 = vpop.f32.mrb[2].mxu0 }
  0xde   :  { %v102_v12 = vpack.c.bf16 %v76_v9, %v76_v9  ;;  %v79_v13 = vadd.f32 %v97_v7, %v78_v11  ;;  %v111_v14 = vpop.f32.mrb[3].mxu0 }
  0xe0   :  { %91 = vst.msk [vmem:[%s157_s3] sm:$0xf] %vm90_vm4, %v102_v12  ;;  %v103_v15 = vpack.c.bf16 %v79_v13, %v79_v13 }
  0xe2   :  { %92 = vst.msk [vmem:[%s157_s3 + $0x4] sm:$0xf] %vm90_vm4, %v103_v15 }

// kernel: fwd_fn.40
= control target key start
LH: loop header
LB: loop body
LE: loop exit
PB: predicated region body
PF: predicated region fallthrough
CT: control target
= control target key end

     0   :  { %vm24_vm0 = vcmask 523264   ;;  %v212_v10 = vmov 0   ;;  %v60_v30 = vlaneseq  ;;  %vm168_vm1 = vcmask 1043456   ;;  %s280_s0 = inlined_call_operand.vmem [shape: bf16[16,64], index: 0, kind: input, shape index: {}]   ;;  %s281_s2 = inlined_call_operand.vmem [shape: bf16[64,192], index: 2, kind: input, shape index: {}]   ;;  %s282_s1 = inlined_call_operand.vmem [shape: f32[1,64], index: 1, kind: input, shape index: {}]   ;;  %s283_s3 = inlined_call_operand.vmem [shape: f32[1,192], index: 3, kind: input, shape index: {}]   ;;  %s284_s4 = inlined_call_operand.vmem [shape: bf16[16,192], index: 4, kind: output, shape index: {}]  }
   0x1   :  { %v192_v0 = vld [vmem:[%s280_s0] sm:$0xff]   ;;  %v199_v9 = vld [vmem:[%s281_s2 + $0x14] ss:$8 sps:$4 sm:$0xff]   ;;  %145 = vmatprep.mubr.bf16.mxu0 %v212_v10  ;;  %v201_v11 = vld [vmem:[%s281_s2 + $0x10] ss:$8 sps:$4 sm:$0xff]   ;;  %vm169_vm2 = vcmask 523268  }
   0x2   :  { %v193_v1 = vunpack.c.l.bf16 %v192_v0  ;;  %v194_v2 = vunpack.c.h.bf16 %v192_v0  ;;  %v196_v7 = vld [vmem:[%s281_s2 + $0x4] ss:$8 sps:$4 sm:$0xff]   ;;  %v198_v8 = vld [vmem:[%s281_s2] ss:$8 sps:$4 sm:$0xff]   ;;  %v205_v14 = vld [vmem:[%s281_s2 + $0x34] ss:$8 sps:$4 sm:$0xff]  }
   0x3   :  { %113 = vmatprep.subr.bf16.mxu0 %v196_v7  ;;  %v202_v12 = vld [vmem:[%s281_s2 + $0x24] ss:$8 sps:$4 sm:$0xff]   ;;  %v204_v13 = vld [vmem:[%s281_s2 + $0x20] ss:$8 sps:$4 sm:$0xff]   ;;  %v207_v15 = vld [vmem:[%s281_s2 + $0x30] ss:$8 sps:$4 sm:$0xff]  }
   0x4   :  { %v22_v3 = vmul.f32 %v193_v1, %v193_v1  ;;  %v23_v4 = vmul.f32 %v194_v2, %v194_v2  ;;  %114 = vmatpush1.bf16.msra.mxu0 %v198_v8  ;;  %v177_v25 = vld [vmem:[%s282_s1] ss:$0 sm:$0xff]  ;;  %v61_v31 = vshrl.u32 %v60_v30, 7  ;;  %vm170_vm3 = vmor %vm169_vm2, %vm168_vm1 }
   0x5   :  { %115 = vmatprep.subr.bf16.mxu0 %v199_v9  ;;  %v58_v33 = vld [vmem:[%s283_s3] sm:$0x3] }
   0x6   :  { %v25_v5 = vsel %vm24_vm0, %v22_v3, 0.0  ;;  %v28_v6 = vsel %vm24_vm0, %v23_v4, 0.0  ;;  %v62_v32 = vsub.s32 0, %v61_v31  ;;  %v66_v34 = vsub.s32 1, %v61_v31 }
   0x7   :  { %26 = vadd.xlane.f32.xlu0 %v25_v5 }
   0x8   :  { %116 = vmatpush1.bf16.msra.mxu0 %v201_v11  ;;  %v63_v35 = vrot.slane %v58_v33, %v62_v32  ;;  %v67_v36 = vrot.slane %v58_v33, %v66_v34 }
   0x9   :  { %117 = vmatprep.subr.bf16.mxu0 %v202_v12 }
   0xb   :  { %29 = vadd.xlane.f32.xlu0 %v28_v6 }
   0xc   :  { %118 = vmatpush1.bf16.msra.mxu0 %v204_v13 }
   0xd   :  { %119 = vmatprep.subr.bf16.mxu0 %v205_v14 }
  0x10   :  { %120 = vmatpush1.bf16.msra.mxu0 %v207_v15 }
  0x94   :  { %v27_v16 = vpop.xlane.xlu0 %26 }
  0x95   :  { %v32_v17 = vmul.f32 0.015625, %v27_v16 }
  0x97   :  { %v34_v18 = vadd.f32 1e-05, %v32_v17 }
  0x98   :  { %v30_v19 = vpop.xlane.xlu0 %29 }
  0x99   :  { %208 = vrsqrt.f32 %v34_v18  ;;  %v33_v20 = vmul.f32 0.015625, %v30_v19 }
  0x9b   :  { %v35_v21 = vadd.f32 1e-05, %v33_v20 }
  0x9d   :  { %210 = vrsqrt.f32 %v35_v21 }
  0xa3   :  { %v209_v22 = vpop.eup %208 }
  0xa4   :  { %v38_v23 = vmul.f32 %v209_v22, %v193_v1 }
  0xa6   :  { %v47_v27 = vmul.f32 %v177_v25, %v38_v23 }
  0xa7   :  { %v211_v24 = vpop.eup %210 }
  0xa8   :  { %v39_v26 = vmul.f32 %v211_v24, %v194_v2 }
  0xaa   :  { %v48_v28 = vmul.f32 %v177_v25, %v39_v26 }
  0xac   :  { %v49_v29 = vpack.c.bf16 %v48_v28, %v47_v27 }
  0xae   :  { %186 = vmatmul.mubr.msk.bf16.vlgmr.msra.gmra.mrb[0].mxu0 %vm24_vm0, %v49_v29 }
 0x181   :  { %v147_v37 = vpop.f32.mrb[0].mxu0 }
 0x182   :  { %v148_v38 = vadd.f32 %v147_v37, %v63_v35  ;;  %v149_v39 = vpop.f32.mrb[1].mxu0 }
 0x183   :  { %v150_v40 = vadd.f32 %v149_v39, %v67_v36  ;;  %v151_v41 = vpop.f32.mrb[2].mxu0 }
 0x184   :  { %v152_v42 = vadd.f32 %v151_v41, %v63_v35  ;;  %v153_v43 = vpop.f32.mrb[3].mxu0 }
 0x185   :  { %v189_v44 = vpack.c.bf16 %v150_v40, %v148_v38  ;;  %v154_v45 = vadd.f32 %v153_v43, %v67_v36 }
 0x187   :  { %171 = vst.msk [vmem:[%s284_s4] sm:$0xff] %vm170_vm3, %v189_v44  ;;  %v190_v46 = vpack.c.bf16 %v154_v45, %v152_v42 }
 0x189   :  { %172 = vst.msk [vmem:[%s284_s4 + $0x8] sm:$0xff] %vm170_vm3, %v190_v46 }

// kernel: fwd_fn.41
= control target key start
LH: loop header
LB: loop body
LE: loop exit
PB: predicated region body
PF: predicated region fallthrough
CT: control target
= control target key end

     0   :  { %s903_s12 = smov 0   ;;  %s998_s0 = inlined_call_operand.vmem [shape: bf16[2,8,64], index: 0, kind: input, shape index: {}]   ;;  %s999_s1 = inlined_call_operand.vmem [shape: bf16[2,8,64], index: 1, kind: input, shape index: {}]   ;;  %s1000_s2 = inlined_call_operand.vmem [shape: bf16[2,8,64], index: 2, kind: input, shape index: {}]   ;;  %s1001_s3 = inlined_call_operand.vmem [shape: bf16[2,8,64], index: 3, kind: output, shape index: {}]  }
   0x1 LB: > { %s748_s13 = sadd.s32 4294967295, %s873_s12   ;;  %p752_p0 = scmp.ge.s32.totalorder %s873_s12, 1  ;;  %s873_s12 = sphi %s903_s12, %s13_s12  }
   0x2   : > { %p154_p1 = scmp.lt.s32.totalorder %s873_s12, 3 }
   0x4   : > { %p155_p2 = pnand %p752_p0, %p154_p1 }
   0x5   : > { %p184_p3 = scmp.lt.s32.totalorder (!%p155_p2), %s748_s13, 1  ;;  %v875_v0 = vmov (!%p155_p2), 0.0   ;;  %vm876_vm0 = vmmov (!%p155_p2), 0   ;;  %vm207_vm1 = vcmask (!%p155_p2), 130048   ;;  %vm254_vm2 = vcmask (!%p155_p2), 64512   ;;  %s877_s21 = smov (!%p155_p2), 112  }
   0x6   : > { %158 = sbr.rel (%p155_p2) target bundleno = 1473 (0x5c1), region = 32  ;;  %785 = vmatprep.subr.bf16.mxu0 (!%p155_p2), %v875_v0  ;;  %787 = vmatprep.mubr.msk.bf16.mxu0 (!%p155_p2), %vm876_vm0, %v875_v0  ;;  %s878_s22 = smov (!%p155_p2), 96   ;;  %vm270_vm3 = vcmask (!%p155_p2), 1043456   ;;  %vm664_vm4 = vcmask (!%p155_p2), 261120   ;;  %vm666_vm5 = vcmask (!%p155_p2), 392192   ;;  %vm669_vm6 = vcmask (!%p155_p2), 519168  }
   0x7   : > { %791 = vmatprep.subr.bf16.mxu1 (!%p155_p2), %v875_v0  ;;  %793 = vmatprep.mubr.msk.bf16.mxu1 (!%p155_p2), %vm876_vm0, %v875_v0  ;;  %s879_s23 = smov (!%p155_p2), 80   ;;  %s880_s27 = smov (!%p155_p2), 16  }
   0x8   : > { %s881_s28 = smov (!%p155_p2), 32   ;;  %s882_s29 = smov (!%p155_p2), 48  }
   0xd   : > { %s1003_s13 = smov (!%p184_p3, %s748_s13), 1 }
   0xe   : > { %s917_s14 = sshll.u32 %s1003_s13, 2 }
   0xf   : > { %s191_s17 = scalar_lea.vmem %s999_s1, %s917_s14  ;;  %s187_s20 = scalar_lea.vmem %s998_s0, %s917_s14 }
  0x10   : > { %v202_v1 = vld [vmem:[%s191_s17] sm:$0xf]  ;;  %s195_s26 = scalar_lea.vmem %s1000_s2, %s917_s14  ;;  %s199_s5 = scalar_lea.vmem %s1001_s3, %s917_s14 }
  0x11   : > { %v201_v2 = vld [vmem:[%s187_s20] sm:$0xf]  ;;  %v212_v3 = vsel %vm207_vm1, %v202_v1, 0  ;;  %v759_v12 = vcombine.low %v202_v1, %v202_v1 }
  0x12   : > { %v204_v4 = vunpack.c.l.bf16 %v201_v2  ;;  %786 = vmatpush3.bf16.xpose.msra.mxu0 %v212_v3  ;;  %v943_v18 = vld [vmem:[%s195_s26] sm:$0xf] }
  0x13   : > { %803 = vmatprep.subr.bf16.mxu0 %v875_v0  ;;  %320 = vrot.lane.b32.xlu1 %v759_v12, %s877_s21  ;;  %v272_v19 = vsel %vm270_vm3, %v943_v18, 0  ;;  %v761_v62 = vcombine.low %v943_v18, %v943_v18 }
  0x14   : > { %v205_v5 = vmul.f32 0.25, %v204_v4  ;;  %792 = vmatpush3.bf16.msra.mxu1 %v272_v19 }
  0x15   : > { %797 = vmatprep.subr.bf16.mxu1 %v875_v0 }
  0x16   : > { %v206_v6 = vpack.c.bf16 %v205_v5, %v205_v5 }
  0x18   : > { %315 = vrot.lane.b32.xlu1 %v206_v6, %s877_s21 }
  0x19   : > { %788 = vmatmul.mubr.msk.bf16.vlgmr.msra.gmra.mrb[0].mxu0 %vm207_vm1, %v206_v6 }
  0x1a   : > { %805 = vmatprep.mubr.msk.bf16.mxu0 %vm876_vm0, %v875_v0 }
  0x1c   : > { %431 = vrot.lane.b32.xlu1 %v206_v6, %s878_s22 }
  0x20   : > { %543 = vrot.lane.b32.xlu1 %v759_v12, %s879_s23 }
  0x24   : > { %541 = vrot.lane.b32.xlu1 %v206_v6, %s879_s23 }
  0x85   : > { %v321_v22 = vpop.permute.xlu1 %320 }
  0x86   : > { %v326_v24 = vsel %vm207_vm1, %v321_v22, 0 }
  0x8a   : > { %v316_v26 = vpop.permute.xlu1 %315 }
  0x8e   : > { %v432_v28 = vpop.permute.xlu1 %431 }
  0x92   : > { %v544_v30 = vpop.permute.xlu1 %543 }
  0x93   : > { %v549_v31 = vsel %vm207_vm1, %v544_v30, 0 }
  0x96   : > { %v542_v32 = vpop.permute.xlu1 %541 }
  0xec   : > { %v248_v7 = vpop.f32.mrb[0].mxu0 }
  0xed   : > { %v789_v8 = vpop.f32.mrb[1].mxu0  ;;  %v255_v9 = vsel %vm254_vm2, %v248_v7, -inf }
  0xee   : > { %256 = vmax.xlane.f32.xlu0 %v255_v9  ;;  %v251_v10 = vpop.f32.mrb[2].mxu0 }
  0xef   : > { %v790_v11 = vpop.f32.mrb[3].mxu0 }
 0x17b   : > { %v257_v13 = vpop.xlane.xlu0 %256 }
 0x17c   : > { %v258_v14 = vsub.f32 %v248_v7, %v257_v13 }
 0x17e   : > { %v259_v15 = vmul.f32 1.442695, %v258_v14 }
 0x180   : > { %851 = vpow2.f32 %v259_v15 }
 0x18a   : > { %v852_v16 = vpop.eup %851 }
 0x18b   : > { %v261_v17 = vsel %vm254_vm2, %v852_v16, 0.0 }
 0x18c   : > { %262 = vadd.xlane.f32.xlu0 %v261_v17 }
 0x1a2   : > { %433 = vrot.lane.b32.xlu0 %v759_v12, %s878_s22 }
 0x219   : > { %v263_v20 = vpop.xlane.xlu0 %262 }
 0x21a   : > { %853 = vrcp.f32 %v263_v20 }
 0x21d   : > { %v434_v27 = vpop.permute.xlu0 %433 }
 0x21e   : > { %v439_v29 = vsel %vm207_vm1, %v434_v27, 0 }
 0x224   : > { %v854_v21 = vpop.eup %853 }
 0x225   : > { %v265_v23 = vmul.f32 %v854_v21, %v852_v16 }
 0x227   : > { %v266_v25 = vpack.c.bf16 %v265_v23, %v265_v23 }
 0x229   : > { %794 = vmatmul.mubr.msk.bf16.vlgmr.msra.gmra.mrb[0].mxu1 %vm254_vm2, %v266_v25 }
 0x22a   : > { %798 = vmatpush3.bf16.xpose.msra.mxu1 %v326_v24  ;;  %799 = vmatprep.mubr.msk.bf16.mxu1 %vm876_vm0, %v875_v0 }
 0x22b   : > { %809 = vmatprep.subr.bf16.mxu1 %v875_v0 }
 0x231   : > { %800 = vmatmul.mubr.msk.bf16.vlgmr.msra.gmra.mrb[4].mxu1 %vm207_vm1, %v316_v26 }
 0x232   : > { %810 = vmatpush3.bf16.xpose.msra.mxu1 %v439_v29  ;;  %811 = vmatprep.mubr.msk.bf16.mxu1 %vm876_vm0, %v875_v0 }
 0x233   : > { %821 = vmatprep.subr.bf16.mxu1 %v875_v0 }
 0x239   : > { %812 = vmatmul.mubr.msk.bf16.vlgmr.msra.gmra.mrb[8].mxu1 %vm207_vm1, %v432_v28 }
 0x23a   : > { %822 = vmatpush3.bf16.xpose.msra.mxu1 %v549_v31  ;;  %823 = vmatprep.mubr.msk.bf16.mxu1 %vm876_vm0, %v875_v0 }
 0x241   : > { %824 = vmatmul.mubr.msk.bf16.vlgmr.msra.gmra.mrb[12].mxu1 %vm207_vm1, %v542_v32 }
 0x2fc   : > { %v964_v33 = vpop.f32.mrb[0].mxu1 }
 0x2fd   : > { %v795_v34 = vpop.f32.mrb[1].mxu1 }
 0x2fe   : > { %v311_v35 = vpop.f32.mrb[2].mxu1 }
 0x2ff   : > { %v796_v36 = vpop.f32.mrb[3].mxu1 }
 0x304   : > { %v362_v37 = vpop.f32.mrb[4].mxu1 }
 0x305   : > { %v801_v38 = vpop.f32.mrb[5].mxu1  ;;  %v368_v39 = vsel %vm254_vm2, %v362_v37, -inf }
 0x306   : > { %369 = vmax.xlane.f32.xlu1 %v368_v39  ;;  %v365_v40 = vpop.f32.mrb[6].mxu1 }
 0x307   : > { %v802_v41 = vpop.f32.mrb[7].mxu1 }
 0x30c   : > { %v475_v42 = vpop.f32.mrb[8].mxu1 }
 0x30d   : > { %v481_v43 = vsel %vm254_vm2, %v475_v42, -inf  ;;  %v813_v44 = vpop.f32.mrb[9].mxu1 }
 0x30e   : > { %482 = vmax.xlane.f32.xlu0 %v481_v43  ;;  %v478_v45 = vpop.f32.mrb[10].mxu1 }
 0x30f   : > { %v814_v46 = vpop.f32.mrb[11].mxu1 }
 0x314   : > { %v585_v47 = vpop.f32.mrb[12].mxu1 }
 0x315   : > { %v591_v48 = vsel %vm254_vm2, %v585_v47, -inf  ;;  %v825_v49 = vpop.f32.mrb[13].mxu1 }
 0x316   : > { %592 = vmax.xlane.f32.xlu1 %v591_v48  ;;  %v588_v50 = vpop.f32.mrb[14].mxu1 }
 0x317   : > { %v826_v51 = vpop.f32.mrb[15].mxu1 }
 0x393   : > { %v370_v52 = vpop.xlane.xlu1 %369 }
 0x394   : > { %v371_v53 = vsub.f32 %v362_v37, %v370_v52 }
 0x396   : > { %v372_v54 = vmul.f32 1.442695, %v371_v53 }
 0x398   : > { %855 = vpow2.f32 %v372_v54 }
 0x39b   : > { %v483_v55 = vpop.xlane.xlu0 %482 }
 0x39c   : > { %v484_v56 = vsub.f32 %v475_v42, %v483_v55 }
 0x39e   : > { %v485_v57 = vmul.f32 1.442695, %v484_v56 }
 0x3a0   : > { %857 = vpow2.f32 %v485_v57 }
 0x3a2   : > { %v856_v58 = vpop.eup %855 }
 0x3a3   : > { %v374_v59 = vsel %vm254_vm2, %v856_v58, 0.0  ;;  %v593_v63 = vpop.xlane.xlu1 %592 }
 0x3a4   : > { %375 = vadd.xlane.f32.xlu1 %v374_v59  ;;  %v594_v1 = vsub.f32 %v585_v47, %v593_v63 }
 0x3a6   : > { %v595_v2 = vmul.f32 1.442695, %v594_v1 }
 0x3a8   : > { %859 = vpow2.f32 %v595_v2 }
 0x3aa   : > { %v858_v60 = vpop.eup %857 }
 0x3ab   : > { %v487_v61 = vsel %vm254_vm2, %v858_v60, 0.0 }
 0x3ac   : > { %488 = vadd.xlane.f32.xlu0 %v487_v61 }
 0x3b2   : > { %v860_v3 = vpop.eup %859 }
 0x3b3   : > { %v597_v4 = vsel %vm254_vm2, %v860_v3, 0.0 }
 0x3b5   : > { %493 = vrot.lane.b32.xlu1 %v761_v62, %s878_s22 }
 0x3c2   : > { %383 = vrot.lane.b32.xlu0 %v761_v62, %s877_s21 }
 0x3d9   : > { %598 = vadd.xlane.f32.xlu1 %v597_v4 }
 0x3ea   : > { %603 = vrot.lane.b32.xlu1 %v761_v62, %s879_s23 }
 0x431   : > { %v376_v5 = vpop.xlane.xlu1 %375 }
 0x432   : > { %861 = vrcp.f32 %v376_v5 }
 0x435   : > { %v494_v11 = vpop.permute.xlu1 %493 }
 0x436   : > { %v499_v13 = vsel %vm270_vm3, %v494_v11, 0 }
 0x439   : > { %v489_v6 = vpop.xlane.xlu0 %488 }
 0x43a   : > { %863 = vrcp.f32 %v489_v6 }
 0x43c   : > { %v862_v7 = vpop.eup %861 }
 0x43d   : > { %v378_v8 = vmul.f32 %v862_v7, %v856_v58  ;;  %v384_v9 = vpop.permute.xlu0 %383 }
 0x43e   : > { %v389_v10 = vsel %vm270_vm3, %v384_v9, 0 }
 0x43f   : > { %804 = vmatpush3.bf16.msra.mxu0 %v389_v10  ;;  %v379_v12 = vpack.c.bf16 %v378_v8, %v378_v8 }
 0x440   : > { %815 = vmatprep.subr.bf16.mxu0 %v875_v0 }
 0x442   : > { %806 = vmatmul.mubr.msk.bf16.vlgmr.msra.gmra.mrb[4].mxu0 %vm254_vm2, %v379_v12 }
 0x443   : > { %816 = vmatpush3.bf16.msra.mxu0 %v499_v13  ;;  %817 = vmatprep.mubr.msk.bf16.mxu0 %vm876_vm0, %v875_v0 }
 0x444   : > { %v864_v14 = vpop.eup %863  ;;  %827 = vmatprep.subr.bf16.mxu0 %v875_v0 }
 0x445   : > { %v491_v15 = vmul.f32 %v864_v14, %v858_v60 }
 0x447   : > { %v492_v16 = vpack.c.bf16 %v491_v15, %v491_v15 }
 0x44a   : > { %818 = vmatmul.mubr.msk.bf16.vlgmr.msra.gmra.mrb[8].mxu0 %vm254_vm2, %v492_v16 }
 0x44b   : > { %829 = vmatprep.mubr.msk.bf16.mxu0 %vm876_vm0, %v875_v0 }
 0x466   : > { %v599_v17 = vpop.xlane.xlu1 %598 }
 0x467   : > { %865 = vrcp.f32 %v599_v17 }
 0x46a   : > { %v604_v18 = vpop.permute.xlu1 %603 }
 0x46b   : > { %v609_v19 = vsel %vm270_vm3, %v604_v18, 0 }
 0x46c   : > { %828 = vmatpush3.bf16.msra.mxu0 %v609_v19 }
 0x471   : > { %v866_v20 = vpop.eup %865 }
 0x472   : > { %v601_v21 = vmul.f32 %v866_v20, %v860_v3 }
 0x474   : > { %v602_v22 = vpack.c.bf16 %v601_v21, %v601_v21 }
 0x476   : > { %830 = vmatmul.mubr.msk.bf16.vlgmr.msra.gmra.mrb[12].mxu0 %vm254_vm2, %v602_v22 }
 0x515   : > { %v425_v23 = vpop.f32.mrb[4].mxu0 }
 0x516   : > { %652 = vrot.lane.b32.xlu0 %v425_v23, %s880_s27  ;;  %v807_v24 = vpop.f32.mrb[5].mxu0 }
 0x517   : > { %v428_v25 = vpop.f32.mrb[6].mxu0 }
 0x518   : > { %v808_v26 = vpop.f32.mrb[7].mxu0 }
 0x51d   : > { %v535_v27 = vpop.f32.mrb[8].mxu0 }
 0x51e   : > { %656 = vrot.lane.b32.xlu1 %v535_v27, %s881_s28  ;;  %v819_v0 = vpop.f32.mrb[9].mxu0 }
 0x51f   : > { %v538_v28 = vpop.f32.mrb[10].mxu0 }
 0x520   : > { %v820_v29 = vpop.f32.mrb[11].mxu0 }
 0x549   : > { %v645_v30 = vpop.f32.mrb[12].mxu0 }
 0x54a   : > { %660 = vrot.lane.b32.xlu0 %v645_v30, %s882_s29  ;;  %v831_v31 = vpop.f32.mrb[13].mxu0 }
 0x54b   : > { %v648_v32 = vpop.f32.mrb[14].mxu0 }
 0x54c   : > { %v832_v34 = vpop.f32.mrb[15].mxu0 }
 0x588   : > { %v653_v35 = vpop.permute.xlu0 %652 }
 0x589   : > { %v663_v37 = vsel %vm207_vm1, %v964_v33, %v653_v35 }
 0x590   : > { %v657_v36 = vpop.permute.xlu1 %656 }
 0x591   : > { %v665_v38 = vsel %vm664_vm4, %v663_v37, %v657_v36 }
 0x5bc   : > { %v661_v39 = vpop.permute.xlu0 %660 }
 0x5bd   : > { %v667_v40 = vsel %vm666_vm5, %v665_v38, %v661_v39 }
 0x5be   : > { %v668_v41 = vpack.c.bf16 %v667_v40, %v667_v40 }
 0x5c0   : > { %670 = vst.msk [vmem:[%s199_s5] sm:$0xf] %vm669_vm6, %v668_v41 }
 0x5c1 PF: > { %s13_s12 = sadd.s32 1, %s873_s12  }
 0x5c2   : > { %p10_p4 = scmp.ge.s32.totalorder %s13_s12, 4  }
 0x5c4   :  { %12 = sbr.rel (!%p10_p4) target bundleno = 1 (0x1), region = 68 }

// kernel: fwd_fn.42
= control target key start
LH: loop header
LB: loop body
LE: loop exit
PB: predicated region body
PF: predicated region fallthrough
CT: control target
= control target key end

     0   :  { %v169_v0 = vmov 0.0   ;;  %vm170_vm0 = vmmov 0   ;;  %vm64_vm1 = vcmask 523264   ;;  %vm123_vm2 = vcmask 519168   ;;  %s223_s1 = inlined_call_operand.vmem [shape: bf16[64,64], index: 1, kind: input, shape index: {}]   ;;  %s224_s0 = inlined_call_operand.vmem [shape: bf16[16,64], index: 0, kind: input, shape index: {}]   ;;  %s225_s3 = inlined_call_operand.vmem [shape: bf16[16,64], index: 3, kind: input, shape index: {}]   ;;  %s226_s2 = inlined_call_operand.vmem [shape: f32[1,64], index: 2, kind: input, shape index: {}]   ;;  %s227_s4 = inlined_call_operand.vmem [shape: bf16[16,64], index: 4, kind: output, shape index: {}]  }
   0x1   :  { %150 = vmatprep.subr.bf16.mxu0 %v169_v0  ;;  %v164_v1 = vld [vmem:[%s223_s1] sm:$0xff]   ;;  %158 = vmatprep.mubr.msk.bf16.mxu0 %vm170_vm0, %v169_v0  ;;  %v165_v2 = vld [vmem:[%s223_s1 + $0x8] sm:$0xff]   ;;  %v166_v3 = vld [vmem:[%s223_s1 + $0x10] sm:$0xff]  }
   0x2   :  { %151 = vmatpush3.bf16.msra.mxu0 %v164_v1  ;;  %v167_v4 = vld [vmem:[%s223_s1 + $0x18] sm:$0xff]   ;;  %v168_v5 = vld [vmem:[%s224_s0] sm:$0xff]  }
   0x3   :  { %152 = vmatprep.subr.bf16.mxu0 %v169_v0  ;;  %v142_v6 = vld [vmem:[%s225_s3] sm:$0xff]  }
   0x4   :  { %v130_v7 = vld [vmem:[%s226_s2] ss:$0 sm:$0xff]  ;;  %v143_v8 = vunpack.c.l.bf16 %v142_v6  ;;  %v144_v12 = vunpack.c.h.bf16 %v142_v6 }
   0x6   :  { %153 = vmatpush3.bf16.msra.mxu0 %v165_v2 }
   0x7   :  { %154 = vmatprep.subr.bf16.mxu0 %v169_v0 }
   0xa   :  { %155 = vmatpush3.bf16.msra.mxu0 %v166_v3 }
   0xb   :  { %156 = vmatprep.subr.bf16.mxu0 %v169_v0 }
   0xe   :  { %157 = vmatpush3.bf16.msra.mxu0 %v167_v4 }
  0x11   :  { %159 = vmatmul.mubr.msk.bf16.vlgmr.msra.gmra.mrb[0].mxu0 %vm64_vm1, %v168_v5 }
  0xe4   :  { %v102_v9 = vpop.f32.mrb[0].mxu0 }
  0xe5   :  { %v103_v10 = vadd.f32 %v130_v7, %v102_v9  ;;  %v160_v11 = vpop.f32.mrb[1].mxu0 }
  0xe6   :  { %v105_v13 = vpop.f32.mrb[2].mxu0 }
  0xe7   :  { %v113_v14 = vadd.f32 %v143_v8, %v103_v10  ;;  %v106_v15 = vadd.f32 %v130_v7, %v105_v13  ;;  %v161_v16 = vpop.f32.mrb[3].mxu0 }
  0xe9   :  { %v139_v17 = vpack.c.bf16 %v113_v14, %v113_v14  ;;  %v114_v18 = vadd.f32 %v144_v12, %v106_v15 }
  0xeb   :  { %124 = vst.msk [vmem:[%s227_s4] sm:$0xf] %vm123_vm2, %v139_v17  ;;  %v140_v19 = vpack.c.bf16 %v114_v18, %v114_v18 }
  0xed   :  { %125 = vst.msk [vmem:[%s227_s4 + $0x4] sm:$0xf] %vm123_vm2, %v140_v19 }

// kernel: fwd_fn.43
= control target key start
LH: loop header
LB: loop body
LE: loop exit
PB: predicated region body
PF: predicated region fallthrough
CT: control target
= control target key end

     0   :  { %vm27_vm0 = vcmask 523264   ;;  %v203_v8 = vmov 0.0   ;;  %vm204_vm1 = vmmov 0   ;;  %vm150_vm2 = vcmask 519168   ;;  %s268_s0 = inlined_call_operand.vmem [shape: bf16[16,64], index: 0, kind: input, shape index: {}]   ;;  %s269_s3 = inlined_call_operand.vmem [shape: bf16[64,64], index: 3, kind: input, shape index: {}]   ;;  %s270_s1 = inlined_call_operand.vmem [shape: f32[1,64], index: 1, kind: input, shape index: {}]   ;;  %s271_s2 = inlined_call_operand.vmem [shape: bf16[16,64], index: 2, kind: input, shape index: {}]   ;;  %s272_s4 = inlined_call_operand.vmem [shape: f32[1,64], index: 4, kind: input, shape index: {}]   ;;  %s273_s5 = inlined_call_operand.vmem [shape: bf16[16,64], index: 5, kind: output, shape index: {}]  }
   0x1   :  { %v169_v0 = vld [vmem:[%s268_s0] sm:$0xff]   ;;  %181 = vmatprep.subr.bf16.mxu0 %v203_v8  ;;  %v196_v9 = vld [vmem:[%s269_s3 + $0x8] sm:$0xff]   ;;  %v197_v10 = vld [vmem:[%s269_s3 + $0x10] sm:$0xff]   ;;  %189 = vmatprep.mubr.msk.bf16.mxu0 %vm204_vm1, %v203_v8 }
   0x2   :  { %v170_v1 = vunpack.c.l.bf16 %v169_v0  ;;  %v171_v2 = vunpack.c.h.bf16 %v169_v0  ;;  %v195_v7 = vld [vmem:[%s269_s3] sm:$0xff]   ;;  %v198_v11 = vld [vmem:[%s269_s3 + $0x18] sm:$0xff]  }
   0x3   :  { %182 = vmatpush3.bf16.msra.mxu0 %v195_v7  ;;  %v157_v20 = vld [vmem:[%s270_s1] ss:$0 sm:$0xff] }
   0x4   :  { %v25_v3 = vmul.f32 %v170_v1, %v170_v1  ;;  %v26_v4 = vmul.f32 %v171_v2, %v171_v2  ;;  %183 = vmatprep.subr.bf16.mxu0 %v203_v8  ;;  %v173_v21 = vld [vmem:[%s271_s2] sm:$0xff]  }
   0x5   :  { %v174_v25 = vunpack.c.l.bf16 %v173_v21  ;;  %v175_v26 = vunpack.c.h.bf16 %v173_v21  ;;  %v158_v31 = vld [vmem:[%s272_s4] ss:$0 sm:$0xff] }
   0x6   :  { %v28_v5 = vsel %vm27_vm0, %v25_v3, 0.0  ;;  %v31_v6 = vsel %vm27_vm0, %v26_v4, 0.0 }
   0x7   :  { %29 = vadd.xlane.f32.xlu0 %v28_v5  ;;  %184 = vmatpush3.bf16.msra.mxu0 %v196_v9 }
   0x8   :  { %185 = vmatprep.subr.bf16.mxu0 %v203_v8 }
   0xb   :  { %32 = vadd.xlane.f32.xlu0 %v31_v6  ;;  %186 = vmatpush3.bf16.msra.mxu0 %v197_v10 }
   0xc   :  { %187 = vmatprep.subr.bf16.mxu0 %v203_v8 }
   0xf   :  { %188 = vmatpush3.bf16.msra.mxu0 %v198_v11 }
  0x94   :  { %v30_v12 = vpop.xlane.xlu0 %29 }
  0x95   :  { %v35_v13 = vmul.f32 0.015625, %v30_v12 }
  0x97   :  { %v37_v14 = vadd.f32 1e-05, %v35_v13 }
  0x98   :  { %v33_v15 = vpop.xlane.xlu0 %32 }
  0x99   :  { %199 = vrsqrt.f32 %v37_v14  ;;  %v36_v16 = vmul.f32 0.015625, %v33_v15 }
  0x9b   :  { %v38_v17 = vadd.f32 1e-05, %v36_v16 }
  0x9d   :  { %201 = vrsqrt.f32 %v38_v17 }
  0xa3   :  { %v200_v18 = vpop.eup %199 }
  0xa4   :  { %v41_v19 = vmul.f32 %v200_v18, %v170_v1 }
  0xa6   :  { %v50_v24 = vmul.f32 %v157_v20, %v41_v19 }
  0xa7   :  { %v202_v22 = vpop.eup %201 }
  0xa8   :  { %v42_v23 = vmul.f32 %v202_v22, %v171_v2  ;;  %v56_v28 = vadd.f32 %v174_v25, %v50_v24 }
  0xaa   :  { %v51_v27 = vmul.f32 %v157_v20, %v42_v23 }
  0xac   :  { %v57_v29 = vadd.f32 %v175_v26, %v51_v27 }
  0xae   :  { %v58_v30 = vpack.c.bf16 %v57_v29, %v56_v28 }
  0xb0   :  { %190 = vmatmul.mubr.msk.bf16.vlgmr.msra.gmra.mrb[0].mxu0 %vm27_vm0, %v58_v30 }
 0x183   :  { %v135_v32 = vpop.f32.mrb[0].mxu0 }
 0x184   :  { %v136_v33 = vadd.f32 %v158_v31, %v135_v32  ;;  %v191_v34 = vpop.f32.mrb[1].mxu0 }
 0x185   :  { %v138_v35 = vpop.f32.mrb[2].mxu0 }
 0x186   :  { %v166_v36 = vpack.c.bf16 %v136_v33, %v136_v33  ;;  %v139_v37 = vadd.f32 %v158_v31, %v138_v35  ;;  %v192_v38 = vpop.f32.mrb[3].mxu0 }
 0x188   :  { %151 = vst.msk [vmem:[%s273_s5] sm:$0xf] %vm150_vm2, %v166_v36  ;;  %v167_v39 = vpack.c.bf16 %v139_v37, %v139_v37 }
 0x18a   :  { %152 = vst.msk [vmem:[%s273_s5 + $0x4] sm:$0xf] %vm150_vm2, %v167_v39 }

// kernel: fwd_fn.30
= control target key start
LH: loop header
LB: loop body
LE: loop exit
PB: predicated region body
PF: predicated region fallthrough
CT: control target
= control target key end

     0   :  { %vm573_vm0 = vcmask 519168   ;;  %s953_s1 = inlined_call_operand.vmem [shape: bf16[768,64], index: 1, kind: input, shape index: {}]   ;;  %s954_s0 = inlined_call_operand.vmem [shape: bf16[16,768], index: 0, kind: input, shape index: {}]   ;;  %s955_s2 = inlined_call_operand.vmem [shape: f32[1,64], index: 2, kind: input, shape index: {}]   ;;  %s956_s3 = inlined_call_operand.vmem [shape: bf16[16,64], index: 3, kind: output, shape index: {}]  }
   0x1   :  { %v705_v0 = vld [vmem:[%s953_s1 + $0x40] sm:$0xff]   ;;  %v709_v4 = vld [vmem:[%s953_s1 + $0x48] sm:$0xff]   ;;  %v713_v8 = vld [vmem:[%s953_s1 + $0x50] sm:$0xff]  }
   0x2   :  { %v706_v1 = vld [vmem:[%s953_s1] sm:$0xff]   ;;  %639 = vmatprep.subr.bf16.mxu0 %v705_v0  ;;  %v710_v5 = vld [vmem:[%s953_s1 + $0x8] sm:$0xff]   ;;  %v714_v9 = vld [vmem:[%s953_s1 + $0x10] sm:$0xff]  }
   0x3   :  { %v707_v2 = vld [vmem:[%s953_s1 + $0xc0] sm:$0xff]   ;;  %640 = vmatpush3.bf16.msra.mxu0 %v706_v1  ;;  %v711_v6 = vld [vmem:[%s953_s1 + $0xc8] sm:$0xff]   ;;  %v715_v10 = vld [vmem:[%s953_s1 + $0xd0] sm:$0xff]  }
   0x4   :  { %v708_v3 = vld [vmem:[%s953_s1 + $0x80] sm:$0xff]   ;;  %661 = vmatprep.subr.bf16.mxu1 %v707_v2  ;;  %641 = vmatprep.subr.bf16.mxu0 %v709_v4  ;;  %v712_v7 = vld [vmem:[%s953_s1 + $0x88] sm:$0xff]   ;;  %v716_v11 = vld [vmem:[%s953_s1 + $0x90] sm:$0xff]  }
   0x5   :  { %662 = vmatpush3.bf16.msra.mxu1 %v708_v3  ;;  %v717_v12 = vld [vmem:[%s953_s1 + $0x58] sm:$0xff]   ;;  %v721_v16 = vld [vmem:[%s953_s1 + $0x60] sm:$0xff]   ;;  %v725_v20 = vld [vmem:[%s953_s1 + $0x68] sm:$0xff]  }
   0x6   :  { %663 = vmatprep.subr.bf16.mxu1 %v711_v6  ;;  %v718_v13 = vld [vmem:[%s953_s1 + $0x18] sm:$0xff]   ;;  %v722_v17 = vld [vmem:[%s953_s1 + $0x20] sm:$0xff]   ;;  %v726_v21 = vld [vmem:[%s953_s1 + $0x28] sm:$0xff]  }
   0x7   :  { %642 = vmatpush3.bf16.msra.mxu0 %v710_v5  ;;  %v719_v14 = vld [vmem:[%s953_s1 + $0xd8] sm:$0xff]   ;;  %v723_v18 = vld [vmem:[%s953_s1 + $0xe0] sm:$0xff]   ;;  %v727_v22 = vld [vmem:[%s953_s1 + $0xe8] sm:$0xff]  }
   0x8   :  { %643 = vmatprep.subr.bf16.mxu0 %v713_v8  ;;  %v720_v15 = vld [vmem:[%s953_s1 + $0x98] sm:$0xff]   ;;  %v724_v19 = vld [vmem:[%s953_s1 + $0xa0] sm:$0xff]   ;;  %v728_v23 = vld [vmem:[%s953_s1 + $0xa8] sm:$0xff]  }
   0x9   :  { %664 = vmatpush3.bf16.msra.mxu1 %v712_v7  ;;  %v729_v24 = vld [vmem:[%s953_s1 + $0x70] sm:$0xff]   ;;  %v733_v28 = vld [vmem:[%s953_s1 + $0x78] sm:$0xff]   ;;  %v740_v34 = vld [vmem:[%s953_s1 + $0x140] sm:$0xff]  }
   0xa   :  { %665 = vmatprep.subr.bf16.mxu1 %v715_v10  ;;  %v730_v25 = vld [vmem:[%s953_s1 + $0x30] sm:$0xff]   ;;  %v734_v29 = vld [vmem:[%s953_s1 + $0x38] sm:$0xff]   ;;  %v741_v35 = vld [vmem:[%s954_s0 + $0x8] ss:$24 sps:$4 sm:$0xff]  }
   0xb   :  { %644 = vmatpush3.bf16.msra.mxu0 %v714_v9  ;;  %v731_v26 = vld [vmem:[%s953_s1 + $0xf0] sm:$0xff]   ;;  %v735_v30 = vld [vmem:[%s953_s1 + $0xf8] sm:$0xff]   ;;  %v743_v36 = vld [vmem:[%s954_s0 + $0xc] ss:$24 sps:$4 sm:$0xff]  }
   0xc   :  { %645 = vmatprep.subr.bf16.mxu0 %v717_v12  ;;  %v732_v27 = vld [vmem:[%s953_s1 + $0xb0] sm:$0xff]   ;;  %v736_v31 = vld [vmem:[%s954_s0] ss:$24 sps:$4 sm:$0xff]   ;;  %v738_v32 = vld [vmem:[%s954_s0 + $0x4] ss:$24 sps:$4 sm:$0xff]   ;;  %515 = vmatprep.mubr.bf16.mxu1 %v743_v36 }
   0xd   :  { %666 = vmatpush3.bf16.msra.mxu1 %v716_v11  ;;  %v739_v33 = vld [vmem:[%s953_s1 + $0xb8] sm:$0xff]   ;;  %474 = vmatprep.mubr.bf16.mxu0 %v738_v32  ;;  %v744_v37 = vld [vmem:[%s953_s1 + $0x100] sm:$0xff]   ;;  %v745_v38 = vld [vmem:[%s953_s1 + $0x148] sm:$0xff]  }
   0xe   :  { %667 = vmatprep.subr.bf16.mxu1 %v719_v14  ;;  %v746_v39 = vld [vmem:[%s953_s1 + $0x108] sm:$0xff]   ;;  %v747_v40 = vld [vmem:[%s953_s1 + $0x150] sm:$0xff]   ;;  %v749_v42 = vld [vmem:[%s953_s1 + $0x158] sm:$0xff]  }
   0xf   :  { %646 = vmatpush3.bf16.msra.mxu0 %v718_v13  ;;  %v748_v41 = vld [vmem:[%s953_s1 + $0x110] sm:$0xff]   ;;  %v750_v43 = vld [vmem:[%s953_s1 + $0x118] sm:$0xff]   ;;  %v751_v44 = vld [vmem:[%s953_s1 + $0x160] sm:$0xff]  }
  0x10   :  { %647 = vmatprep.subr.bf16.mxu0 %v721_v16  ;;  %v752_v45 = vld [vmem:[%s953_s1 + $0x120] sm:$0xff]   ;;  %v753_v46 = vld [vmem:[%s953_s1 + $0x168] sm:$0xff]   ;;  %v755_v49 = vld [vmem:[%s953_s1 + $0x170] sm:$0xff]  }
  0x11   :  { %668 = vmatpush3.bf16.msra.mxu1 %v720_v15  ;;  %v761_v47 = vld [vmem:[%s954_s0 + $0x14] ss:$24 sps:$4 sm:$0xff]   ;;  %v757_v51 = vld [vmem:[%s953_s1 + $0x178] sm:$0xff]   ;;  %v759_v53 = vld [vmem:[%s954_s0 + $0x10] ss:$24 sps:$4 sm:$0xff]  }
  0x12   :  { %669 = vmatprep.subr.bf16.mxu1 %v723_v18  ;;  %v754_v48 = vld [vmem:[%s953_s1 + $0x128] sm:$0xff]   ;;  %v756_v50 = vld [vmem:[%s953_s1 + $0x130] sm:$0xff]   ;;  %v758_v52 = vld [vmem:[%s953_s1 + $0x138] sm:$0xff]  }
  0x13   :  { %648 = vmatpush3.bf16.msra.mxu0 %v722_v17  ;;  %v580_v55 = vld [vmem:[%s955_s2] ss:$0 sm:$0xff] }
  0x14   :  { %649 = vmatprep.subr.bf16.mxu0 %v725_v20 }
  0x15   :  { %670 = vmatpush3.bf16.msra.mxu1 %v724_v19 }
  0x16   :  { %671 = vmatprep.subr.bf16.mxu1 %v727_v22 }
  0x17   :  { %650 = vmatpush3.bf16.msra.mxu0 %v726_v21 }
  0x18   :  { %651 = vmatprep.subr.bf16.mxu0 %v729_v24 }
  0x19   :  { %672 = vmatpush3.bf16.msra.mxu1 %v728_v23 }
  0x1a   :  { %673 = vmatprep.subr.bf16.mxu1 %v731_v26 }
  0x1b   :  { %652 = vmatpush3.bf16.msra.mxu0 %v730_v25 }
  0x1c   :  { %653 = vmatprep.subr.bf16.mxu0 %v733_v28 }
  0x1d   :  { %674 = vmatpush3.bf16.msra.mxu1 %v732_v27 }
  0x1e   :  { %675 = vmatprep.subr.bf16.mxu1 %v735_v30 }
  0x1f   :  { %654 = vmatpush3.bf16.msra.mxu0 %v734_v29 }
  0x20   :  { %683 = vmatprep.subr.bf16.mxu0 %v740_v34 }
  0x21   :  { %676 = vmatpush3.bf16.msra.mxu1 %v739_v33 }
  0x22   :  { %475 = vmatmul.mubr.bf16.vlgmr.msra.gmra.mrb[0].mxu0 %v736_v31 }
  0x23   :  { %684 = vmatpush3.bf16.msra.mxu0 %v744_v37  ;;  %556 = vmatprep.mubr.bf16.mxu0 %v761_v47 }
  0x24   :  { %516 = vmatmul.mubr.bf16.vlgmr.msra.gmra.mrb[0].mxu1 %v741_v35  ;;  %685 = vmatprep.subr.bf16.mxu0 %v745_v38 }
  0x27   :  { %686 = vmatpush3.bf16.msra.mxu0 %v746_v39 }
  0x28   :  { %687 = vmatprep.subr.bf16.mxu0 %v747_v40 }
  0x2b   :  { %688 = vmatpush3.bf16.msra.mxu0 %v748_v41 }
  0x2c   :  { %689 = vmatprep.subr.bf16.mxu0 %v749_v42 }
  0x2f   :  { %690 = vmatpush3.bf16.msra.mxu0 %v750_v43 }
  0x30   :  { %691 = vmatprep.subr.bf16.mxu0 %v751_v44 }
  0x33   :  { %692 = vmatpush3.bf16.msra.mxu0 %v752_v45 }
  0x34   :  { %693 = vmatprep.subr.bf16.mxu0 %v753_v46 }
  0x37   :  { %694 = vmatpush3.bf16.msra.mxu0 %v754_v48 }
  0x38   :  { %695 = vmatprep.subr.bf16.mxu0 %v755_v49 }
  0x3b   :  { %696 = vmatpush3.bf16.msra.mxu0 %v756_v50 }
  0x3c   :  { %697 = vmatprep.subr.bf16.mxu0 %v757_v51 }
  0x3f   :  { %698 = vmatpush3.bf16.msra.mxu0 %v758_v52 }
  0x42   :  { %557 = vmatmul.mubr.bf16.vlgmr.msra.gmra.mrb[4].mxu0 %v759_v53 }
  0xf5   :  { %v655_v54 = vpop.f32.mrb[0].mxu0 }
  0xf6   :  { %v656_v56 = vpop.f32.mrb[1].mxu0 }
  0xf7   :  { %v657_v57 = vadd.f32 %v656_v56, %v655_v54  ;;  %v658_v58 = vpop.f32.mrb[2].mxu0  ;;  %v677_v59 = vpop.f32.mrb[0].mxu1 }
  0xf8   :  { %v659_v60 = vpop.f32.mrb[3].mxu0  ;;  %v678_v63 = vpop.f32.mrb[1].mxu1 }
  0xf9   :  { %v477_v61 = vadd.f32 %v657_v57, %v580_v55  ;;  %v660_v62 = vadd.f32 %v659_v60, %v658_v58  ;;  %v679_v0 = vadd.f32 %v678_v63, %v677_v59  ;;  %v680_v1 = vpop.f32.mrb[2].mxu1 }
  0xfa   :  { %v681_v3 = vpop.f32.mrb[3].mxu1 }
  0xfb   :  { %v480_v2 = vadd.f32 %v660_v62, %v580_v55  ;;  %v518_v4 = vadd.f32 %v679_v0, %v477_v61  ;;  %v682_v5 = vadd.f32 %v681_v3, %v680_v1 }
  0xfd   :  { %v521_v6 = vadd.f32 %v682_v5, %v480_v2 }
 0x115   :  { %v699_v7 = vpop.f32.mrb[4].mxu0 }
 0x116   :  { %v700_v8 = vpop.f32.mrb[5].mxu0 }
 0x117   :  { %v701_v9 = vadd.f32 %v700_v8, %v699_v7  ;;  %v702_v10 = vpop.f32.mrb[6].mxu0 }
 0x118   :  { %v703_v11 = vpop.f32.mrb[7].mxu0 }
 0x119   :  { %v559_v12 = vadd.f32 %v701_v9, %v518_v4  ;;  %v704_v13 = vadd.f32 %v703_v11, %v702_v10 }
 0x11b   :  { %v637_v14 = vpack.c.bf16 %v559_v12, %v559_v12  ;;  %v562_v15 = vadd.f32 %v704_v13, %v521_v6 }
 0x11d   :  { %574 = vst.msk [vmem:[%s956_s3] sm:$0xf] %vm573_vm0, %v637_v14  ;;  %v638_v16 = vpack.c.bf16 %v562_v15, %v562_v15 }
 0x11f   :  { %575 = vst.msk [vmem:[%s956_s3 + $0x4] sm:$0xf] %vm573_vm0, %v638_v16 }

// kernel: fwd_fn.31
= control target key start
LH: loop header
LB: loop body
LE: loop exit
PB: predicated region body
PF: predicated region fallthrough
CT: control target
= control target key end

     0   :  { %vm42_vm0 = vcmask 1043456   ;;  %vm43_vm1 = vcmask 1044480   ;;  %v116_v0 = vmov 0.0   ;;  %v117_v2 = vmov 65535   ;;  %s154_s1 = inlined_call_operand.vmem [shape: bf16[25,64], index: 1, kind: input, shape index: {}]   ;;  %s155_s0 = inlined_call_operand.vmem [shape: bf16[4,25], index: 0, kind: input, shape index: {}]   ;;  %s156_s2 = inlined_call_operand.vmem [shape: f32[1,64], index: 2, kind: input, shape index: {}]   ;;  %s157_s3 = inlined_call_operand.vmem [shape: bf16[4,64], index: 3, kind: output, shape index: {}]  }
   0x1   :  { %103 = vmatprep.subr.bf16.mxu0 %v116_v0  ;;  %v114_v1 = vld [vmem:[%s154_s1] sm:$0xff]   ;;  %v44_v3 = vsel %vm42_vm0, 4294967295, %v117_v2  ;;  %v115_v4 = vld [vmem:[%s154_s1 + $0x8] sm:$0x1f]   ;;  %vm118_vm2 = vmmov 0   ;;  %vm38_vm3 = vcmask 203776  }
   0x2   :  { %104 = vmatpush3.bf16.msra.mxu0 %v114_v1  ;;  %v45_v5 = vsel %vm43_vm1, %v44_v3, 0  ;;  %107 = vmatprep.mubr.msk.bf16.mxu0 %vm118_vm2, %v116_v0  ;;  %v15_v7 = vld [vmem:[%s155_s0] sm:$0x3]  ;;  %vm90_vm4 = vcmask 517120  }
   0x3   :  { %105 = vmatprep.subr.bf16.mxu0 %v116_v0  ;;  %v47_v6 = vand.u32 %v115_v4, %v45_v5  ;;  %v96_v8 = vld [vmem:[%s156_s2] ss:$0 sm:$0xff] }
   0x6   :  { %106 = vmatpush3.bf16.msra.mxu0 %v47_v6 }
   0x9   :  { %108 = vmatmul.mubr.msk.bf16.vlgmr.msra.gmra.mrb[0].mxu0 %vm38_vm3, %v15_v7 }
  0xdc   :  { %v83_v9 = vpop.f32.mrb[0].mxu0 }
  0xdd   :  { %v84_v10 = vadd.f32 %v96_v8, %v83_v9  ;;  %v109_v11 = vpop.f32.mrb[1].mxu0 }
  0xde   :  { %v86_v12 = vpop.f32.mrb[2].mxu0 }
  0xdf   :  { %v89_v13 = vpack.c.bf16 %v84_v10, %v84_v10  ;;  %v110_v14 = vpop.f32.mrb[3].mxu0 }
  0xe1   :  { %91 = vst.msk [vmem:[%s157_s3] sm:$0x3] %vm90_vm4, %v89_v13 }

// kernel: fwd_fn.35
= control target key start
LH: loop header
LB: loop body
LE: loop exit
PB: predicated region body
PF: predicated region fallthrough
CT: control target
= control target key end

     0   :  { %vm24_vm0 = vcmask 523264   ;;  %v253_v10 = vmov 0   ;;  %v60_v30 = vlaneseq  ;;  %s321_s0 = inlined_call_operand.vmem [shape: bf16[16,64], index: 0, kind: input, shape index: {}]   ;;  %s322_s2 = inlined_call_operand.vmem [shape: bf16[64,256], index: 2, kind: input, shape index: {}]   ;;  %s323_s1 = inlined_call_operand.vmem [shape: f32[1,64], index: 1, kind: input, shape index: {}]   ;;  %s324_s3 = inlined_call_operand.vmem [shape: f32[1,256], index: 3, kind: input, shape index: {}]   ;;  %s325_s4 = inlined_call_operand.vmem [shape: bf16[16,256], index: 4, kind: output, shape index: {}]  }
   0x1   :  { %v225_v0 = vld [vmem:[%s321_s0] sm:$0xff]   ;;  %v232_v9 = vld [vmem:[%s322_s2 + $0x14] ss:$8 sps:$4 sm:$0xff]   ;;  %145 = vmatprep.mubr.bf16.mxu0 %v253_v10  ;;  %v234_v11 = vld [vmem:[%s322_s2 + $0x10] ss:$8 sps:$4 sm:$0xff]  }
   0x2   :  { %v226_v1 = vunpack.c.l.bf16 %v225_v0  ;;  %v227_v2 = vunpack.c.h.bf16 %v225_v0  ;;  %v229_v7 = vld [vmem:[%s322_s2 + $0x4] ss:$8 sps:$4 sm:$0xff]   ;;  %v231_v8 = vld [vmem:[%s322_s2] ss:$8 sps:$4 sm:$0xff]   ;;  %v238_v14 = vld [vmem:[%s322_s2 + $0x34] ss:$8 sps:$4 sm:$0xff]  }
   0x3   :  { %113 = vmatprep.subr.bf16.mxu0 %v229_v7  ;;  %v235_v12 = vld [vmem:[%s322_s2 + $0x24] ss:$8 sps:$4 sm:$0xff]   ;;  %v237_v13 = vld [vmem:[%s322_s2 + $0x20] ss:$8 sps:$4 sm:$0xff]   ;;  %v240_v15 = vld [vmem:[%s322_s2 + $0x30] ss:$8 sps:$4 sm:$0xff]  }
   0x4   :  { %v22_v3 = vmul.f32 %v226_v1, %v226_v1  ;;  %v23_v4 = vmul.f32 %v227_v2, %v227_v2  ;;  %114 = vmatpush1.bf16.msra.mxu0 %v231_v8  ;;  %v210_v25 = vld [vmem:[%s323_s1] ss:$0 sm:$0xff]  ;;  %v61_v31 = vshrl.u32 %v60_v30, 7 }
   0x5   :  { %115 = vmatprep.subr.bf16.mxu0 %v232_v9  ;;  %v58_v33 = vld [vmem:[%s324_s3] sm:$0x3] }
   0x6   :  { %v25_v5 = vsel %vm24_vm0, %v22_v3, 0.0  ;;  %v28_v6 = vsel %vm24_vm0, %v23_v4, 0.0  ;;  %v62_v32 = vsub.s32 0, %v61_v31  ;;  %v66_v34 = vsub.s32 1, %v61_v31 }
   0x7   :  { %26 = vadd.xlane.f32.xlu0 %v25_v5 }
   0x8   :  { %116 = vmatpush1.bf16.msra.mxu0 %v234_v11  ;;  %v63_v35 = vrot.slane %v58_v33, %v62_v32  ;;  %v67_v36 = vrot.slane %v58_v33, %v66_v34 }
   0x9   :  { %117 = vmatprep.subr.bf16.mxu0 %v235_v12 }
   0xb   :  { %29 = vadd.xlane.f32.xlu0 %v28_v6 }
   0xc   :  { %118 = vmatpush1.bf16.msra.mxu0 %v237_v13 }
   0xd   :  { %119 = vmatprep.subr.bf16.mxu0 %v238_v14 }
  0x10   :  { %120 = vmatpush1.bf16.msra.mxu0 %v240_v15 }
  0x94   :  { %v27_v16 = vpop.xlane.xlu0 %26 }
  0x95   :  { %v32_v17 = vmul.f32 0.015625, %v27_v16 }
  0x97   :  { %v34_v18 = vadd.f32 1e-05, %v32_v17 }
  0x98   :  { %v30_v19 = vpop.xlane.xlu0 %29 }
  0x99   :  { %241 = vrsqrt.f32 %v34_v18  ;;  %v33_v20 = vmul.f32 0.015625, %v30_v19 }
  0x9b   :  { %v35_v21 = vadd.f32 1e-05, %v33_v20 }
  0x9d   :  { %243 = vrsqrt.f32 %v35_v21 }
  0xa3   :  { %v242_v22 = vpop.eup %241 }
  0xa4   :  { %v38_v23 = vmul.f32 %v242_v22, %v226_v1 }
  0xa6   :  { %v47_v27 = vmul.f32 %v210_v25, %v38_v23 }
  0xa7   :  { %v244_v24 = vpop.eup %243 }
  0xa8   :  { %v39_v26 = vmul.f32 %v244_v24, %v227_v2 }
  0xaa   :  { %v48_v28 = vmul.f32 %v210_v25, %v39_v26 }
  0xac   :  { %v49_v29 = vpack.c.bf16 %v48_v28, %v47_v27 }
  0xae   :  { %219 = vmatmul.mubr.msk.bf16.vlgmr.msra.gmra.mrb[0].mxu0 %vm24_vm0, %v49_v29 }
 0x181   :  { %v147_v37 = vpop.f32.mrb[0].mxu0 }
 0x182   :  { %v148_v38 = vadd.f32 %v147_v37, %v63_v35  ;;  %v149_v39 = vpop.f32.mrb[1].mxu0 }
 0x183   :  { %v150_v40 = vadd.f32 %v149_v39, %v67_v36  ;;  %v151_v41 = vpop.f32.mrb[2].mxu0 }
 0x184   :  { %v156_v42 = vmul.f32 %v148_v38, %v148_v38  ;;  %v152_v43 = vadd.f32 %v151_v41, %v63_v35  ;;  %v153_v44 = vpop.f32.mrb[3].mxu0 }
 0x185   :  { %v157_v45 = vmul.f32 %v150_v40, %v150_v40  ;;  %v154_v46 = vadd.f32 %v153_v44, %v67_v36 }
 0x186   :  { %v160_v47 = vmul.f32 %v156_v42, %v148_v38  ;;  %v158_v48 = vmul.f32 %v152_v43, %v152_v43 }
 0x187   :  { %v161_v49 = vmul.f32 %v157_v45, %v150_v40  ;;  %v159_v50 = vmul.f32 %v154_v46, %v154_v46 }
 0x188   :  { %v164_v51 = vmul.f32 0.044715, %v160_v47  ;;  %v162_v52 = vmul.f32 %v158_v48, %v152_v43 }
 0x189   :  { %v165_v53 = vmul.f32 0.044715, %v161_v49  ;;  %v163_v54 = vmul.f32 %v159_v50, %v154_v46 }
 0x18a   :  { %v168_v55 = vadd.f32 %v164_v51, %v148_v38  ;;  %v166_v56 = vmul.f32 0.044715, %v162_v52 }
 0x18b   :  { %v169_v57 = vadd.f32 %v165_v53, %v150_v40  ;;  %v167_v58 = vmul.f32 0.044715, %v163_v54 }
 0x18c   :  { %v172_v59 = vmul.f32 0.7978846, %v168_v55  ;;  %v170_v60 = vadd.f32 %v166_v56, %v152_v43 }
 0x18d   :  { %v173_v61 = vmul.f32 0.7978846, %v169_v57  ;;  %v171_v62 = vadd.f32 %v167_v58, %v154_v46 }
 0x18e   :  { %245 = vtanh.f32 %v172_v59  ;;  %v174_v63 = vmul.f32 0.7978846, %v170_v60 }
 0x18f   :  { %247 = vtanh.f32 %v173_v61  ;;  %v175_v0 = vmul.f32 0.7978846, %v171_v62 }
 0x190   :  { %249 = vtanh.f32 %v174_v63 }
 0x191   :  { %251 = vtanh.f32 %v175_v0 }
 0x198   :  { %v246_v1 = vpop.eup %245 }
 0x199   :  { %v248_v2 = vpop.eup %247  ;;  %v180_v3 = vadd.f32 1.0, %v246_v1 }
 0x19a   :  { %v250_v4 = vpop.eup %249  ;;  %v181_v5 = vadd.f32 1.0, %v248_v2 }
 0x19b   :  { %v252_v6 = vpop.eup %251  ;;  %v184_v7 = vmul.f32 0.5, %v180_v3  ;;  %v182_v8 = vadd.f32 1.0, %v250_v4 }
 0x19c   :  { %v185_v9 = vmul.f32 0.5, %v181_v5  ;;  %v183_v10 = vadd.f32 1.0, %v252_v6 }
 0x19d   :  { %v188_v11 = vmul.f32 %v184_v7, %v148_v38  ;;  %v186_v12 = vmul.f32 0.5, %v182_v8 }
 0x19e   :  { %v189_v13 = vmul.f32 %v185_v9, %v150_v40  ;;  %v187_v14 = vmul.f32 0.5, %v183_v10 }
 0x19f   :  { %v190_v15 = vmul.f32 %v186_v12, %v152_v43 }
 0x1a0   :  { %v222_v16 = vpack.c.bf16 %v189_v13, %v188_v11  ;;  %v191_v17 = vmul.f32 %v187_v14, %v154_v46 }
 0x1a2   :  { %204 = vst [vmem:[%s325_s4] sm:$0xff] %v222_v16  ;;  %v223_v18 = vpack.c.bf16 %v191_v17, %v190_v15 }
 0x1a4   :  { %205 = vst [vmem:[%s325_s4 + $0x8] sm:$0xff] %v223_v18 }

// kernel: fwd_fn.37
= control target key start
LH: loop header
LB: loop body
LE: loop exit
PB: predicated region body
PF: predicated region fallthrough
CT: control target
= control target key end

     0   :  { %v156_v0 = vmov 0.0   ;;  %vm157_vm0 = vmmov 0   ;;  %vm61_vm1 = vcmask 523264   ;;  %vm114_vm2 = vcmask 519168   ;;  %s202_s1 = inlined_call_operand.vmem [shape: bf16[64,64], index: 1, kind: input, shape index: {}]   ;;  %s203_s0 = inlined_call_operand.vmem [shape: bf16[16,64], index: 0, kind: input, shape index: {}]   ;;  %s204_s2 = inlined_call_operand.vmem [shape: f32[1,64], index: 2, kind: input, shape index: {}]   ;;  %s205_s3 = inlined_call_operand.vmem [shape: bf16[16,64], index: 3, kind: output, shape index: {}]  }
   0x1   :  { %137 = vmatprep.subr.bf16.mxu0 %v156_v0  ;;  %v151_v1 = vld [vmem:[%s202_s1] sm:$0xff]   ;;  %145 = vmatprep.mubr.msk.bf16.mxu0 %vm157_vm0, %v156_v0  ;;  %v152_v2 = vld [vmem:[%s202_s1 + $0x8] sm:$0xff]   ;;  %v153_v3 = vld [vmem:[%s202_s1 + $0x10] sm:$0xff]  }
   0x2   :  { %138 = vmatpush3.bf16.msra.mxu0 %v151_v1  ;;  %v154_v4 = vld [vmem:[%s202_s1 + $0x18] sm:$0xff]   ;;  %v155_v5 = vld [vmem:[%s203_s0] sm:$0xff]  }
   0x3   :  { %139 = vmatprep.subr.bf16.mxu0 %v156_v0  ;;  %v121_v6 = vld [vmem:[%s204_s2] ss:$0 sm:$0xff] }
   0x6   :  { %140 = vmatpush3.bf16.msra.mxu0 %v152_v2 }
   0x7   :  { %141 = vmatprep.subr.bf16.mxu0 %v156_v0 }
   0xa   :  { %142 = vmatpush3.bf16.msra.mxu0 %v153_v3 }
   0xb   :  { %143 = vmatprep.subr.bf16.mxu0 %v156_v0 }
   0xe   :  { %144 = vmatpush3.bf16.msra.mxu0 %v154_v4 }
  0x11   :  { %146 = vmatmul.mubr.msk.bf16.vlgmr.msra.gmra.mrb[0].mxu0 %vm61_vm1, %v155_v5 }
  0xe4   :  { %v99_v7 = vpop.f32.mrb[0].mxu0 }
  0xe5   :  { %v100_v8 = vadd.f32 %v121_v6, %v99_v7  ;;  %v147_v9 = vpop.f32.mrb[1].mxu0 }
  0xe6   :  { %v102_v10 = vpop.f32.mrb[2].mxu0 }
  0xe7   :  { %v130_v11 = vpack.c.bf16 %v100_v8, %v100_v8  ;;  %v103_v12 = vadd.f32 %v121_v6, %v102_v10  ;;  %v148_v13 = vpop.f32.mrb[3].mxu0 }
  0xe9   :  { %115 = vst.msk [vmem:[%s205_s3] sm:$0xf] %vm114_vm2, %v130_v11  ;;  %v131_v14 = vpack.c.bf16 %v103_v12, %v103_v12 }
  0xeb   :  { %116 = vst.msk [vmem:[%s205_s3 + $0x4] sm:$0xf] %vm114_vm2, %v131_v14 }

// kernel: fwd_fn.36
= control target key start
LH: loop header
LB: loop body
LE: loop exit
PB: predicated region body
PF: predicated region fallthrough
CT: control target
= control target key end

     0   :  { %vm220_vm0 = vcmask 519168   ;;  %s386_s1 = inlined_call_operand.vmem [shape: bf16[256,64], index: 1, kind: input, shape index: {}]   ;;  %s387_s0 = inlined_call_operand.vmem [shape: bf16[16,256], index: 0, kind: input, shape index: {}]   ;;  %s388_s3 = inlined_call_operand.vmem [shape: bf16[16,64], index: 3, kind: input, shape index: {}]   ;;  %s389_s2 = inlined_call_operand.vmem [shape: f32[1,64], index: 2, kind: input, shape index: {}]   ;;  %s390_s4 = inlined_call_operand.vmem [shape: bf16[16,64], index: 4, kind: output, shape index: {}]  }
   0x1   :  { %v276_v0 = vld [vmem:[%s386_s1 + $0x40] sm:$0xff]   ;;  %v278_v2 = vld [vmem:[%s386_s1 + $0x48] sm:$0xff]   ;;  %v280_v4 = vld [vmem:[%s386_s1 + $0x50] sm:$0xff]  }
   0x2   :  { %v277_v1 = vld [vmem:[%s386_s1] sm:$0xff]   ;;  %254 = vmatprep.subr.bf16.mxu0 %v276_v0  ;;  %v279_v3 = vld [vmem:[%s386_s1 + $0x8] sm:$0xff]   ;;  %v281_v5 = vld [vmem:[%s386_s1 + $0x10] sm:$0xff]  }
   0x3   :  { %255 = vmatpush3.bf16.msra.mxu0 %v277_v1  ;;  %v282_v6 = vld [vmem:[%s386_s1 + $0x58] sm:$0xff]   ;;  %v284_v8 = vld [vmem:[%s386_s1 + $0x60] sm:$0xff]   ;;  %v286_v10 = vld [vmem:[%s386_s1 + $0x68] sm:$0xff]  }
   0x4   :  { %256 = vmatprep.subr.bf16.mxu0 %v278_v2  ;;  %v283_v7 = vld [vmem:[%s386_s1 + $0x18] sm:$0xff]   ;;  %v285_v9 = vld [vmem:[%s386_s1 + $0x20] sm:$0xff]   ;;  %v287_v12 = vld [vmem:[%s386_s1 + $0x28] sm:$0xff]  }
   0x5   :  { %v294_v11 = vld [vmem:[%s387_s0 + $0x4] ss:$8 sps:$4 sm:$0xff]   ;;  %v288_v13 = vld [vmem:[%s386_s1 + $0x70] sm:$0xff]   ;;  %v290_v15 = vld [vmem:[%s386_s1 + $0x78] sm:$0xff]  }
   0x6   :  { %197 = vmatprep.mubr.bf16.mxu0 %v294_v11  ;;  %v289_v14 = vld [vmem:[%s386_s1 + $0x30] sm:$0xff]   ;;  %v291_v16 = vld [vmem:[%s386_s1 + $0x38] sm:$0xff]   ;;  %v292_v17 = vld [vmem:[%s387_s0] ss:$8 sps:$4 sm:$0xff]  }
   0x7   :  { %257 = vmatpush3.bf16.msra.mxu0 %v279_v3  ;;  %v251_v18 = vld [vmem:[%s388_s3] sm:$0xff]  }
   0x8   :  { %258 = vmatprep.subr.bf16.mxu0 %v280_v4  ;;  %v227_v20 = vld [vmem:[%s389_s2] ss:$0 sm:$0xff]  ;;  %v252_v23 = vunpack.c.l.bf16 %v251_v18  ;;  %v253_v28 = vunpack.c.h.bf16 %v251_v18 }
   0xb   :  { %259 = vmatpush3.bf16.msra.mxu0 %v281_v5 }
   0xc   :  { %260 = vmatprep.subr.bf16.mxu0 %v282_v6 }
   0xf   :  { %261 = vmatpush3.bf16.msra.mxu0 %v283_v7 }
  0x10   :  { %262 = vmatprep.subr.bf16.mxu0 %v284_v8 }
  0x13   :  { %263 = vmatpush3.bf16.msra.mxu0 %v285_v9 }
  0x14   :  { %264 = vmatprep.subr.bf16.mxu0 %v286_v10 }
  0x17   :  { %265 = vmatpush3.bf16.msra.mxu0 %v287_v12 }
  0x18   :  { %266 = vmatprep.subr.bf16.mxu0 %v288_v13 }
  0x1b   :  { %267 = vmatpush3.bf16.msra.mxu0 %v289_v14 }
  0x1c   :  { %268 = vmatprep.subr.bf16.mxu0 %v290_v15 }
  0x1f   :  { %269 = vmatpush3.bf16.msra.mxu0 %v291_v16 }
  0x22   :  { %198 = vmatmul.mubr.bf16.vlgmr.msra.gmra.mrb[0].mxu0 %v292_v17 }
  0xf5   :  { %v270_v19 = vpop.f32.mrb[0].mxu0 }
  0xf6   :  { %v271_v21 = vpop.f32.mrb[1].mxu0 }
  0xf7   :  { %v272_v22 = vadd.f32 %v271_v21, %v270_v19  ;;  %v273_v24 = vpop.f32.mrb[2].mxu0 }
  0xf8   :  { %v274_v25 = vpop.f32.mrb[3].mxu0 }
  0xf9   :  { %v200_v26 = vadd.f32 %v272_v22, %v227_v20  ;;  %v275_v27 = vadd.f32 %v274_v25, %v273_v24 }
  0xfb   :  { %v210_v29 = vadd.f32 %v252_v23, %v200_v26  ;;  %v203_v30 = vadd.f32 %v275_v27, %v227_v20 }
  0xfd   :  { %v248_v31 = vpack.c.bf16 %v210_v29, %v210_v29  ;;  %v211_v32 = vadd.f32 %v253_v28, %v203_v30 }
  0xff   :  { %221 = vst.msk [vmem:[%s390_s4] sm:$0xf] %vm220_vm0, %v248_v31  ;;  %v249_v33 = vpack.c.bf16 %v211_v32, %v211_v32 }
 0x101   :  { %222 = vst.msk [vmem:[%s390_s4 + $0x4] sm:$0xf] %vm220_vm0, %v249_v33 }

// kernel: fwd_fn.44
= control target key start
LH: loop header
LB: loop body
LE: loop exit
PB: predicated region body
PF: predicated region fallthrough
CT: control target
= control target key end

     0   :  { %v160_v0 = vmov 0.0   ;;  %vm161_vm0 = vmmov 0   ;;  %vm61_vm1 = vcmask 523264   ;;  %s203_s1 = inlined_call_operand.vmem [shape: bf16[64,128], index: 1, kind: input, shape index: {}]   ;;  %s204_s0 = inlined_call_operand.vmem [shape: bf16[16,64], index: 0, kind: input, shape index: {}]   ;;  %s205_s2 = inlined_call_operand.vmem [shape: f32[1,128], index: 2, kind: input, shape index: {}]   ;;  %s206_s3 = inlined_call_operand.vmem [shape: bf16[16,128], index: 3, kind: output, shape index: {}]  }
   0x1   :  { %141 = vmatprep.subr.bf16.mxu0 %v160_v0  ;;  %v155_v1 = vld [vmem:[%s203_s1] sm:$0xff]   ;;  %149 = vmatprep.mubr.msk.bf16.mxu0 %vm161_vm0, %v160_v0  ;;  %v156_v2 = vld [vmem:[%s203_s1 + $0x8] sm:$0xff]   ;;  %v157_v3 = vld [vmem:[%s203_s1 + $0x10] sm:$0xff]  }
   0x2   :  { %142 = vmatpush3.bf16.msra.mxu0 %v155_v1  ;;  %v158_v4 = vld [vmem:[%s203_s1 + $0x18] sm:$0xff]   ;;  %v159_v5 = vld [vmem:[%s204_s0] sm:$0xff]  }
   0x3   :  { %143 = vmatprep.subr.bf16.mxu0 %v160_v0  ;;  %v120_v6 = vld [vmem:[%s205_s2] ss:$0 sm:$0xff] }
   0x6   :  { %144 = vmatpush3.bf16.msra.mxu0 %v156_v2 }
   0x7   :  { %145 = vmatprep.subr.bf16.mxu0 %v160_v0 }
   0xa   :  { %146 = vmatpush3.bf16.msra.mxu0 %v157_v3 }
   0xb   :  { %147 = vmatprep.subr.bf16.mxu0 %v160_v0 }
   0xe   :  { %148 = vmatpush3.bf16.msra.mxu0 %v158_v4 }
  0x11   :  { %150 = vmatmul.mubr.msk.bf16.vlgmr.msra.gmra.mrb[0].mxu0 %vm61_vm1, %v159_v5 }
  0xe4   :  { %v99_v7 = vpop.f32.mrb[0].mxu0 }
  0xe5   :  { %v151_v8 = vpop.f32.mrb[1].mxu0  ;;  %v100_v10 = vadd.f32 %v120_v6, %v99_v7 }
  0xe6   :  { %v102_v9 = vpop.f32.mrb[2].mxu0 }
  0xe7   :  { %v103_v11 = vadd.f32 %v120_v6, %v102_v9  ;;  %v152_v12 = vpop.f32.mrb[3].mxu0 }
  0xe9   :  { %v134_v13 = vpack.c.bf16 %v103_v11, %v100_v10 }
  0xeb   :  { %135 = vst [vmem:[%s206_s3] sm:$0xff] %v134_v13  }

// kernel: fwd_fn.58
= control target key start
LH: loop header
LB: loop body
LE: loop exit
PB: predicated region body
PF: predicated region fallthrough
CT: control target
= control target key end

     0   :  { %vm17_vm0 = vcmask 523264   ;;  %vm50_vm1 = vcmask 519168   ;;  %s97_s0 = inlined_call_operand.vmem [shape: bf16[16,64], index: 0, kind: input, shape index: {}]   ;;  %s98_s1 = inlined_call_operand.vmem [shape: f32[1,64], index: 1, kind: input, shape index: {}]   ;;  %s99_s2 = inlined_call_operand.vmem [shape: bf16[16,64], index: 2, kind: output, shape index: {}]  }
   0x1   :  { %v63_v0 = vld [vmem:[%s97_s0] sm:$0xff]  }
   0x2   :  { %v64_v1 = vunpack.c.l.bf16 %v63_v0  ;;  %v65_v2 = vunpack.c.h.bf16 %v63_v0  ;;  %v57_v14 = vld [vmem:[%s98_s1] ss:$0 sm:$0xff] }
   0x4   :  { %v15_v3 = vmul.f32 %v64_v1, %v64_v1  ;;  %v16_v4 = vmul.f32 %v65_v2, %v65_v2 }
   0x6   :  { %v18_v5 = vsel %vm17_vm0, %v15_v3, 0.0  ;;  %v21_v6 = vsel %vm17_vm0, %v16_v4, 0.0 }
   0x7   :  { %19 = vadd.xlane.f32.xlu0 %v18_v5 }
   0xb   :  { %22 = vadd.xlane.f32.xlu0 %v21_v6 }
  0x94   :  { %v20_v7 = vpop.xlane.xlu0 %19 }
  0x95   :  { %v25_v8 = vmul.f32 0.015625, %v20_v7 }
  0x97   :  { %v27_v9 = vadd.f32 1e-05, %v25_v8 }
  0x98   :  { %v23_v10 = vpop.xlane.xlu0 %22 }
  0x99   :  { %66 = vrsqrt.f32 %v27_v9  ;;  %v26_v11 = vmul.f32 0.015625, %v23_v10 }
  0x9b   :  { %v28_v12 = vadd.f32 1e-05, %v26_v11 }
  0x9d   :  { %68 = vrsqrt.f32 %v28_v12 }
  0xa3   :  { %v67_v13 = vpop.eup %66 }
  0xa4   :  { %v31_v15 = vmul.f32 %v67_v13, %v64_v1 }
  0xa6   :  { %v40_v16 = vmul.f32 %v57_v14, %v31_v15 }
  0xa7   :  { %v69_v17 = vpop.eup %68 }
  0xa8   :  { %v60_v18 = vpack.c.bf16 %v40_v16, %v40_v16  ;;  %v32_v19 = vmul.f32 %v69_v17, %v65_v2 }
  0xaa   :  { %51 = vst.msk [vmem:[%s99_s2] sm:$0xf] %vm50_vm1, %v60_v18  ;;  %v41_v20 = vmul.f32 %v57_v14, %v32_v19 }
  0xac   :  { %v61_v21 = vpack.c.bf16 %v41_v20, %v41_v20 }
  0xae   :  { %52 = vst.msk [vmem:[%s99_s2 + $0x4] sm:$0xf] %vm50_vm1, %v61_v21 }

// kernel: fwd_fn.59
= control target key start
LH: loop header
LB: loop body
LE: loop exit
PB: predicated region body
PF: predicated region fallthrough
CT: control target
= control target key end

     0   :  { %vm31_vm0 = vcmask 523264   ;;  %vm113_vm1 = vcmask 457728   ;;  %s229_s1 = inlined_call_operand.vmem [shape: f32[64,56], index: 1, kind: input, shape index: {}]   ;;  %s230_s0 = inlined_call_operand.vmem [shape: f32[16,64], index: 0, kind: input, shape index: {}]   ;;  %s231_s2 = inlined_call_operand.vmem [shape: f32[1,56], index: 2, kind: input, shape index: {}]   ;;  %s232_s3 = inlined_call_operand.vmem [shape: f32[16,56], index: 3, kind: output, shape index: {}]  }
   0x1   :  { %v16_v0 = vld [vmem:[%s229_s1] sm:$0xff]  ;;  %v17_v1 = vld [vmem:[%s229_s1 + $0x8] sm:$0xff]  ;;  %v18_v2 = vld [vmem:[%s229_s1 + $0x10] sm:$0xff] }
   0x2   :  { %v152_v3 = vpack.c.bf16 %v17_v1, %v16_v0  ;;  %v19_v4 = vld [vmem:[%s229_s1 + $0x18] sm:$0xff]  ;;  %v20_v6 = vld [vmem:[%s229_s1 + $0x20] sm:$0xff]  ;;  %v21_v7 = vld [vmem:[%s229_s1 + $0x28] sm:$0xff] }
   0x3   :  { %v156_v5 = vpack.c.bf16 %v19_v4, %v18_v2  ;;  %v14_v8 = vld [vmem:[%s230_s0] sm:$0xff]  ;;  %v160_v9 = vpack.c.bf16 %v21_v7, %v20_v6  ;;  %v22_v10 = vld [vmem:[%s229_s1 + $0x30] sm:$0xff]  ;;  %v23_v11 = vld [vmem:[%s229_s1 + $0x38] sm:$0xff] }
   0x4   :  { %153 = vmatprep.subr.bf16.mxu0 %v152_v3  ;;  %149 = vmatprep.mubr.msk.f32.mxu0 %vm31_vm0, %v14_v8  ;;  %v164_v12 = vpack.c.bf16 %v23_v11, %v22_v10  ;;  %v15_v13 = vld [vmem:[%s230_s0 + $0x8] sm:$0xff]  ;;  %v120_v14 = vld [vmem:[%s231_s2] ss:$0 sm:$0xff] }
   0x5   :  { %155 = vmatpush3.bf16.msra.mxu0 %v152_v3 }
   0x6   :  { %157 = vmatprep.subr.bf16.mxu0 %v156_v5 }
   0x9   :  { %159 = vmatpush3.bf16.msra.mxu0 %v156_v5 }
   0xa   :  { %161 = vmatprep.subr.bf16.mxu0 %v160_v9 }
   0xd   :  { %163 = vmatpush3.bf16.msra.mxu0 %v160_v9 }
   0xe   :  { %165 = vmatprep.subr.bf16.mxu0 %v164_v12 }
  0x11   :  { %167 = vmatpush3.bf16.msra.mxu0 %v164_v12 }
  0x14   :  { %150 = vmatmul.mubr.msk.f32.vlgmr.msra.gmra.mrb[0].mxu0 %vm31_vm0, %v15_v13 }
  0xe7   :  { %v151_v15 = vpop.f32.mrb[0].mxu0 }
  0xe8   :  { %v110_v16 = vadd.f32 %v151_v15, %v120_v14  ;;  %v104_v17 = vpop.f32.mrb[1].mxu0 }
  0xe9   :  { %v105_v18 = vadd.f32 %v120_v14, %v104_v17 }
  0xea   :  { %115 = vst.msk [vmem:[%s232_s3 + $0x8] sm:$0xff] %vm113_vm1, %v110_v16 }
  0xeb   :  { %114 = vst.msk [vmem:[%s232_s3] sm:$0xff] %vm113_vm1, %v105_v18 }

</bundles_post_ra>
